<compile_context>
chip_gen: v7x
topology: tpu7x:2x2x1
jax: 0.10.0
libtpu: 0.0.40
codegen_flags: <defaults>
</compile_context>

<pallas_src>
import functools

import numpy as np
import jax
import jax.numpy as jnp
from jax.experimental import pallas as pl
from jax.experimental.pallas import tpu as pltpu

_BF16 = jnp.bfloat16
SCAL_PAD = 128   # packed scalar heads: [dur, dur_conf, pitch, energy, pad...]
CONF_PAD = 128   # confidence head padded to 128 lanes (col 0 real)
GC_PAD = 128     # generation controller padded to 128 lanes (cols 0,1 real)


# ----------------------------------------------------------------------------
# in-kernel helpers
# ----------------------------------------------------------------------------

def _sigmoid(x):
    return 1.0 / (1.0 + jnp.exp(-x))


def _silu(x):
    return x * _sigmoid(x)


def _mm(a, b):
    """MXU matmul: bf16 operands, f32 accumulation."""
    return jnp.dot(a.astype(_BF16), b.astype(_BF16),
                   preferred_element_type=jnp.float32)


def _shift_rows(x, s):
    """y[t] = x[t + s] with zero padding; s is a static Python int."""
    T = x.shape[0]
    if s == 0:
        return x
    if abs(s) >= T:
        return jnp.zeros_like(x)
    z = jnp.zeros((abs(s),) + x.shape[1:], x.dtype)
    if s > 0:
        return jnp.concatenate([x[s:], z], axis=0)
    return jnp.concatenate([z, x[:T + s]], axis=0)


def _film(x, s, gw, gb, bw, bb):
    gamma = _mm(s, gw) + gb          # [1, D]
    beta = _mm(s, bw) + bb           # [1, D]
    return gamma * x + beta          # VPU broadcast over T


def _ssm_apply(xf, G):
    """ff = xf + broadcast_D(G @ mean_D(xf)); broadcast first -> full MXU lanes."""
    u0 = jnp.mean(xf, axis=-1, keepdims=True)                 # [T, 1]
    return xf + _mm(G, jnp.broadcast_to(u0, xf.shape))        # [T, D]


def _pyramid_conv(xf, convw_ref, convb, dilations):
    """Grouped dilated k=3 pyramid + folded 1x1 pointwise, via shifted slices."""
    T = xf.shape[0]
    shifts = [-d for d in dilations] + [0] + [d for d in dilations]
    acc = convb + xf                                           # bias + residual
    for j, s in enumerate(shifts):
        if abs(s) >= T:                                        # fully padded tap
            continue
        acc = acc + _mm(_shift_rows(xf, s), convw_ref[j])
    return acc


def _layer_norm(x, g, b):
    mu = jnp.mean(x, axis=-1, keepdims=True)
    var = jnp.mean(jnp.square(x - mu), axis=-1, keepdims=True)
    return (x - mu) * jax.lax.rsqrt(var + 1e-5) * g + b


# ----------------------------------------------------------------------------
# kernel 1: text encoder + duration predictor + variance adaptor
# ----------------------------------------------------------------------------

def _text_encoder_kernel(x_ref, style_ref, gw_ref, gb_ref, bw_ref, bb_ref,
                         g_ref, convw_ref, convb_ref, lng_ref, lnb_ref,
                         f0wf_ref, f0wb_ref, f0b_ref, f1w_ref, f1b_ref,
                         agw_ref, agb_ref, abw_ref, abb_ref,
                         pw_ref, pb_ref, swh_ref, swx_ref, sb_ref, pef_ref,
                         scal_ref, ctx_ref, *, dilations):
    x = x_ref[...]                                             # [T, E]
    s = style_ref[0]                                           # [1, S]
    xf = _film(x, s, gw_ref[...], gb_ref[...], bw_ref[...], bb_ref[...])
    ff = _ssm_apply(xf, g_ref[...])                            # forward branch
    bw_pre = _pyramid_conv(xf, convw_ref, convb_ref[...], dilations)
    bwf = _layer_norm(bw_pre, lng_ref[...], lnb_ref[...])      # backward branch
    h = _silu(_mm(ff, f0wf_ref[...]) + _mm(bwf, f0wb_ref[...]) + f0b_ref[...])
    feats = _mm(h, f1w_ref[...]) + f1b_ref[...]                # text features [T,E]

    # aux heads (duration predictor / variance adaptor stand-ins)
    # TODO(synk): FilmConditionedDurationPredictor / NormalizedVarianceAdaptor
    # definitions not provided -> deterministic stand-ins with matching interfaces.
    xa = _film(feats, s, agw_ref[...], agb_ref[...], abw_ref[...], abb_ref[...])
    hh = _silu(_mm(xa, pw_ref[...]) + pb_ref[...])             # [T, E/2]
    y = _mm(hh, swh_ref[...]) + _mm(feats, swx_ref[...]) + sb_ref[...]   # [T, 128]
    scal_ref[...] = y                                          # lane-dense store
    enhanced = feats + _mm(y, pef_ref[...])                    # + pitch/energy emb
    ctx_ref[0] = jnp.mean(enhanced, axis=0, keepdims=True)     # text context [1,E]


# ----------------------------------------------------------------------------
# kernel 2: main model + confidence head + generation controller
# ----------------------------------------------------------------------------

def _main_model_kernel(x_ref, ctx_ref, style_ref, gw_ref, gb_ref, bw_ref, bb_ref,
                       tpw_ref, tpb_ref, g_ref, convw_ref, convb_ref,
                       lng_ref, lnb_ref, f0wf_ref, f0wb_ref, f0b_ref,
                       f1w_ref, f1b_ref, h0w_ref, h0b_ref, h1w_ref, h1b_ref,
                       c0w_ref, c0b_ref, c1w_ref, c1b_ref,
                       g0wa_ref, g0wt_ref, g0b_ref, g1w_ref, g1b_ref,
                       logits_ref, conf_ref, gc_ref, *, dilations, num_codebooks):
    x0 = x_ref[...]                                            # [T, H] tok+pos+conf
    ctx = ctx_ref[0]                                           # [1, E]
    s = style_ref[0]                                           # [1, S]
    x = x0 + (_mm(ctx, tpw_ref[...]) + tpb_ref[...])           # text conditioning
    xf = _film(x, s, gw_ref[...], gb_ref[...], bw_ref[...], bb_ref[...])
    ff = _ssm_apply(xf, g_ref[...])
    bw_pre = _pyramid_conv(xf, convw_ref, convb_ref[...], dilations)
    bwf = _layer_norm(bw_pre, lng_ref[...], lnb_ref[...])
    h = _silu(_mm(ff, f0wf_ref[...]) + _mm(bwf, f0wb_ref[...]) + f0b_ref[...])
    final = _mm(h, f1w_ref[...]) + f1b_ref[...]                # [T, H]

    # per-codebook output heads (un-densified: no zero-block matmuls, no
    # host-side logits transpose; logits written directly in [B,C,T,CB] layout)
    for c in range(num_codebooks):
        hc = _silu(_mm(final, h0w_ref[c]) + h0b_ref[c])        # [T, H]
        logits_ref[0, c] = _mm(hc, h1w_ref[c]) + h1b_ref[c]    # [T, CB]

    # confidence head (128-lane padded, col 0 real)
    ch = _silu(_mm(final, c0w_ref[...]) + c0b_ref[...])        # [T, H/2]
    conf_ref[...] = _sigmoid(_mm(ch, c1w_ref[...]) + c1b_ref[...])

    # generation controller (stand-in), fused to avoid another launch.
    # TODO(synk): AdaptiveGenerationController source unavailable -> stand-in.
    avg = jnp.mean(final, axis=0, keepdims=True)               # [1, H]
    g = _silu(_mm(avg, g0wa_ref[...]) + _mm(ctx, g0wt_ref[...]) + g0b_ref[...])
    gc_ref[0] = _sigmoid(_mm(g, g1w_ref[...]) + g1b_ref[...])  # [1, 128]


# ----------------------------------------------------------------------------
# BlockSpec helpers (grid = (B,))
# ----------------------------------------------------------------------------

def _wspec(arr):
    shape = tuple(arr.shape)
    return pl.BlockSpec(shape, lambda i, _z=(0,) * len(shape): _z)


def _rowspec(rows, cols):
    return pl.BlockSpec((rows, cols), lambda i: (i, 0))


def _batchspec(tail):
    nd = len(tail)
    return pl.BlockSpec((1,) + tuple(tail), lambda i, _n=nd: (i,) + (0,) * _n)


_CPARAMS = pltpu.CompilerParams(
    dimension_semantics=("parallel",),
    vmem_limit_bytes=32 * 1024 * 1024,
)


# ----------------------------------------------------------------------------
# glue (plain JAX / numpy; tiny, constant-folded under jit)
# ----------------------------------------------------------------------------

def _ssm_operator(ssm_list, T):
    """Closed-form per-batch [T,T] operator of the 3 composed diagonal SSM layers
    acting on the channel-mean signal (replaces the serial scans).
    TODO(synk): OptimizedSSMBlock source unavailable; scalar diagonal SSM stand-in."""
    idx = jnp.arange(T, dtype=jnp.float32)
    delta = idx[:, None] - idx[None, :]
    low = delta >= 0
    eye = jnp.eye(T, dtype=jnp.float32)
    G = jnp.zeros((T, T), jnp.float32)
    P = eye
    for p in ssm_list:
        a = jax.nn.sigmoid(p["a"])
        # clamp exponent before pow: a**(negative large) would overflow -> NaN
        L = jnp.where(low, jnp.power(a, jnp.maximum(delta, 0.0)), 0.0)
        M = (p["b"] * p["c"]) * L + p["d"] * eye
        G = G + M @ P               # contribution of layer k
        P = (eye + M) @ P           # u_{k+1} = u_k + y_k
    return G


def _fuse_pyramid_pointwise(conv_ws, conv_bs, pw_w, pw_b, dilations, D, groups=4):
    """Fold the grouped dilated Conv1d branches and the 1x1 pointwise conv into a
    single [nseg, D, D] per-tap matmul weight (done once at init)."""
    nb = len(dilations)
    out_per = D // 4
    in_g = D // groups
    out_g = out_per // groups
    nseg = 2 * nb + 1
    Wp = np.zeros((nseg * D, nb * out_per), np.float32)
    bp = np.zeros((nb * out_per,), np.float32)
    for j in range(nb):
        wj = conv_ws[j]                                   # [out_per, in_g, 3]
        bp[j * out_per:(j + 1) * out_per] = conv_bs[j]
        for k in range(3):
            seg = j if k == 0 else (nb if k == 1 else nb + 1 + j)
            for o in range(out_per):
                g = o // out_g
                Wp[seg * D + g * in_g: seg * D + (g + 1) * in_g,
                   j * out_per + o] = wj[o, :, k]
    W = Wp @ pw_w                                         # pointwise folded in
    b = bp @ pw_w + pw_b
    return W.reshape(nseg, D, D), b


# ----------------------------------------------------------------------------
# parameter initialization (deterministic, synthetic, packed & pre-cast)
# ----------------------------------------------------------------------------

class _PRNG:
    def __init__(self, key):
        self.key = key

    def next(self):
        self.key, sub = jax.random.split(self.key)
        return sub


def make_params(vocab_size=100, text_dim=32, style_dim=16, hidden_dim=64,
                num_codebooks=2, codebook_size=64, seed=0):
    rng = _PRNG(jax.random.PRNGKey(seed))
    E, S, H = text_dim, style_dim, hidden_dim
    C, CB = num_codebooks, codebook_size

    def w(*shape, s=0.05):
        return np.asarray(s * jax.random.normal(rng.next(), shape), np.float32)

    def bias(v):
        return jnp.asarray(np.reshape(np.asarray(v, np.float32), (1, -1)), jnp.float32)

    def bf(v):
        return jnp.asarray(v, _BF16)

    def film(in_dim, d):
        return {"gw": bf(w(in_dim, d)), "gb": bias(np.ones((d,), np.float32)),
                "bw": bf(w(in_dim, d)), "bb": bias(np.zeros((d,), np.float32))}

    def ssm():
        # TODO(synk): OptimizedSSMBlock source unavailable; diagonal SSM stand-in.
        return {"a": jnp.float32(1.0), "b": jnp.float32(0.5),
                "c": jnp.float32(0.5), "d": jnp.float32(0.1)}

    def conv_block(D, dilations):
        conv_ws = [w(D // 4, D // 4, 3) for _ in dilations]
        conv_bs = [w(D // 4) for _ in dilations]
        Wc, bc = _fuse_pyramid_pointwise(conv_ws, conv_bs, w(D, D), w(D),
                                         dilations, D)
        return bf(Wc), bias(bc)

    # ---- text encoder -------------------------------------------------------
    te_conv_w, te_conv_b = conv_block(E, (1, 2, 4, 8))
    text_encoder = {
        "embed_dim": E,
        "token_embedding": jnp.asarray(w(vocab_size, E, s=0.1)),
        "film": film(S, E),
        "ssm": [ssm() for _ in range(3)],
        "dilations": (1, 2, 4, 8),
        "conv_w": te_conv_w, "conv_b": te_conv_b,
        "ln_g": jnp.ones((1, E), jnp.float32),
        "ln_b": jnp.zeros((1, E), jnp.float32),
        "f0_wf": bf(w(E, H)), "f0_wb": bf(w(E, H)), "f0_b": bias(w(H)),
        "f1_w": bf(w(H, E)), "f1_b": bias(w(E)),
    }

    # ---- aux heads (duration predictor + variance adaptor stand-ins) --------
    half_e = E // 2
    swh = np.zeros((half_e, SCAL_PAD), np.float32)
    swx = np.zeros((E, SCAL_PAD), np.float32)
    sb = np.zeros((SCAL_PAD,), np.float32)
    swh[:, 0] = w(half_e); sb[0] = w(1)[0]          # duration
    swh[:, 1] = w(half_e); sb[1] = w(1)[0]          # duration confidence
    swx[:, 2] = w(E); sb[2] = w(1)[0]               # pitch
    swx[:, 3] = w(E); sb[3] = w(1)[0]               # energy
    pe_full = np.zeros((SCAL_PAD, E), np.float32)
    pe_full[2, :] = w(E)                            # pitch embedding
    pe_full[3, :] = w(E)                            # energy embedding
    aux = {
        "film": film(S, E),
        "proj_w": bf(w(E, half_e)), "proj_b": bias(w(half_e)),
        "scal_wh": bf(swh), "scal_wx": bf(swx), "scal_b": bias(sb),
        "pe_full": bf(pe_full),
    }

    # ---- main model ----------------------------------------------------------
    half_h = H // 2
    mm_conv_w, mm_conv_b = conv_block(H, (1, 3, 9, 27))
    h0_w = np.stack([w(H, H) for _ in range(C)], axis=0)
    h0_b = np.stack([w(H) for _ in range(C)], axis=0).reshape(C, 1, H)
    h1_w = np.stack([w(H, CB) for _ in range(C)], axis=0)
    h1_b = np.stack([w(CB) for _ in range(C)], axis=0).reshape(C, 1, CB)
    c1_w = np.zeros((half_h, CONF_PAD), np.float32)
    c1_b = np.zeros((CONF_PAD,), np.float32)
    c1_w[:, 0] = w(half_h); c1_b[0] = w(1)[0]
    g1_w = np.zeros((half_h, GC_PAD), np.float32)
    g1_b = np.zeros((GC_PAD,), np.float32)
    g1_w[:, :2] = w(half_h, 2); g1_b[:2] = w(2)
    main_model = {
        "hidden_dim": H, "num_codebooks": C, "codebook_size": CB,
        "token_embeddings": [jnp.asarray(w(CB, H, s=0.1)) for _ in range(C)],
        "pos_embedding": jnp.asarray(w(1000, H, s=0.1)),
        "confidence_embedding": jnp.asarray(w(20, H, s=0.1)),
        "tp_w": bf(w(E, H)), "tp_b": bias(w(H)),
        "film": film(S, H),
        "ssm": [ssm() for _ in range(3)],
        "dilations": (1, 3, 9, 27),
        "conv_w": mm_conv_w, "conv_b": mm_conv_b,
        "ln_g": jnp.ones((1, H), jnp.float32),
        "ln_b": jnp.zeros((1, H), jnp.float32),
        "f0_wf": bf(w(H, H)), "f0_wb": bf(w(H, H)), "f0_b": bias(w(H)),
        "f1_w": bf(w(H, H)), "f1_b": bias(w(H)),
        "h0_w": bf(h0_w), "h0_b": jnp.asarray(h0_b, jnp.float32),
        "h1_w": bf(h1_w), "h1_b": jnp.asarray(h1_b, jnp.float32),
        "c0_w": bf(w(H, half_h)), "c0_b": bias(w(half_h)),
        "c1_w": bf(c1_w), "c1_b": bias(c1_b),
        "g0_wa": bf(w(H, half_h)), "g0_wt": bf(w(E, half_h)), "g0_b": bias(w(half_h)),
        "g1_w": bf(g1_w), "g1_b": bias(g1_b),
    }

    return {"text_dim": E, "style_dim": S, "hidden_dim": H,
            "num_codebooks": C, "codebook_size": CB,
            "text_encoder": text_encoder, "aux": aux, "main_model": main_model}


# ----------------------------------------------------------------------------
# module forward passes (thin glue around the 2 fused Pallas kernels)
# ----------------------------------------------------------------------------

def text_encoder_aux_forward(p_te, p_aux, tokens, style):
    B, T = tokens.shape
    E = p_te["embed_dim"]
    S = style.shape[-1]
    x = jnp.take(p_te["token_embedding"], tokens, axis=0).reshape(B * T, E)
    G = _ssm_operator(p_te["ssm"], T).astype(_BF16)
    style3 = style.reshape(B, 1, S)
    fte, fax = p_te["film"], p_aux["film"]
    inputs = [x, style3, fte["gw"], fte["gb"], fte["bw"], fte["bb"], G,
              p_te["conv_w"], p_te["conv_b"], p_te["ln_g"], p_te["ln_b"],
              p_te["f0_wf"], p_te["f0_wb"], p_te["f0_b"], p_te["f1_w"], p_te["f1_b"],
              fax["gw"], fax["gb"], fax["bw"], fax["bb"],
              p_aux["proj_w"], p_aux["proj_b"],
              p_aux["scal_wh"], p_aux["scal_wx"], p_aux["scal_b"], p_aux["pe_full"]]
    in_specs = ([_rowspec(T, E), _batchspec((1, S))]
                + [_wspec(a) for a in inputs[2:]])
    out_shapes = (jax.ShapeDtypeStruct((B * T, SCAL_PAD), jnp.float32),
                  jax.ShapeDtypeStruct((B, 1, E), jnp.float32))
    out_specs = (_rowspec(T, SCAL_PAD), _batchspec((1, E)))
    kernel = functools.partial(_text_encoder_kernel, dilations=p_te["dilations"])
    scal, ctx = pl.pallas_call(
        kernel, out_shape=out_shapes, grid=(B,),
        in_specs=in_specs, out_specs=out_specs,
        compiler_params=_CPARAMS,
    )(*inputs)
    return scal, ctx[:, 0, :]


def main_model_forward(p, text_context, current_tokens, style, confidence_level=5):
    B, C, T = current_tokens.shape
    H, CB = p["hidden_dim"], p["codebook_size"]
    E = text_context.shape[-1]
    S = style.shape[-1]
    embeds = [jnp.take(p["token_embeddings"][i], current_tokens[:, i, :], axis=0)
              for i in range(C)]
    x0 = sum(embeds) / float(C)                                        # [B,T,H]
    posconf = (p["pos_embedding"][:T]
               + p["confidence_embedding"][min(confidence_level, 19)])
    x0 = (x0 + posconf[None]).reshape(B * T, H)
    G = _ssm_operator(p["ssm"], T).astype(_BF16)
    ctx3 = text_context.reshape(B, 1, E)
    style3 = style.reshape(B, 1, S)
    f = p["film"]
    inputs = [x0, ctx3, style3, f["gw"], f["gb"], f["bw"], f["bb"],
              p["tp_w"], p["tp_b"], G, p["conv_w"], p["conv_b"],
              p["ln_g"], p["ln_b"], p["f0_wf"], p["f0_wb"], p["f0_b"],
              p["f1_w"], p["f1_b"], p["h0_w"], p["h0_b"], p["h1_w"], p["h1_b"],
              p["c0_w"], p["c0_b"], p["c1_w"], p["c1_b"],
              p["g0_wa"], p["g0_wt"], p["g0_b"], p["g1_w"], p["g1_b"]]
    in_specs = ([_rowspec(T, H), _batchspec((1, E)), _batchspec((1, S))]
                + [_wspec(a) for a in inputs[3:]])
    out_shapes = (jax.ShapeDtypeStruct((B, C, T, CB), jnp.float32),
                  jax.ShapeDtypeStruct((B * T, CONF_PAD), jnp.float32),
                  jax.ShapeDtypeStruct((B, 1, GC_PAD), jnp.float32))
    out_specs = (_batchspec((C, T, CB)), _rowspec(T, CONF_PAD), _batchspec((1, GC_PAD)))
    kernel = functools.partial(_main_model_kernel, dilations=p["dilations"],
                               num_codebooks=C)
    logits, conf, gc = pl.pallas_call(
        kernel, out_shape=out_shapes, grid=(B,),
        in_specs=in_specs, out_specs=out_specs,
        compiler_params=_CPARAMS,
    )(*inputs)
    confidence = conf[:, 0].reshape(B, T)
    return logits, confidence, gc[:, 0, :]


def tts_forward(params, text_tokens, token_key):
    B, T_text = text_tokens.shape
    # reference_audio=None path -> zero style embedding (AudioStyleExtractor unused)
    style = jnp.zeros((B, params["style_dim"]), jnp.float32)

    scal, text_context = text_encoder_aux_forward(
        params["text_encoder"], params["aux"], text_tokens, style)
    pred_dur = jax.nn.softplus(scal[:, 0]).reshape(B, T_text)
    dur_conf = jax.nn.sigmoid(scal[:, 1]).reshape(B, T_text)
    pred_pitch = scal[:, 2].reshape(B, T_text)
    pred_energy = scal[:, 3].reshape(B, T_text)

    # TODO(synk): EfficientLengthRegulator is data-dependent (variable output
    # length); static stand-in repeats each token 2x -> T_mel = 2*T_text, and
    # mean(repeat(x,2)) == mean(x) (text_context already reduced in-kernel).
    T_mel = 2 * T_text
    current_tokens = jax.random.randint(
        token_key, (B, params["num_codebooks"], T_mel), 0, params["codebook_size"])

    logits, confidence, gc = main_model_forward(
        params["main_model"], text_context, current_tokens, style)

    return {"logits": logits,
            "predicted_durations": pred_dur,
            "duration_confidence": dur_conf,
            "predicted_pitch": pred_pitch,
            "predicted_energy": pred_energy,
            "continue_prob": gc[:, 0],
            "decision_confidence": gc[:, 1],
            "style_embedding": style,
            "regulated_length": T_mel,
            "model_confidence": confidence}


# ----------------------------------------------------------------------------

if __name__ == "__main__":
    B, T_TEXT = 2, 8
    VOCAB = 100

    params = make_params(vocab_size=VOCAB, text_dim=32, style_dim=16,
                         hidden_dim=64, num_codebooks=2, codebook_size=64, seed=0)

    # params are closed over (weights become jit constants, python ints stay static)
    fwd = jax.jit(lambda toks, key: tts_forward(params, toks, key))

    key = jax.random.PRNGKey(0)
    k_tok, k_cur = jax.random.split(key)
    text_tokens = jax.random.randint(k_tok, (B, T_TEXT), 0, VOCAB)

    out = fwd(text_tokens, k_cur)
    out = jax.block_until_ready(out)

    T_MEL = 2 * T_TEXT
    assert out["logits"].shape == (B, 2, T_MEL, 64)
    assert out["model_confidence"].shape == (B, T_MEL)
    assert out["predicted_durations"].shape == (B, T_TEXT)
    assert out["continue_prob"].shape == (B,)
    assert bool(jnp.isfinite(out["logits"]).all())
    assert bool((out["model_confidence"] >= 0.0).all()
                & (out["model_confidence"] <= 1.0).all())
    print("KERNEL_OK")
</pallas_src>

<mosaic_0001>
module attributes {stable_mosaic.version = 11 : i64} {
  func.func @_main_model_kernel(%arg0: i32, %arg1: memref<16x64xf32, #tpu.memory_space<vmem>>, %arg2: memref<1x1x32xf32, #tpu.memory_space<vmem>>, %arg3: memref<1x1x16xf32, #tpu.memory_space<vmem>>, %arg4: memref<16x64xbf16, #tpu.memory_space<vmem>>, %arg5: memref<1x64xf32, #tpu.memory_space<vmem>>, %arg6: memref<16x64xbf16, #tpu.memory_space<vmem>>, %arg7: memref<1x64xf32, #tpu.memory_space<vmem>>, %arg8: memref<32x64xbf16, #tpu.memory_space<vmem>>, %arg9: memref<1x64xf32, #tpu.memory_space<vmem>>, %arg10: memref<16x16xbf16, #tpu.memory_space<vmem>>, %arg11: memref<9x64x64xbf16, #tpu.memory_space<vmem>>, %arg12: memref<1x64xf32, #tpu.memory_space<vmem>>, %arg13: memref<1x64xf32, #tpu.memory_space<vmem>>, %arg14: memref<1x64xf32, #tpu.memory_space<vmem>>, %arg15: memref<64x64xbf16, #tpu.memory_space<vmem>>, %arg16: memref<64x64xbf16, #tpu.memory_space<vmem>>, %arg17: memref<1x64xf32, #tpu.memory_space<vmem>>, %arg18: memref<64x64xbf16, #tpu.memory_space<vmem>>, %arg19: memref<1x64xf32, #tpu.memory_space<vmem>>, %arg20: memref<2x64x64xbf16, #tpu.memory_space<vmem>>, %arg21: memref<2x1x64xf32, #tpu.memory_space<vmem>>, %arg22: memref<2x64x64xbf16, #tpu.memory_space<vmem>>, %arg23: memref<2x1x64xf32, #tpu.memory_space<vmem>>, %arg24: memref<64x32xbf16, #tpu.memory_space<vmem>>, %arg25: memref<1x32xf32, #tpu.memory_space<vmem>>, %arg26: memref<32x128xbf16, #tpu.memory_space<vmem>>, %arg27: memref<1x128xf32, #tpu.memory_space<vmem>>, %arg28: memref<64x32xbf16, #tpu.memory_space<vmem>>, %arg29: memref<32x32xbf16, #tpu.memory_space<vmem>>, %arg30: memref<1x32xf32, #tpu.memory_space<vmem>>, %arg31: memref<32x128xbf16, #tpu.memory_space<vmem>>, %arg32: memref<1x128xf32, #tpu.memory_space<vmem>>, %arg33: memref<1x2x16x64xf32, #tpu.memory_space<vmem>>, %arg34: memref<16x128xf32, #tpu.memory_space<vmem>>, %arg35: memref<1x1x128xf32, #tpu.memory_space<vmem>>) attributes {dimension_semantics = [#tpu.dimension_semantics<parallel>], iteration_bounds = array<i64: 2>, scalar_prefetch = 0 : i64, scratch_operands = 0 : i64, tpu.core_type = #tpu.core_type<tc>, window_params = [{transform_indices = @transform_0, window_bounds = array<i64: 16, 64>}, {transform_indices = @transform_1, window_bounds = array<i64: 1, 1, 32>}, {transform_indices = @transform_2, window_bounds = array<i64: 1, 1, 16>}, {pipeline_mode = #tpu.pipeline_mode<synchronous>, transform_indices = @transform_3, window_bounds = array<i64: 16, 64>}, {pipeline_mode = #tpu.pipeline_mode<synchronous>, transform_indices = @transform_4, window_bounds = array<i64: 1, 64>}, {pipeline_mode = #tpu.pipeline_mode<synchronous>, transform_indices = @transform_5, window_bounds = array<i64: 16, 64>}, {pipeline_mode = #tpu.pipeline_mode<synchronous>, transform_indices = @transform_6, window_bounds = array<i64: 1, 64>}, {pipeline_mode = #tpu.pipeline_mode<synchronous>, transform_indices = @transform_7, window_bounds = array<i64: 32, 64>}, {pipeline_mode = #tpu.pipeline_mode<synchronous>, transform_indices = @transform_8, window_bounds = array<i64: 1, 64>}, {pipeline_mode = #tpu.pipeline_mode<synchronous>, transform_indices = @transform_9, window_bounds = array<i64: 16, 16>}, {pipeline_mode = #tpu.pipeline_mode<synchronous>, transform_indices = @transform_10, window_bounds = array<i64: 9, 64, 64>}, {pipeline_mode = #tpu.pipeline_mode<synchronous>, transform_indices = @transform_11, window_bounds = array<i64: 1, 64>}, {pipeline_mode = #tpu.pipeline_mode<synchronous>, transform_indices = @transform_12, window_bounds = array<i64: 1, 64>}, {pipeline_mode = #tpu.pipeline_mode<synchronous>, transform_indices = @transform_13, window_bounds = array<i64: 1, 64>}, {pipeline_mode = #tpu.pipeline_mode<synchronous>, transform_indices = @transform_14, window_bounds = array<i64: 64, 64>}, {pipeline_mode = #tpu.pipeline_mode<synchronous>, transform_indices = @transform_15, window_bounds = array<i64: 64, 64>}, {pipeline_mode = #tpu.pipeline_mode<synchronous>, transform_indices = @transform_16, window_bounds = array<i64: 1, 64>}, {pipeline_mode = #tpu.pipeline_mode<synchronous>, transform_indices = @transform_17, window_bounds = array<i64: 64, 64>}, {pipeline_mode = #tpu.pipeline_mode<synchronous>, transform_indices = @transform_18, window_bounds = array<i64: 1, 64>}, {pipeline_mode = #tpu.pipeline_mode<synchronous>, transform_indices = @transform_19, window_bounds = array<i64: 2, 64, 64>}, {pipeline_mode = #tpu.pipeline_mode<synchronous>, transform_indices = @transform_20, window_bounds = array<i64: 2, 1, 64>}, {pipeline_mode = #tpu.pipeline_mode<synchronous>, transform_indices = @transform_21, window_bounds = array<i64: 2, 64, 64>}, {pipeline_mode = #tpu.pipeline_mode<synchronous>, transform_indices = @transform_22, window_bounds = array<i64: 2, 1, 64>}, {pipeline_mode = #tpu.pipeline_mode<synchronous>, transform_indices = @transform_23, window_bounds = array<i64: 64, 32>}, {pipeline_mode = #tpu.pipeline_mode<synchronous>, transform_indices = @transform_24, window_bounds = array<i64: 1, 32>}, {pipeline_mode = #tpu.pipeline_mode<synchronous>, transform_indices = @transform_25, window_bounds = array<i64: 32, 128>}, {pipeline_mode = #tpu.pipeline_mode<synchronous>, transform_indices = @transform_26, window_bounds = array<i64: 1, 128>}, {pipeline_mode = #tpu.pipeline_mode<synchronous>, transform_indices = @transform_27, window_bounds = array<i64: 64, 32>}, {pipeline_mode = #tpu.pipeline_mode<synchronous>, transform_indices = @transform_28, window_bounds = array<i64: 32, 32>}, {pipeline_mode = #tpu.pipeline_mode<synchronous>, transform_indices = @transform_29, window_bounds = array<i64: 1, 32>}, {pipeline_mode = #tpu.pipeline_mode<synchronous>, transform_indices = @transform_30, window_bounds = array<i64: 32, 128>}, {pipeline_mode = #tpu.pipeline_mode<synchronous>, transform_indices = @transform_31, window_bounds = array<i64: 1, 128>}, {transform_indices = @transform_32, window_bounds = array<i64: 1, 2, 16, 64>}, {transform_indices = @transform_33, window_bounds = array<i64: 16, 128>}, {transform_indices = @transform_34, window_bounds = array<i64: 1, 1, 128>}]} {
    %c0 = arith.constant 0 : index
    %c0_0 = arith.constant 0 : index
    %0 = vector.load %arg1[%c0, %c0_0] : memref<16x64xf32, #tpu.memory_space<vmem>>, vector<16x64xf32>
    %c0_1 = arith.constant 0 : index
    %c0_2 = arith.constant 0 : index
    %c0_3 = arith.constant 0 : index
    %1 = vector.load %arg2[%c0_1, %c0_2, %c0_3] : memref<1x1x32xf32, #tpu.memory_space<vmem>>, vector<1x1x32xf32>
    %2 = vector.shape_cast %1 : vector<1x1x32xf32> to vector<1x32xf32>
    %c0_4 = arith.constant 0 : index
    %c0_5 = arith.constant 0 : index
    %c0_6 = arith.constant 0 : index
    %3 = vector.load %arg3[%c0_4, %c0_5, %c0_6] : memref<1x1x16xf32, #tpu.memory_space<vmem>>, vector<1x1x16xf32>
    %4 = vector.shape_cast %3 : vector<1x1x16xf32> to vector<1x16xf32>
    %c0_7 = arith.constant 0 : index
    %c0_8 = arith.constant 0 : index
    %5 = vector.load %arg8[%c0_7, %c0_8] : memref<32x64xbf16, #tpu.memory_space<vmem>>, vector<32x64xbf16>
    %6 = arith.truncf %2 : vector<1x32xf32> to vector<1x32xbf16>
    %cst = arith.constant dense<0.000000e+00> : vector<1x64xf32>
    %7 = tpu.matmul %6, %5, %cst {dimension_numbers = #tpu.dot_dimension_numbers<[1], [0], [0], [1], [0, 0, 1, 1], [], []>} : vector<1x32xbf16>, vector<32x64xbf16>, vector<1x64xf32> -> vector<1x64xf32>
    %c0_9 = arith.constant 0 : index
    %c0_10 = arith.constant 0 : index
    %8 = vector.load %arg9[%c0_9, %c0_10] : memref<1x64xf32, #tpu.memory_space<vmem>>, vector<1x64xf32>
    %9 = arith.addf %7, %8 : vector<1x64xf32>
    %10 = vector.broadcast %9 : vector<1x64xf32> to vector<16x64xf32>
    %11 = arith.addf %0, %10 : vector<16x64xf32>
    %c0_11 = arith.constant 0 : index
    %c0_12 = arith.constant 0 : index
    %12 = vector.load %arg4[%c0_11, %c0_12] : memref<16x64xbf16, #tpu.memory_space<vmem>>, vector<16x64xbf16>
    %c0_13 = arith.constant 0 : index
    %c0_14 = arith.constant 0 : index
    %13 = vector.load %arg5[%c0_13, %c0_14] : memref<1x64xf32, #tpu.memory_space<vmem>>, vector<1x64xf32>
    %c0_15 = arith.constant 0 : index
    %c0_16 = arith.constant 0 : index
    %14 = vector.load %arg6[%c0_15, %c0_16] : memref<16x64xbf16, #tpu.memory_space<vmem>>, vector<16x64xbf16>
    %c0_17 = arith.constant 0 : index
    %c0_18 = arith.constant 0 : index
    %15 = vector.load %arg7[%c0_17, %c0_18] : memref<1x64xf32, #tpu.memory_space<vmem>>, vector<1x64xf32>
    %16 = arith.truncf %4 : vector<1x16xf32> to vector<1x16xbf16>
    %cst_19 = arith.constant dense<0.000000e+00> : vector<1x64xf32>
    %17 = tpu.matmul %16, %12, %cst_19 {dimension_numbers = #tpu.dot_dimension_numbers<[1], [0], [0], [1], [0, 0, 1, 1], [], []>} : vector<1x16xbf16>, vector<16x64xbf16>, vector<1x64xf32> -> vector<1x64xf32>
    %18 = arith.addf %17, %13 : vector<1x64xf32>
    %19 = arith.truncf %4 : vector<1x16xf32> to vector<1x16xbf16>
    %cst_20 = arith.constant dense<0.000000e+00> : vector<1x64xf32>
    %20 = tpu.matmul %19, %14, %cst_20 {dimension_numbers = #tpu.dot_dimension_numbers<[1], [0], [0], [1], [0, 0, 1, 1], [], []>} : vector<1x16xbf16>, vector<16x64xbf16>, vector<1x64xf32> -> vector<1x64xf32>
    %21 = arith.addf %20, %15 : vector<1x64xf32>
    %22 = vector.broadcast %18 : vector<1x64xf32> to vector<16x64xf32>
    %23 = arith.mulf %22, %11 : vector<16x64xf32>
    %24 = vector.broadcast %21 : vector<1x64xf32> to vector<16x64xf32>
    %25 = arith.addf %23, %24 : vector<16x64xf32>
    %c0_21 = arith.constant 0 : index
    %c0_22 = arith.constant 0 : index
    %26 = vector.load %arg10[%c0_21, %c0_22] : memref<16x16xbf16, #tpu.memory_space<vmem>>, vector<16x16xbf16>
    %cst_23 = arith.constant dense<0.000000e+00> : vector<16xf32>
    %27 = vector.multi_reduction <add>, %25, %cst_23 [1] : vector<16x64xf32> to vector<16xf32>
    %28 = vector.shape_cast %27 : vector<16xf32> to vector<16x1xf32>
    %cst_24 = arith.constant 6.400000e+01 : f32
    %29 = vector.broadcast %cst_24 : f32 to vector<16x1xf32>
    %30 = arith.divf %28, %29 : vector<16x1xf32>
    %31 = vector.shape_cast %30 : vector<16x1xf32> to vector<16x1xf32>
    %32 = vector.broadcast %31 : vector<16x1xf32> to vector<16x64xf32>
    %33 = arith.truncf %32 : vector<16x64xf32> to vector<16x64xbf16>
    %cst_25 = arith.constant dense<0.000000e+00> : vector<16x64xf32>
    %34 = tpu.matmul %26, %33, %cst_25 {dimension_numbers = #tpu.dot_dimension_numbers<[1], [0], [0], [1], [0, 0, 1, 1], [], []>} : vector<16x16xbf16>, vector<16x64xbf16>, vector<16x64xf32> -> vector<16x64xf32>
    %35 = arith.addf %25, %34 : vector<16x64xf32>
    %c0_26 = arith.constant 0 : index
    %c0_27 = arith.constant 0 : index
    %36 = vector.load %arg12[%c0_26, %c0_27] : memref<1x64xf32, #tpu.memory_space<vmem>>, vector<1x64xf32>
    %37 = vector.broadcast %36 : vector<1x64xf32> to vector<16x64xf32>
    %38 = arith.addf %37, %25 : vector<16x64xf32>
    %cst_28 = arith.constant 0.000000e+00 : f32
    %39 = vector.broadcast %cst_28 : f32 to vector<1x64xf32>
    %40 = vector.extract_strided_slice %25 {offsets = [0, 0], sizes = [15, 64], strides = [1, 1]} : vector<16x64xf32> to vector<15x64xf32>
    %41 = tpu.concatenate %39, %40 in 0 : vector<1x64xf32>, vector<15x64xf32> -> vector<16x64xf32>
    %c0_29 = arith.constant 0 : index
    %c0_30 = arith.constant 0 : index
    %c0_31 = arith.constant 0 : index
    %42 = vector.load %arg11[%c0_29, %c0_30, %c0_31] : memref<9x64x64xbf16, #tpu.memory_space<vmem>>, vector<1x64x64xbf16>
    %43 = vector.shape_cast %42 : vector<1x64x64xbf16> to vector<64x64xbf16>
    %44 = arith.truncf %41 : vector<16x64xf32> to vector<16x64xbf16>
    %cst_32 = arith.constant dense<0.000000e+00> : vector<16x64xf32>
    %45 = tpu.matmul %44, %43, %cst_32 {dimension_numbers = #tpu.dot_dimension_numbers<[1], [0], [0], [1], [0, 0, 1, 1], [], []>} : vector<16x64xbf16>, vector<64x64xbf16>, vector<16x64xf32> -> vector<16x64xf32>
    %46 = arith.addf %38, %45 : vector<16x64xf32>
    %cst_33 = arith.constant 0.000000e+00 : f32
    %47 = vector.broadcast %cst_33 : f32 to vector<3x64xf32>
    %48 = vector.extract_strided_slice %25 {offsets = [0, 0], sizes = [13, 64], strides = [1, 1]} : vector<16x64xf32> to vector<13x64xf32>
    %49 = tpu.concatenate %47, %48 in 0 : vector<3x64xf32>, vector<13x64xf32> -> vector<16x64xf32>
    %c1 = arith.constant 1 : index
    %c0_34 = arith.constant 0 : index
    %c0_35 = arith.constant 0 : index
    %50 = vector.load %arg11[%c1, %c0_34, %c0_35] : memref<9x64x64xbf16, #tpu.memory_space<vmem>>, vector<1x64x64xbf16>
    %51 = vector.shape_cast %50 : vector<1x64x64xbf16> to vector<64x64xbf16>
    %52 = arith.truncf %49 : vector<16x64xf32> to vector<16x64xbf16>
    %cst_36 = arith.constant dense<0.000000e+00> : vector<16x64xf32>
    %53 = tpu.matmul %52, %51, %cst_36 {dimension_numbers = #tpu.dot_dimension_numbers<[1], [0], [0], [1], [0, 0, 1, 1], [], []>} : vector<16x64xbf16>, vector<64x64xbf16>, vector<16x64xf32> -> vector<16x64xf32>
    %54 = arith.addf %46, %53 : vector<16x64xf32>
    %cst_37 = arith.constant 0.000000e+00 : f32
    %55 = vector.broadcast %cst_37 : f32 to vector<9x64xf32>
    %56 = vector.extract_strided_slice %25 {offsets = [0, 0], sizes = [7, 64], strides = [1, 1]} : vector<16x64xf32> to vector<7x64xf32>
    %57 = tpu.concatenate %55, %56 in 0 : vector<9x64xf32>, vector<7x64xf32> -> vector<16x64xf32>
    %c2 = arith.constant 2 : index
    %c0_38 = arith.constant 0 : index
    %c0_39 = arith.constant 0 : index
    %58 = vector.load %arg11[%c2, %c0_38, %c0_39] : memref<9x64x64xbf16, #tpu.memory_space<vmem>>, vector<1x64x64xbf16>
    %59 = vector.shape_cast %58 : vector<1x64x64xbf16> to vector<64x64xbf16>
    %60 = arith.truncf %57 : vector<16x64xf32> to vector<16x64xbf16>
    %cst_40 = arith.constant dense<0.000000e+00> : vector<16x64xf32>
    %61 = tpu.matmul %60, %59, %cst_40 {dimension_numbers = #tpu.dot_dimension_numbers<[1], [0], [0], [1], [0, 0, 1, 1], [], []>} : vector<16x64xbf16>, vector<64x64xbf16>, vector<16x64xf32> -> vector<16x64xf32>
    %62 = arith.addf %54, %61 : vector<16x64xf32>
    %c4 = arith.constant 4 : index
    %c0_41 = arith.constant 0 : index
    %c0_42 = arith.constant 0 : index
    %63 = vector.load %arg11[%c4, %c0_41, %c0_42] : memref<9x64x64xbf16, #tpu.memory_space<vmem>>, vector<1x64x64xbf16>
    %64 = vector.shape_cast %63 : vector<1x64x64xbf16> to vector<64x64xbf16>
    %65 = arith.truncf %25 : vector<16x64xf32> to vector<16x64xbf16>
    %cst_43 = arith.constant dense<0.000000e+00> : vector<16x64xf32>
    %66 = tpu.matmul %65, %64, %cst_43 {dimension_numbers = #tpu.dot_dimension_numbers<[1], [0], [0], [1], [0, 0, 1, 1], [], []>} : vector<16x64xbf16>, vector<64x64xbf16>, vector<16x64xf32> -> vector<16x64xf32>
    %67 = arith.addf %62, %66 : vector<16x64xf32>
    %cst_44 = arith.constant 0.000000e+00 : f32
    %68 = vector.broadcast %cst_44 : f32 to vector<1x64xf32>
    %69 = vector.extract_strided_slice %25 {offsets = [1, 0], sizes = [15, 64], strides = [1, 1]} : vector<16x64xf32> to vector<15x64xf32>
    %70 = tpu.concatenate %69, %68 in 0 : vector<15x64xf32>, vector<1x64xf32> -> vector<16x64xf32>
    %c5 = arith.constant 5 : index
    %c0_45 = arith.constant 0 : index
    %c0_46 = arith.constant 0 : index
    %71 = vector.load %arg11[%c5, %c0_45, %c0_46] : memref<9x64x64xbf16, #tpu.memory_space<vmem>>, vector<1x64x64xbf16>
    %72 = vector.shape_cast %71 : vector<1x64x64xbf16> to vector<64x64xbf16>
    %73 = arith.truncf %70 : vector<16x64xf32> to vector<16x64xbf16>
    %cst_47 = arith.constant dense<0.000000e+00> : vector<16x64xf32>
    %74 = tpu.matmul %73, %72, %cst_47 {dimension_numbers = #tpu.dot_dimension_numbers<[1], [0], [0], [1], [0, 0, 1, 1], [], []>} : vector<16x64xbf16>, vector<64x64xbf16>, vector<16x64xf32> -> vector<16x64xf32>
    %75 = arith.addf %67, %74 : vector<16x64xf32>
    %cst_48 = arith.constant 0.000000e+00 : f32
    %76 = vector.broadcast %cst_48 : f32 to vector<3x64xf32>
    %77 = vector.extract_strided_slice %25 {offsets = [3, 0], sizes = [13, 64], strides = [1, 1]} : vector<16x64xf32> to vector<13x64xf32>
    %78 = tpu.concatenate %77, %76 in 0 : vector<13x64xf32>, vector<3x64xf32> -> vector<16x64xf32>
    %c6 = arith.constant 6 : index
    %c0_49 = arith.constant 0 : index
    %c0_50 = arith.constant 0 : index
    %79 = vector.load %arg11[%c6, %c0_49, %c0_50] : memref<9x64x64xbf16, #tpu.memory_space<vmem>>, vector<1x64x64xbf16>
    %80 = vector.shape_cast %79 : vector<1x64x64xbf16> to vector<64x64xbf16>
    %81 = arith.truncf %78 : vector<16x64xf32> to vector<16x64xbf16>
    %cst_51 = arith.constant dense<0.000000e+00> : vector<16x64xf32>
    %82 = tpu.matmul %81, %80, %cst_51 {dimension_numbers = #tpu.dot_dimension_numbers<[1], [0], [0], [1], [0, 0, 1, 1], [], []>} : vector<16x64xbf16>, vector<64x64xbf16>, vector<16x64xf32> -> vector<16x64xf32>
    %83 = arith.addf %75, %82 : vector<16x64xf32>
    %cst_52 = arith.constant 0.000000e+00 : f32
    %84 = vector.broadcast %cst_52 : f32 to vector<9x64xf32>
    %85 = vector.extract_strided_slice %25 {offsets = [9, 0], sizes = [7, 64], strides = [1, 1]} : vector<16x64xf32> to vector<7x64xf32>
    %86 = tpu.concatenate %85, %84 in 0 : vector<7x64xf32>, vector<9x64xf32> -> vector<16x64xf32>
    %c7 = arith.constant 7 : index
    %c0_53 = arith.constant 0 : index
    %c0_54 = arith.constant 0 : index
    %87 = vector.load %arg11[%c7, %c0_53, %c0_54] : memref<9x64x64xbf16, #tpu.memory_space<vmem>>, vector<1x64x64xbf16>
    %88 = vector.shape_cast %87 : vector<1x64x64xbf16> to vector<64x64xbf16>
    %89 = arith.truncf %86 : vector<16x64xf32> to vector<16x64xbf16>
    %cst_55 = arith.constant dense<0.000000e+00> : vector<16x64xf32>
    %90 = tpu.matmul %89, %88, %cst_55 {dimension_numbers = #tpu.dot_dimension_numbers<[1], [0], [0], [1], [0, 0, 1, 1], [], []>} : vector<16x64xbf16>, vector<64x64xbf16>, vector<16x64xf32> -> vector<16x64xf32>
    %91 = arith.addf %83, %90 : vector<16x64xf32>
    %c0_56 = arith.constant 0 : index
    %c0_57 = arith.constant 0 : index
    %92 = vector.load %arg13[%c0_56, %c0_57] : memref<1x64xf32, #tpu.memory_space<vmem>>, vector<1x64xf32>
    %c0_58 = arith.constant 0 : index
    %c0_59 = arith.constant 0 : index
    %93 = vector.load %arg14[%c0_58, %c0_59] : memref<1x64xf32, #tpu.memory_space<vmem>>, vector<1x64xf32>
    %cst_60 = arith.constant dense<0.000000e+00> : vector<16xf32>
    %94 = vector.multi_reduction <add>, %91, %cst_60 [1] : vector<16x64xf32> to vector<16xf32>
    %95 = vector.shape_cast %94 : vector<16xf32> to vector<16x1xf32>
    %cst_61 = arith.constant 6.400000e+01 : f32
    %96 = vector.broadcast %cst_61 : f32 to vector<16x1xf32>
    %97 = arith.divf %95, %96 : vector<16x1xf32>
    %98 = vector.broadcast %97 : vector<16x1xf32> to vector<16x64xf32>
    %99 = arith.subf %91, %98 : vector<16x64xf32>
    %100 = arith.mulf %99, %99 : vector<16x64xf32>
    %cst_62 = arith.constant dense<0.000000e+00> : vector<16xf32>
    %101 = vector.multi_reduction <add>, %100, %cst_62 [1] : vector<16x64xf32> to vector<16xf32>
    %102 = vector.shape_cast %101 : vector<16xf32> to vector<16x1xf32>
    %cst_63 = arith.constant 6.400000e+01 : f32
    %103 = vector.broadcast %cst_63 : f32 to vector<16x1xf32>
    %104 = arith.divf %102, %103 : vector<16x1xf32>
    %105 = vector.broadcast %97 : vector<16x1xf32> to vector<16x64xf32>
    %106 = arith.subf %91, %105 : vector<16x64xf32>
    %cst_64 = arith.constant 9.99999974E-6 : f32
    %107 = vector.broadcast %cst_64 : f32 to vector<16x1xf32>
    %108 = arith.addf %104, %107 : vector<16x1xf32>
    %109 = math.rsqrt %108 : vector<16x1xf32>
    %110 = vector.broadcast %109 : vector<16x1xf32> to vector<16x64xf32>
    %111 = arith.mulf %106, %110 : vector<16x64xf32>
    %112 = vector.broadcast %92 : vector<1x64xf32> to vector<16x64xf32>
    %113 = arith.mulf %111, %112 : vector<16x64xf32>
    %114 = vector.broadcast %93 : vector<1x64xf32> to vector<16x64xf32>
    %115 = arith.addf %113, %114 : vector<16x64xf32>
    %c0_65 = arith.constant 0 : index
    %c0_66 = arith.constant 0 : index
    %116 = vector.load %arg15[%c0_65, %c0_66] : memref<64x64xbf16, #tpu.memory_space<vmem>>, vector<64x64xbf16>
    %117 = arith.truncf %35 : vector<16x64xf32> to vector<16x64xbf16>
    %cst_67 = arith.constant dense<0.000000e+00> : vector<16x64xf32>
    %118 = tpu.matmul %117, %116, %cst_67 {dimension_numbers = #tpu.dot_dimension_numbers<[1], [0], [0], [1], [0, 0, 1, 1], [], []>} : vector<16x64xbf16>, vector<64x64xbf16>, vector<16x64xf32> -> vector<16x64xf32>
    %c0_68 = arith.constant 0 : index
    %c0_69 = arith.constant 0 : index
    %119 = vector.load %arg16[%c0_68, %c0_69] : memref<64x64xbf16, #tpu.memory_space<vmem>>, vector<64x64xbf16>
    %120 = arith.truncf %115 : vector<16x64xf32> to vector<16x64xbf16>
    %cst_70 = arith.constant dense<0.000000e+00> : vector<16x64xf32>
    %121 = tpu.matmul %120, %119, %cst_70 {dimension_numbers = #tpu.dot_dimension_numbers<[1], [0], [0], [1], [0, 0, 1, 1], [], []>} : vector<16x64xbf16>, vector<64x64xbf16>, vector<16x64xf32> -> vector<16x64xf32>
    %122 = arith.addf %118, %121 : vector<16x64xf32>
    %c0_71 = arith.constant 0 : index
    %c0_72 = arith.constant 0 : index
    %123 = vector.load %arg17[%c0_71, %c0_72] : memref<1x64xf32, #tpu.memory_space<vmem>>, vector<1x64xf32>
    %124 = vector.broadcast %123 : vector<1x64xf32> to vector<16x64xf32>
    %125 = arith.addf %122, %124 : vector<16x64xf32>
    %cst_73 = arith.constant 0.000000e+00 : f32
    %126 = vector.broadcast %cst_73 : f32 to vector<16x64xf32>
    %127 = arith.subf %126, %125 : vector<16x64xf32>
    %128 = math.exp %127 : vector<16x64xf32>
    %cst_74 = arith.constant 1.000000e+00 : f32
    %129 = vector.broadcast %cst_74 : f32 to vector<16x64xf32>
    %130 = arith.addf %129, %128 : vector<16x64xf32>
    %cst_75 = arith.constant 1.000000e+00 : f32
    %131 = vector.broadcast %cst_75 : f32 to vector<16x64xf32>
    %132 = arith.divf %131, %130 : vector<16x64xf32>
    %133 = arith.mulf %125, %132 : vector<16x64xf32>
    %c0_76 = arith.constant 0 : index
    %c0_77 = arith.constant 0 : index
    %134 = vector.load %arg18[%c0_76, %c0_77] : memref<64x64xbf16, #tpu.memory_space<vmem>>, vector<64x64xbf16>
    %135 = arith.truncf %133 : vector<16x64xf32> to vector<16x64xbf16>
    %cst_78 = arith.constant dense<0.000000e+00> : vector<16x64xf32>
    %136 = tpu.matmul %135, %134, %cst_78 {dimension_numbers = #tpu.dot_dimension_numbers<[1], [0], [0], [1], [0, 0, 1, 1], [], []>} : vector<16x64xbf16>, vector<64x64xbf16>, vector<16x64xf32> -> vector<16x64xf32>
    %c0_79 = arith.constant 0 : index
    %c0_80 = arith.constant 0 : index
    %137 = vector.load %arg19[%c0_79, %c0_80] : memref<1x64xf32, #tpu.memory_space<vmem>>, vector<1x64xf32>
    %138 = vector.broadcast %137 : vector<1x64xf32> to vector<16x64xf32>
    %139 = arith.addf %136, %138 : vector<16x64xf32>
    %c0_81 = arith.constant 0 : index
    %c0_82 = arith.constant 0 : index
    %c0_83 = arith.constant 0 : index
    %140 = vector.load %arg20[%c0_81, %c0_82, %c0_83] : memref<2x64x64xbf16, #tpu.memory_space<vmem>>, vector<1x64x64xbf16>
    %141 = vector.shape_cast %140 : vector<1x64x64xbf16> to vector<64x64xbf16>
    %142 = arith.truncf %139 : vector<16x64xf32> to vector<16x64xbf16>
    %cst_84 = arith.constant dense<0.000000e+00> : vector<16x64xf32>
    %143 = tpu.matmul %142, %141, %cst_84 {dimension_numbers = #tpu.dot_dimension_numbers<[1], [0], [0], [1], [0, 0, 1, 1], [], []>} : vector<16x64xbf16>, vector<64x64xbf16>, vector<16x64xf32> -> vector<16x64xf32>
    %c0_85 = arith.constant 0 : index
    %c0_86 = arith.constant 0 : index
    %c0_87 = arith.constant 0 : index
    %144 = vector.load %arg21[%c0_85, %c0_86, %c0_87] : memref<2x1x64xf32, #tpu.memory_space<vmem>>, vector<1x1x64xf32>
    %145 = vector.shape_cast %144 : vector<1x1x64xf32> to vector<1x64xf32>
    %146 = vector.broadcast %145 : vector<1x64xf32> to vector<16x64xf32>
    %147 = arith.addf %143, %146 : vector<16x64xf32>
    %cst_88 = arith.constant 0.000000e+00 : f32
    %148 = vector.broadcast %cst_88 : f32 to vector<16x64xf32>
    %149 = arith.subf %148, %147 : vector<16x64xf32>
    %150 = math.exp %149 : vector<16x64xf32>
    %cst_89 = arith.constant 1.000000e+00 : f32
    %151 = vector.broadcast %cst_89 : f32 to vector<16x64xf32>
    %152 = arith.addf %151, %150 : vector<16x64xf32>
    %cst_90 = arith.constant 1.000000e+00 : f32
    %153 = vector.broadcast %cst_90 : f32 to vector<16x64xf32>
    %154 = arith.divf %153, %152 : vector<16x64xf32>
    %155 = arith.mulf %147, %154 : vector<16x64xf32>
    %c0_91 = arith.constant 0 : index
    %c0_92 = arith.constant 0 : index
    %c0_93 = arith.constant 0 : index
    %156 = vector.load %arg22[%c0_91, %c0_92, %c0_93] : memref<2x64x64xbf16, #tpu.memory_space<vmem>>, vector<1x64x64xbf16>
    %157 = vector.shape_cast %156 : vector<1x64x64xbf16> to vector<64x64xbf16>
    %158 = arith.truncf %155 : vector<16x64xf32> to vector<16x64xbf16>
    %cst_94 = arith.constant dense<0.000000e+00> : vector<16x64xf32>
    %159 = tpu.matmul %158, %157, %cst_94 {dimension_numbers = #tpu.dot_dimension_numbers<[1], [0], [0], [1], [0, 0, 1, 1], [], []>} : vector<16x64xbf16>, vector<64x64xbf16>, vector<16x64xf32> -> vector<16x64xf32>
    %c0_95 = arith.constant 0 : index
    %c0_96 = arith.constant 0 : index
    %c0_97 = arith.constant 0 : index
    %160 = vector.load %arg23[%c0_95, %c0_96, %c0_97] : memref<2x1x64xf32, #tpu.memory_space<vmem>>, vector<1x1x64xf32>
    %161 = vector.shape_cast %160 : vector<1x1x64xf32> to vector<1x64xf32>
    %162 = vector.broadcast %161 : vector<1x64xf32> to vector<16x64xf32>
    %163 = arith.addf %159, %162 : vector<16x64xf32>
    %c0_98 = arith.constant 0 : index
    %c0_99 = arith.constant 0 : index
    %c0_100 = arith.constant 0 : index
    %c0_101 = arith.constant 0 : index
    %164 = vector.load %arg33[%c0_98, %c0_99, %c0_100, %c0_101] : memref<1x2x16x64xf32, #tpu.memory_space<vmem>>, vector<1x1x16x64xf32>
    %165 = vector.shape_cast %164 : vector<1x1x16x64xf32> to vector<16x64xf32>
    %166 = vector.shape_cast %163 : vector<16x64xf32> to vector<1x1x16x64xf32>
    tpu.vector_store %arg33[%c0_98, %c0_99, %c0_100, %c0_101], %166 {strides = array<i32>} : memref<1x2x16x64xf32, #tpu.memory_space<vmem>>, vector<1x1x16x64xf32>,
    %c1_102 = arith.constant 1 : index
    %c0_103 = arith.constant 0 : index
    %c0_104 = arith.constant 0 : index
    %167 = vector.load %arg20[%c1_102, %c0_103, %c0_104] : memref<2x64x64xbf16, #tpu.memory_space<vmem>>, vector<1x64x64xbf16>
    %168 = vector.shape_cast %167 : vector<1x64x64xbf16> to vector<64x64xbf16>
    %169 = arith.truncf %139 : vector<16x64xf32> to vector<16x64xbf16>
    %cst_105 = arith.constant dense<0.000000e+00> : vector<16x64xf32>
    %170 = tpu.matmul %169, %168, %cst_105 {dimension_numbers = #tpu.dot_dimension_numbers<[1], [0], [0], [1], [0, 0, 1, 1], [], []>} : vector<16x64xbf16>, vector<64x64xbf16>, vector<16x64xf32> -> vector<16x64xf32>
    %c1_106 = arith.constant 1 : index
    %c0_107 = arith.constant 0 : index
    %c0_108 = arith.constant 0 : index
    %171 = vector.load %arg21[%c1_106, %c0_107, %c0_108] : memref<2x1x64xf32, #tpu.memory_space<vmem>>, vector<1x1x64xf32>
    %172 = vector.shape_cast %171 : vector<1x1x64xf32> to vector<1x64xf32>
    %173 = vector.broadcast %172 : vector<1x64xf32> to vector<16x64xf32>
    %174 = arith.addf %170, %173 : vector<16x64xf32>
    %cst_109 = arith.constant 0.000000e+00 : f32
    %175 = vector.broadcast %cst_109 : f32 to vector<16x64xf32>
    %176 = arith.subf %175, %174 : vector<16x64xf32>
    %177 = math.exp %176 : vector<16x64xf32>
    %cst_110 = arith.constant 1.000000e+00 : f32
    %178 = vector.broadcast %cst_110 : f32 to vector<16x64xf32>
    %179 = arith.addf %178, %177 : vector<16x64xf32>
    %cst_111 = arith.constant 1.000000e+00 : f32
    %180 = vector.broadcast %cst_111 : f32 to vector<16x64xf32>
    %181 = arith.divf %180, %179 : vector<16x64xf32>
    %182 = arith.mulf %174, %181 : vector<16x64xf32>
    %c1_112 = arith.constant 1 : index
    %c0_113 = arith.constant 0 : index
    %c0_114 = arith.constant 0 : index
    %183 = vector.load %arg22[%c1_112, %c0_113, %c0_114] : memref<2x64x64xbf16, #tpu.memory_space<vmem>>, vector<1x64x64xbf16>
    %184 = vector.shape_cast %183 : vector<1x64x64xbf16> to vector<64x64xbf16>
    %185 = arith.truncf %182 : vector<16x64xf32> to vector<16x64xbf16>
    %cst_115 = arith.constant dense<0.000000e+00> : vector<16x64xf32>
    %186 = tpu.matmul %185, %184, %cst_115 {dimension_numbers = #tpu.dot_dimension_numbers<[1], [0], [0], [1], [0, 0, 1, 1], [], []>} : vector<16x64xbf16>, vector<64x64xbf16>, vector<16x64xf32> -> vector<16x64xf32>
    %c1_116 = arith.constant 1 : index
    %c0_117 = arith.constant 0 : index
    %c0_118 = arith.constant 0 : index
    %187 = vector.load %arg23[%c1_116, %c0_117, %c0_118] : memref<2x1x64xf32, #tpu.memory_space<vmem>>, vector<1x1x64xf32>
    %188 = vector.shape_cast %187 : vector<1x1x64xf32> to vector<1x64xf32>
    %189 = vector.broadcast %188 : vector<1x64xf32> to vector<16x64xf32>
    %190 = arith.addf %186, %189 : vector<16x64xf32>
    %c0_119 = arith.constant 0 : index
    %c1_120 = arith.constant 1 : index
    %c0_121 = arith.constant 0 : index
    %c0_122 = arith.constant 0 : index
    %191 = vector.load %arg33[%c0_119, %c1_120, %c0_121, %c0_122] : memref<1x2x16x64xf32, #tpu.memory_space<vmem>>, vector<1x1x16x64xf32>
    %192 = vector.shape_cast %191 : vector<1x1x16x64xf32> to vector<16x64xf32>
    %193 = vector.shape_cast %190 : vector<16x64xf32> to vector<1x1x16x64xf32>
    tpu.vector_store %arg33[%c0_119, %c1_120, %c0_121, %c0_122], %193 {strides = array<i32>} : memref<1x2x16x64xf32, #tpu.memory_space<vmem>>, vector<1x1x16x64xf32>,
    %c0_123 = arith.constant 0 : index
    %c0_124 = arith.constant 0 : index
    %194 = vector.load %arg24[%c0_123, %c0_124] : memref<64x32xbf16, #tpu.memory_space<vmem>>, vector<64x32xbf16>
    %195 = arith.truncf %139 : vector<16x64xf32> to vector<16x64xbf16>
    %cst_125 = arith.constant dense<0.000000e+00> : vector<16x32xf32>
    %196 = tpu.matmul %195, %194, %cst_125 {dimension_numbers = #tpu.dot_dimension_numbers<[1], [0], [0], [1], [0, 0, 1, 1], [], []>} : vector<16x64xbf16>, vector<64x32xbf16>, vector<16x32xf32> -> vector<16x32xf32>
    %c0_126 = arith.constant 0 : index
    %c0_127 = arith.constant 0 : index
    %197 = vector.load %arg25[%c0_126, %c0_127] : memref<1x32xf32, #tpu.memory_space<vmem>>, vector<1x32xf32>
    %198 = vector.broadcast %197 : vector<1x32xf32> to vector<16x32xf32>
    %199 = arith.addf %196, %198 : vector<16x32xf32>
    %cst_128 = arith.constant 0.000000e+00 : f32
    %200 = vector.broadcast %cst_128 : f32 to vector<16x32xf32>
    %201 = arith.subf %200, %199 : vector<16x32xf32>
    %202 = math.exp %201 : vector<16x32xf32>
    %cst_129 = arith.constant 1.000000e+00 : f32
    %203 = vector.broadcast %cst_129 : f32 to vector<16x32xf32>
    %204 = arith.addf %203, %202 : vector<16x32xf32>
    %cst_130 = arith.constant 1.000000e+00 : f32
    %205 = vector.broadcast %cst_130 : f32 to vector<16x32xf32>
    %206 = arith.divf %205, %204 : vector<16x32xf32>
    %207 = arith.mulf %199, %206 : vector<16x32xf32>
    %c0_131 = arith.constant 0 : index
    %c0_132 = arith.constant 0 : index
    %208 = vector.load %arg26[%c0_131, %c0_132] : memref<32x128xbf16, #tpu.memory_space<vmem>>, vector<32x128xbf16>
    %209 = arith.truncf %207 : vector<16x32xf32> to vector<16x32xbf16>
    %cst_133 = arith.constant dense<0.000000e+00> : vector<16x128xf32>
    %210 = tpu.matmul %209, %208, %cst_133 {dimension_numbers = #tpu.dot_dimension_numbers<[1], [0], [0], [1], [0, 0, 1, 1], [], []>} : vector<16x32xbf16>, vector<32x128xbf16>, vector<16x128xf32> -> vector<16x128xf32>
    %c0_134 = arith.constant 0 : index
    %c0_135 = arith.constant 0 : index
    %211 = vector.load %arg27[%c0_134, %c0_135] : memref<1x128xf32, #tpu.memory_space<vmem>>, vector<1x128xf32>
    %212 = vector.broadcast %211 : vector<1x128xf32> to vector<16x128xf32>
    %213 = arith.addf %210, %212 : vector<16x128xf32>
    %cst_136 = arith.constant 0.000000e+00 : f32
    %214 = vector.broadcast %cst_136 : f32 to vector<16x128xf32>
    %215 = arith.subf %214, %213 : vector<16x128xf32>
    %216 = math.exp %215 : vector<16x128xf32>
    %cst_137 = arith.constant 1.000000e+00 : f32
    %217 = vector.broadcast %cst_137 : f32 to vector<16x128xf32>
    %218 = arith.addf %217, %216 : vector<16x128xf32>
    %cst_138 = arith.constant 1.000000e+00 : f32
    %219 = vector.broadcast %cst_138 : f32 to vector<16x128xf32>
    %220 = arith.divf %219, %218 : vector<16x128xf32>
    %c0_139 = arith.constant 0 : index
    %c0_140 = arith.constant 0 : index
    %221 = vector.load %arg34[%c0_139, %c0_140] : memref<16x128xf32, #tpu.memory_space<vmem>>, vector<16x128xf32>
    tpu.vector_store %arg34[%c0_139, %c0_140], %220 {strides = array<i32>} : memref<16x128xf32, #tpu.memory_space<vmem>>, vector<16x128xf32>,
    %cst_141 = arith.constant dense<0.000000e+00> : vector<64xf32>
    %222 = vector.multi_reduction <add>, %139, %cst_141 [0] : vector<16x64xf32> to vector<64xf32>
    %223 = vector.shape_cast %222 : vector<64xf32> to vector<1x64xf32>
    %cst_142 = arith.constant 1.600000e+01 : f32
    %224 = vector.broadcast %cst_142 : f32 to vector<1x64xf32>
    %225 = arith.divf %223, %224 : vector<1x64xf32>
    %c0_143 = arith.constant 0 : index
    %c0_144 = arith.constant 0 : index
    %226 = vector.load %arg28[%c0_143, %c0_144] : memref<64x32xbf16, #tpu.memory_space<vmem>>, vector<64x32xbf16>
    %227 = arith.truncf %225 : vector<1x64xf32> to vector<1x64xbf16>
    %cst_145 = arith.constant dense<0.000000e+00> : vector<1x32xf32>
    %228 = tpu.matmul %227, %226, %cst_145 {dimension_numbers = #tpu.dot_dimension_numbers<[1], [0], [0], [1], [0, 0, 1, 1], [], []>} : vector<1x64xbf16>, vector<64x32xbf16>, vector<1x32xf32> -> vector<1x32xf32>
    %c0_146 = arith.constant 0 : index
    %c0_147 = arith.constant 0 : index
    %229 = vector.load %arg29[%c0_146, %c0_147] : memref<32x32xbf16, #tpu.memory_space<vmem>>, vector<32x32xbf16>
    %230 = arith.truncf %2 : vector<1x32xf32> to vector<1x32xbf16>
    %cst_148 = arith.constant dense<0.000000e+00> : vector<1x32xf32>
    %231 = tpu.matmul %230, %229, %cst_148 {dimension_numbers = #tpu.dot_dimension_numbers<[1], [0], [0], [1], [0, 0, 1, 1], [], []>} : vector<1x32xbf16>, vector<32x32xbf16>, vector<1x32xf32> -> vector<1x32xf32>
    %232 = arith.addf %228, %231 : vector<1x32xf32>
    %c0_149 = arith.constant 0 : index
    %c0_150 = arith.constant 0 : index
    %233 = vector.load %arg30[%c0_149, %c0_150] : memref<1x32xf32, #tpu.memory_space<vmem>>, vector<1x32xf32>
    %234 = arith.addf %232, %233 : vector<1x32xf32>
    %cst_151 = arith.constant 0.000000e+00 : f32
    %235 = vector.broadcast %cst_151 : f32 to vector<1x32xf32>
    %236 = arith.subf %235, %234 : vector<1x32xf32>
    %237 = math.exp %236 : vector<1x32xf32>
    %cst_152 = arith.constant 1.000000e+00 : f32
    %238 = vector.broadcast %cst_152 : f32 to vector<1x32xf32>
    %239 = arith.addf %238, %237 : vector<1x32xf32>
    %cst_153 = arith.constant 1.000000e+00 : f32
    %240 = vector.broadcast %cst_153 : f32 to vector<1x32xf32>
    %241 = arith.divf %240, %239 : vector<1x32xf32>
    %242 = arith.mulf %234, %241 : vector<1x32xf32>
    %c0_154 = arith.constant 0 : index
    %c0_155 = arith.constant 0 : index
    %243 = vector.load %arg31[%c0_154, %c0_155] : memref<32x128xbf16, #tpu.memory_space<vmem>>, vector<32x128xbf16>
    %244 = arith.truncf %242 : vector<1x32xf32> to vector<1x32xbf16>
    %cst_156 = arith.constant dense<0.000000e+00> : vector<1x128xf32>
    %245 = tpu.matmul %244, %243, %cst_156 {dimension_numbers = #tpu.dot_dimension_numbers<[1], [0], [0], [1], [0, 0, 1, 1], [], []>} : vector<1x32xbf16>, vector<32x128xbf16>, vector<1x128xf32> -> vector<1x128xf32>
    %c0_157 = arith.constant 0 : index
    %c0_158 = arith.constant 0 : index
    %246 = vector.load %arg32[%c0_157, %c0_158] : memref<1x128xf32, #tpu.memory_space<vmem>>, vector<1x128xf32>
    %247 = arith.addf %245, %246 : vector<1x128xf32>
    %cst_159 = arith.constant 0.000000e+00 : f32
    %248 = vector.broadcast %cst_159 : f32 to vector<1x128xf32>
    %249 = arith.subf %248, %247 : vector<1x128xf32>
    %250 = math.exp %249 : vector<1x128xf32>
    %cst_160 = arith.constant 1.000000e+00 : f32
    %251 = vector.broadcast %cst_160 : f32 to vector<1x128xf32>
    %252 = arith.addf %251, %250 : vector<1x128xf32>
    %cst_161 = arith.constant 1.000000e+00 : f32
    %253 = vector.broadcast %cst_161 : f32 to vector<1x128xf32>
    %254 = arith.divf %253, %252 : vector<1x128xf32>
    %c0_162 = arith.constant 0 : index
    %c0_163 = arith.constant 0 : index
    %c0_164 = arith.constant 0 : index
    %255 = vector.load %arg35[%c0_162, %c0_163, %c0_164] : memref<1x1x128xf32, #tpu.memory_space<vmem>>, vector<1x1x128xf32>
    %256 = vector.shape_cast %255 : vector<1x1x128xf32> to vector<1x128xf32>
    %257 = vector.shape_cast %254 : vector<1x128xf32> to vector<1x1x128xf32>
    tpu.vector_store %arg35[%c0_162, %c0_163, %c0_164], %257 {strides = array<i32>} : memref<1x1x128xf32, #tpu.memory_space<vmem>>, vector<1x1x128xf32>,
    return
  }
  func.func @transform_0(%arg0: i32) -> (i32, i32) {
    %c0_i32 = arith.constant 0 : i32
    %c0_i32_0 = arith.constant 0 : i32
    return %arg0, %c0_i32 : i32, i32
  }
  func.func @transform_1(%arg0: i32) -> (i32, i32, i32) {
    %c0_i32 = arith.constant 0 : i32
    %c0_i32_0 = arith.constant 0 : i32
    %c0_i32_1 = arith.constant 0 : i32
    return %arg0, %c0_i32, %c0_i32_0 : i32, i32, i32
  }
  func.func @transform_2(%arg0: i32) -> (i32, i32, i32) {
    %c0_i32 = arith.constant 0 : i32
    %c0_i32_0 = arith.constant 0 : i32
    %c0_i32_1 = arith.constant 0 : i32
    return %arg0, %c0_i32, %c0_i32_0 : i32, i32, i32
  }
  func.func @transform_3(%arg0: i32) -> (i32, i32) {
    %c0_i32 = arith.constant 0 : i32
    %c0_i32_0 = arith.constant 0 : i32
    %c0_i32_1 = arith.constant 0 : i32
    return %c0_i32, %c0_i32_0 : i32, i32
  }
  func.func @transform_4(%arg0: i32) -> (i32, i32) {
    %c0_i32 = arith.constant 0 : i32
    %c0_i32_0 = arith.constant 0 : i32
    %c0_i32_1 = arith.constant 0 : i32
    return %c0_i32, %c0_i32_0 : i32, i32
  }
  func.func @transform_5(%arg0: i32) -> (i32, i32) {
    %c0_i32 = arith.constant 0 : i32
    %c0_i32_0 = arith.constant 0 : i32
    %c0_i32_1 = arith.constant 0 : i32
    return %c0_i32, %c0_i32_0 : i32, i32
  }
  func.func @transform_6(%arg0: i32) -> (i32, i32) {
    %c0_i32 = arith.constant 0 : i32
    %c0_i32_0 = arith.constant 0 : i32
    %c0_i32_1 = arith.constant 0 : i32
    return %c0_i32, %c0_i32_0 : i32, i32
  }
  func.func @transform_7(%arg0: i32) -> (i32, i32) {
    %c0_i32 = arith.constant 0 : i32
    %c0_i32_0 = arith.constant 0 : i32
    %c0_i32_1 = arith.constant 0 : i32
    return %c0_i32, %c0_i32_0 : i32, i32
  }
  func.func @transform_8(%arg0: i32) -> (i32, i32) {
    %c0_i32 = arith.constant 0 : i32
    %c0_i32_0 = arith.constant 0 : i32
    %c0_i32_1 = arith.constant 0 : i32
    return %c0_i32, %c0_i32_0 : i32, i32
  }
  func.func @transform_9(%arg0: i32) -> (i32, i32) {
    %c0_i32 = arith.constant 0 : i32
    %c0_i32_0 = arith.constant 0 : i32
    %c0_i32_1 = arith.constant 0 : i32
    return %c0_i32, %c0_i32_0 : i32, i32
  }
  func.func @transform_10(%arg0: i32) -> (i32, i32, i32) {
    %c0_i32 = arith.constant 0 : i32
    %c0_i32_0 = arith.constant 0 : i32
    %c0_i32_1 = arith.constant 0 : i32
    %c0_i32_2 = arith.constant 0 : i32
    return %c0_i32, %c0_i32_0, %c0_i32_1 : i32, i32, i32
  }
  func.func @transform_11(%arg0: i32) -> (i32, i32) {
    %c0_i32 = arith.constant 0 : i32
    %c0_i32_0 = arith.constant 0 : i32
    %c0_i32_1 = arith.constant 0 : i32
    return %c0_i32, %c0_i32_0 : i32, i32
  }
  func.func @transform_12(%arg0: i32) -> (i32, i32) {
    %c0_i32 = arith.constant 0 : i32
    %c0_i32_0 = arith.constant 0 : i32
    %c0_i32_1 = arith.constant 0 : i32
    return %c0_i32, %c0_i32_0 : i32, i32
  }
  func.func @transform_13(%arg0: i32) -> (i32, i32) {
    %c0_i32 = arith.constant 0 : i32
    %c0_i32_0 = arith.constant 0 : i32
    %c0_i32_1 = arith.constant 0 : i32
    return %c0_i32, %c0_i32_0 : i32, i32
  }
  func.func @transform_14(%arg0: i32) -> (i32, i32) {
    %c0_i32 = arith.constant 0 : i32
    %c0_i32_0 = arith.constant 0 : i32
    %c0_i32_1 = arith.constant 0 : i32
    return %c0_i32, %c0_i32_0 : i32, i32
  }
  func.func @transform_15(%arg0: i32) -> (i32, i32) {
    %c0_i32 = arith.constant 0 : i32
    %c0_i32_0 = arith.constant 0 : i32
    %c0_i32_1 = arith.constant 0 : i32
    return %c0_i32, %c0_i32_0 : i32, i32
  }
  func.func @transform_16(%arg0: i32) -> (i32, i32) {
    %c0_i32 = arith.constant 0 : i32
    %c0_i32_0 = arith.constant 0 : i32
    %c0_i32_1 = arith.constant 0 : i32
    return %c0_i32, %c0_i32_0 : i32, i32
  }
  func.func @transform_17(%arg0: i32) -> (i32, i32) {
    %c0_i32 = arith.constant 0 : i32
    %c0_i32_0 = arith.constant 0 : i32
    %c0_i32_1 = arith.constant 0 : i32
    return %c0_i32, %c0_i32_0 : i32, i32
  }
  func.func @transform_18(%arg0: i32) -> (i32, i32) {
    %c0_i32 = arith.constant 0 : i32
    %c0_i32_0 = arith.constant 0 : i32
    %c0_i32_1 = arith.constant 0 : i32
    return %c0_i32, %c0_i32_0 : i32, i32
  }
  func.func @transform_19(%arg0: i32) -> (i32, i32, i32) {
    %c0_i32 = arith.constant 0 : i32
    %c0_i32_0 = arith.constant 0 : i32
    %c0_i32_1 = arith.constant 0 : i32
    %c0_i32_2 = arith.constant 0 : i32
    return %c0_i32, %c0_i32_0, %c0_i32_1 : i32, i32, i32
  }
  func.func @transform_20(%arg0: i32) -> (i32, i32, i32) {
    %c0_i32 = arith.constant 0 : i32
    %c0_i32_0 = arith.constant 0 : i32
    %c0_i32_1 = arith.constant 0 : i32
    %c0_i32_2 = arith.constant 0 : i32
    return %c0_i32, %c0_i32_0, %c0_i32_1 : i32, i32, i32
  }
  func.func @transform_21(%arg0: i32) -> (i32, i32, i32) {
    %c0_i32 = arith.constant 0 : i32
    %c0_i32_0 = arith.constant 0 : i32
    %c0_i32_1 = arith.constant 0 : i32
    %c0_i32_2 = arith.constant 0 : i32
    return %c0_i32, %c0_i32_0, %c0_i32_1 : i32, i32, i32
  }
  func.func @transform_22(%arg0: i32) -> (i32, i32, i32) {
    %c0_i32 = arith.constant 0 : i32
    %c0_i32_0 = arith.constant 0 : i32
    %c0_i32_1 = arith.constant 0 : i32
    %c0_i32_2 = arith.constant 0 : i32
    return %c0_i32, %c0_i32_0, %c0_i32_1 : i32, i32, i32
  }
  func.func @transform_23(%arg0: i32) -> (i32, i32) {
    %c0_i32 = arith.constant 0 : i32
    %c0_i32_0 = arith.constant 0 : i32
    %c0_i32_1 = arith.constant 0 : i32
    return %c0_i32, %c0_i32_0 : i32, i32
  }
  func.func @transform_24(%arg0: i32) -> (i32, i32) {
    %c0_i32 = arith.constant 0 : i32
    %c0_i32_0 = arith.constant 0 : i32
    %c0_i32_1 = arith.constant 0 : i32
    return %c0_i32, %c0_i32_0 : i32, i32
  }
  func.func @transform_25(%arg0: i32) -> (i32, i32) {
    %c0_i32 = arith.constant 0 : i32
    %c0_i32_0 = arith.constant 0 : i32
    %c0_i32_1 = arith.constant 0 : i32
    return %c0_i32, %c0_i32_0 : i32, i32
  }
  func.func @transform_26(%arg0: i32) -> (i32, i32) {
    %c0_i32 = arith.constant 0 : i32
    %c0_i32_0 = arith.constant 0 : i32
    %c0_i32_1 = arith.constant 0 : i32
    return %c0_i32, %c0_i32_0 : i32, i32
  }
  func.func @transform_27(%arg0: i32) -> (i32, i32) {
    %c0_i32 = arith.constant 0 : i32
    %c0_i32_0 = arith.constant 0 : i32
    %c0_i32_1 = arith.constant 0 : i32
    return %c0_i32, %c0_i32_0 : i32, i32
  }
  func.func @transform_28(%arg0: i32) -> (i32, i32) {
    %c0_i32 = arith.constant 0 : i32
    %c0_i32_0 = arith.constant 0 : i32
    %c0_i32_1 = arith.constant 0 : i32
    return %c0_i32, %c0_i32_0 : i32, i32
  }
  func.func @transform_29(%arg0: i32) -> (i32, i32) {
    %c0_i32 = arith.constant 0 : i32
    %c0_i32_0 = arith.constant 0 : i32
    %c0_i32_1 = arith.constant 0 : i32
    return %c0_i32, %c0_i32_0 : i32, i32
  }
  func.func @transform_30(%arg0: i32) -> (i32, i32) {
    %c0_i32 = arith.constant 0 : i32
    %c0_i32_0 = arith.constant 0 : i32
    %c0_i32_1 = arith.constant 0 : i32
    return %c0_i32, %c0_i32_0 : i32, i32
  }
  func.func @transform_31(%arg0: i32) -> (i32, i32) {
    %c0_i32 = arith.constant 0 : i32
    %c0_i32_0 = arith.constant 0 : i32
    %c0_i32_1 = arith.constant 0 : i32
    return %c0_i32, %c0_i32_0 : i32, i32
  }
  func.func @transform_32(%arg0: i32) -> (i32, i32, i32, i32) {
    %c0_i32 = arith.constant 0 : i32
    %c0_i32_0 = arith.constant 0 : i32
    %c0_i32_1 = arith.constant 0 : i32
    %c0_i32_2 = arith.constant 0 : i32
    return %arg0, %c0_i32, %c0_i32_0, %c0_i32_1 : i32, i32, i32, i32
  }
  func.func @transform_33(%arg0: i32) -> (i32, i32) {
    %c0_i32 = arith.constant 0 : i32
    %c0_i32_0 = arith.constant 0 : i32
    return %arg0, %c0_i32 : i32, i32
  }
  func.func @transform_34(%arg0: i32) -> (i32, i32, i32) {
    %c0_i32 = arith.constant 0 : i32
    %c0_i32_0 = arith.constant 0 : i32
    %c0_i32_1 = arith.constant 0 : i32
    return %arg0, %c0_i32, %c0_i32_0 : i32, i32, i32
  }
}

module attributes {stable_mosaic.version = 11 : i64} {
  func.func @_text_encoder_kernel(%arg0: i32, %arg1: memref<8x32xf32, #tpu.memory_space<vmem>>, %arg2: memref<1x1x16xf32, #tpu.memory_space<vmem>>, %arg3: memref<16x32xbf16, #tpu.memory_space<vmem>>, %arg4: memref<1x32xf32, #tpu.memory_space<vmem>>, %arg5: memref<16x32xbf16, #tpu.memory_space<vmem>>, %arg6: memref<1x32xf32, #tpu.memory_space<vmem>>, %arg7: memref<8x8xbf16, #tpu.memory_space<vmem>>, %arg8: memref<9x32x32xbf16, #tpu.memory_space<vmem>>, %arg9: memref<1x32xf32, #tpu.memory_space<vmem>>, %arg10: memref<1x32xf32, #tpu.memory_space<vmem>>, %arg11: memref<1x32xf32, #tpu.memory_space<vmem>>, %arg12: memref<32x64xbf16, #tpu.memory_space<vmem>>, %arg13: memref<32x64xbf16, #tpu.memory_space<vmem>>, %arg14: memref<1x64xf32, #tpu.memory_space<vmem>>, %arg15: memref<64x32xbf16, #tpu.memory_space<vmem>>, %arg16: memref<1x32xf32, #tpu.memory_space<vmem>>, %arg17: memref<16x32xbf16, #tpu.memory_space<vmem>>, %arg18: memref<1x32xf32, #tpu.memory_space<vmem>>, %arg19: memref<16x32xbf16, #tpu.memory_space<vmem>>, %arg20: memref<1x32xf32, #tpu.memory_space<vmem>>, %arg21: memref<32x16xbf16, #tpu.memory_space<vmem>>, %arg22: memref<1x16xf32, #tpu.memory_space<vmem>>, %arg23: memref<16x128xbf16, #tpu.memory_space<vmem>>, %arg24: memref<32x128xbf16, #tpu.memory_space<vmem>>, %arg25: memref<1x128xf32, #tpu.memory_space<vmem>>, %arg26: memref<128x32xbf16, #tpu.memory_space<vmem>>, %arg27: memref<8x128xf32, #tpu.memory_space<vmem>>, %arg28: memref<1x1x32xf32, #tpu.memory_space<vmem>>) attributes {dimension_semantics = [#tpu.dimension_semantics<parallel>], iteration_bounds = array<i64: 2>, scalar_prefetch = 0 : i64, scratch_operands = 0 : i64, tpu.core_type = #tpu.core_type<tc>, window_params = [{transform_indices = @transform_0, window_bounds = array<i64: 8, 32>}, {transform_indices = @transform_1, window_bounds = array<i64: 1, 1, 16>}, {pipeline_mode = #tpu.pipeline_mode<synchronous>, transform_indices = @transform_2, window_bounds = array<i64: 16, 32>}, {pipeline_mode = #tpu.pipeline_mode<synchronous>, transform_indices = @transform_3, window_bounds = array<i64: 1, 32>}, {pipeline_mode = #tpu.pipeline_mode<synchronous>, transform_indices = @transform_4, window_bounds = array<i64: 16, 32>}, {pipeline_mode = #tpu.pipeline_mode<synchronous>, transform_indices = @transform_5, window_bounds = array<i64: 1, 32>}, {pipeline_mode = #tpu.pipeline_mode<synchronous>, transform_indices = @transform_6, window_bounds = array<i64: 8, 8>}, {pipeline_mode = #tpu.pipeline_mode<synchronous>, transform_indices = @transform_7, window_bounds = array<i64: 9, 32, 32>}, {pipeline_mode = #tpu.pipeline_mode<synchronous>, transform_indices = @transform_8, window_bounds = array<i64: 1, 32>}, {pipeline_mode = #tpu.pipeline_mode<synchronous>, transform_indices = @transform_9, window_bounds = array<i64: 1, 32>}, {pipeline_mode = #tpu.pipeline_mode<synchronous>, transform_indices = @transform_10, window_bounds = array<i64: 1, 32>}, {pipeline_mode = #tpu.pipeline_mode<synchronous>, transform_indices = @transform_11, window_bounds = array<i64: 32, 64>}, {pipeline_mode = #tpu.pipeline_mode<synchronous>, transform_indices = @transform_12, window_bounds = array<i64: 32, 64>}, {pipeline_mode = #tpu.pipeline_mode<synchronous>, transform_indices = @transform_13, window_bounds = array<i64: 1, 64>}, {pipeline_mode = #tpu.pipeline_mode<synchronous>, transform_indices = @transform_14, window_bounds = array<i64: 64, 32>}, {pipeline_mode = #tpu.pipeline_mode<synchronous>, transform_indices = @transform_15, window_bounds = array<i64: 1, 32>}, {pipeline_mode = #tpu.pipeline_mode<synchronous>, transform_indices = @transform_16, window_bounds = array<i64: 16, 32>}, {pipeline_mode = #tpu.pipeline_mode<synchronous>, transform_indices = @transform_17, window_bounds = array<i64: 1, 32>}, {pipeline_mode = #tpu.pipeline_mode<synchronous>, transform_indices = @transform_18, window_bounds = array<i64: 16, 32>}, {pipeline_mode = #tpu.pipeline_mode<synchronous>, transform_indices = @transform_19, window_bounds = array<i64: 1, 32>}, {pipeline_mode = #tpu.pipeline_mode<synchronous>, transform_indices = @transform_20, window_bounds = array<i64: 32, 16>}, {pipeline_mode = #tpu.pipeline_mode<synchronous>, transform_indices = @transform_21, window_bounds = array<i64: 1, 16>}, {pipeline_mode = #tpu.pipeline_mode<synchronous>, transform_indices = @transform_22, window_bounds = array<i64: 16, 128>}, {pipeline_mode = #tpu.pipeline_mode<synchronous>, transform_indices = @transform_23, window_bounds = array<i64: 32, 128>}, {pipeline_mode = #tpu.pipeline_mode<synchronous>, transform_indices = @transform_24, window_bounds = array<i64: 1, 128>}, {pipeline_mode = #tpu.pipeline_mode<synchronous>, transform_indices = @transform_25, window_bounds = array<i64: 128, 32>}, {transform_indices = @transform_26, window_bounds = array<i64: 8, 128>}, {transform_indices = @transform_27, window_bounds = array<i64: 1, 1, 32>}]} {
    %c0 = arith.constant 0 : index
    %c0_0 = arith.constant 0 : index
    %0 = vector.load %arg1[%c0, %c0_0] : memref<8x32xf32, #tpu.memory_space<vmem>>, vector<8x32xf32>
    %c0_1 = arith.constant 0 : index
    %c0_2 = arith.constant 0 : index
    %c0_3 = arith.constant 0 : index
    %1 = vector.load %arg2[%c0_1, %c0_2, %c0_3] : memref<1x1x16xf32, #tpu.memory_space<vmem>>, vector<1x1x16xf32>
    %2 = vector.shape_cast %1 : vector<1x1x16xf32> to vector<1x16xf32>
    %c0_4 = arith.constant 0 : index
    %c0_5 = arith.constant 0 : index
    %3 = vector.load %arg3[%c0_4, %c0_5] : memref<16x32xbf16, #tpu.memory_space<vmem>>, vector<16x32xbf16>
    %c0_6 = arith.constant 0 : index
    %c0_7 = arith.constant 0 : index
    %4 = vector.load %arg4[%c0_6, %c0_7] : memref<1x32xf32, #tpu.memory_space<vmem>>, vector<1x32xf32>
    %c0_8 = arith.constant 0 : index
    %c0_9 = arith.constant 0 : index
    %5 = vector.load %arg5[%c0_8, %c0_9] : memref<16x32xbf16, #tpu.memory_space<vmem>>, vector<16x32xbf16>
    %c0_10 = arith.constant 0 : index
    %c0_11 = arith.constant 0 : index
    %6 = vector.load %arg6[%c0_10, %c0_11] : memref<1x32xf32, #tpu.memory_space<vmem>>, vector<1x32xf32>
    %7 = arith.truncf %2 : vector<1x16xf32> to vector<1x16xbf16>
    %cst = arith.constant dense<0.000000e+00> : vector<1x32xf32>
    %8 = tpu.matmul %7, %3, %cst {dimension_numbers = #tpu.dot_dimension_numbers<[1], [0], [0], [1], [0, 0, 1, 1], [], []>} : vector<1x16xbf16>, vector<16x32xbf16>, vector<1x32xf32> -> vector<1x32xf32>
    %9 = arith.addf %8, %4 : vector<1x32xf32>
    %10 = arith.truncf %2 : vector<1x16xf32> to vector<1x16xbf16>
    %cst_12 = arith.constant dense<0.000000e+00> : vector<1x32xf32>
    %11 = tpu.matmul %10, %5, %cst_12 {dimension_numbers = #tpu.dot_dimension_numbers<[1], [0], [0], [1], [0, 0, 1, 1], [], []>} : vector<1x16xbf16>, vector<16x32xbf16>, vector<1x32xf32> -> vector<1x32xf32>
    %12 = arith.addf %11, %6 : vector<1x32xf32>
    %13 = vector.broadcast %9 : vector<1x32xf32> to vector<8x32xf32>
    %14 = arith.mulf %13, %0 : vector<8x32xf32>
    %15 = vector.broadcast %12 : vector<1x32xf32> to vector<8x32xf32>
    %16 = arith.addf %14, %15 : vector<8x32xf32>
    %c0_13 = arith.constant 0 : index
    %c0_14 = arith.constant 0 : index
    %17 = vector.load %arg7[%c0_13, %c0_14] : memref<8x8xbf16, #tpu.memory_space<vmem>>, vector<8x8xbf16>
    %cst_15 = arith.constant dense<0.000000e+00> : vector<8xf32>
    %18 = vector.multi_reduction <add>, %16, %cst_15 [1] : vector<8x32xf32> to vector<8xf32>
    %19 = vector.shape_cast %18 : vector<8xf32> to vector<8x1xf32>
    %cst_16 = arith.constant 3.200000e+01 : f32
    %20 = vector.broadcast %cst_16 : f32 to vector<8x1xf32>
    %21 = arith.divf %19, %20 : vector<8x1xf32>
    %22 = vector.shape_cast %21 : vector<8x1xf32> to vector<8x1xf32>
    %23 = vector.broadcast %22 : vector<8x1xf32> to vector<8x32xf32>
    %24 = arith.truncf %23 : vector<8x32xf32> to vector<8x32xbf16>
    %cst_17 = arith.constant dense<0.000000e+00> : vector<8x32xf32>
    %25 = tpu.matmul %17, %24, %cst_17 {dimension_numbers = #tpu.dot_dimension_numbers<[1], [0], [0], [1], [0, 0, 1, 1], [], []>} : vector<8x8xbf16>, vector<8x32xbf16>, vector<8x32xf32> -> vector<8x32xf32>
    %26 = arith.addf %16, %25 : vector<8x32xf32>
    %c0_18 = arith.constant 0 : index
    %c0_19 = arith.constant 0 : index
    %27 = vector.load %arg9[%c0_18, %c0_19] : memref<1x32xf32, #tpu.memory_space<vmem>>, vector<1x32xf32>
    %28 = vector.broadcast %27 : vector<1x32xf32> to vector<8x32xf32>
    %29 = arith.addf %28, %16 : vector<8x32xf32>
    %cst_20 = arith.constant 0.000000e+00 : f32
    %30 = vector.broadcast %cst_20 : f32 to vector<1x32xf32>
    %31 = vector.extract_strided_slice %16 {offsets = [0, 0], sizes = [7, 32], strides = [1, 1]} : vector<8x32xf32> to vector<7x32xf32>
    %32 = tpu.concatenate %30, %31 in 0 : vector<1x32xf32>, vector<7x32xf32> -> vector<8x32xf32>
    %c0_21 = arith.constant 0 : index
    %c0_22 = arith.constant 0 : index
    %c0_23 = arith.constant 0 : index
    %33 = vector.load %arg8[%c0_21, %c0_22, %c0_23] : memref<9x32x32xbf16, #tpu.memory_space<vmem>>, vector<1x32x32xbf16>
    %34 = vector.shape_cast %33 : vector<1x32x32xbf16> to vector<32x32xbf16>
    %35 = arith.truncf %32 : vector<8x32xf32> to vector<8x32xbf16>
    %cst_24 = arith.constant dense<0.000000e+00> : vector<8x32xf32>
    %36 = tpu.matmul %35, %34, %cst_24 {dimension_numbers = #tpu.dot_dimension_numbers<[1], [0], [0], [1], [0, 0, 1, 1], [], []>} : vector<8x32xbf16>, vector<32x32xbf16>, vector<8x32xf32> -> vector<8x32xf32>
    %37 = arith.addf %29, %36 : vector<8x32xf32>
    %cst_25 = arith.constant 0.000000e+00 : f32
    %38 = vector.broadcast %cst_25 : f32 to vector<2x32xf32>
    %39 = vector.extract_strided_slice %16 {offsets = [0, 0], sizes = [6, 32], strides = [1, 1]} : vector<8x32xf32> to vector<6x32xf32>
    %40 = tpu.concatenate %38, %39 in 0 : vector<2x32xf32>, vector<6x32xf32> -> vector<8x32xf32>
    %c1 = arith.constant 1 : index
    %c0_26 = arith.constant 0 : index
    %c0_27 = arith.constant 0 : index
    %41 = vector.load %arg8[%c1, %c0_26, %c0_27] : memref<9x32x32xbf16, #tpu.memory_space<vmem>>, vector<1x32x32xbf16>
    %42 = vector.shape_cast %41 : vector<1x32x32xbf16> to vector<32x32xbf16>
    %43 = arith.truncf %40 : vector<8x32xf32> to vector<8x32xbf16>
    %cst_28 = arith.constant dense<0.000000e+00> : vector<8x32xf32>
    %44 = tpu.matmul %43, %42, %cst_28 {dimension_numbers = #tpu.dot_dimension_numbers<[1], [0], [0], [1], [0, 0, 1, 1], [], []>} : vector<8x32xbf16>, vector<32x32xbf16>, vector<8x32xf32> -> vector<8x32xf32>
    %45 = arith.addf %37, %44 : vector<8x32xf32>
    %cst_29 = arith.constant 0.000000e+00 : f32
    %46 = vector.broadcast %cst_29 : f32 to vector<4x32xf32>
    %47 = vector.extract_strided_slice %16 {offsets = [0, 0], sizes = [4, 32], strides = [1, 1]} : vector<8x32xf32> to vector<4x32xf32>
    %48 = tpu.concatenate %46, %47 in 0 : vector<4x32xf32>, vector<4x32xf32> -> vector<8x32xf32>
    %c2 = arith.constant 2 : index
    %c0_30 = arith.constant 0 : index
    %c0_31 = arith.constant 0 : index
    %49 = vector.load %arg8[%c2, %c0_30, %c0_31] : memref<9x32x32xbf16, #tpu.memory_space<vmem>>, vector<1x32x32xbf16>
    %50 = vector.shape_cast %49 : vector<1x32x32xbf16> to vector<32x32xbf16>
    %51 = arith.truncf %48 : vector<8x32xf32> to vector<8x32xbf16>
    %cst_32 = arith.constant dense<0.000000e+00> : vector<8x32xf32>
    %52 = tpu.matmul %51, %50, %cst_32 {dimension_numbers = #tpu.dot_dimension_numbers<[1], [0], [0], [1], [0, 0, 1, 1], [], []>} : vector<8x32xbf16>, vector<32x32xbf16>, vector<8x32xf32> -> vector<8x32xf32>
    %53 = arith.addf %45, %52 : vector<8x32xf32>
    %c4 = arith.constant 4 : index
    %c0_33 = arith.constant 0 : index
    %c0_34 = arith.constant 0 : index
    %54 = vector.load %arg8[%c4, %c0_33, %c0_34] : memref<9x32x32xbf16, #tpu.memory_space<vmem>>, vector<1x32x32xbf16>
    %55 = vector.shape_cast %54 : vector<1x32x32xbf16> to vector<32x32xbf16>
    %56 = arith.truncf %16 : vector<8x32xf32> to vector<8x32xbf16>
    %cst_35 = arith.constant dense<0.000000e+00> : vector<8x32xf32>
    %57 = tpu.matmul %56, %55, %cst_35 {dimension_numbers = #tpu.dot_dimension_numbers<[1], [0], [0], [1], [0, 0, 1, 1], [], []>} : vector<8x32xbf16>, vector<32x32xbf16>, vector<8x32xf32> -> vector<8x32xf32>
    %58 = arith.addf %53, %57 : vector<8x32xf32>
    %cst_36 = arith.constant 0.000000e+00 : f32
    %59 = vector.broadcast %cst_36 : f32 to vector<1x32xf32>
    %60 = vector.extract_strided_slice %16 {offsets = [1, 0], sizes = [7, 32], strides = [1, 1]} : vector<8x32xf32> to vector<7x32xf32>
    %61 = tpu.concatenate %60, %59 in 0 : vector<7x32xf32>, vector<1x32xf32> -> vector<8x32xf32>
    %c5 = arith.constant 5 : index
    %c0_37 = arith.constant 0 : index
    %c0_38 = arith.constant 0 : index
    %62 = vector.load %arg8[%c5, %c0_37, %c0_38] : memref<9x32x32xbf16, #tpu.memory_space<vmem>>, vector<1x32x32xbf16>
    %63 = vector.shape_cast %62 : vector<1x32x32xbf16> to vector<32x32xbf16>
    %64 = arith.truncf %61 : vector<8x32xf32> to vector<8x32xbf16>
    %cst_39 = arith.constant dense<0.000000e+00> : vector<8x32xf32>
    %65 = tpu.matmul %64, %63, %cst_39 {dimension_numbers = #tpu.dot_dimension_numbers<[1], [0], [0], [1], [0, 0, 1, 1], [], []>} : vector<8x32xbf16>, vector<32x32xbf16>, vector<8x32xf32> -> vector<8x32xf32>
    %66 = arith.addf %58, %65 : vector<8x32xf32>
    %cst_40 = arith.constant 0.000000e+00 : f32
    %67 = vector.broadcast %cst_40 : f32 to vector<2x32xf32>
    %68 = vector.extract_strided_slice %16 {offsets = [2, 0], sizes = [6, 32], strides = [1, 1]} : vector<8x32xf32> to vector<6x32xf32>
    %69 = tpu.concatenate %68, %67 in 0 : vector<6x32xf32>, vector<2x32xf32> -> vector<8x32xf32>
    %c6 = arith.constant 6 : index
    %c0_41 = arith.constant 0 : index
    %c0_42 = arith.constant 0 : index
    %70 = vector.load %arg8[%c6, %c0_41, %c0_42] : memref<9x32x32xbf16, #tpu.memory_space<vmem>>, vector<1x32x32xbf16>
    %71 = vector.shape_cast %70 : vector<1x32x32xbf16> to vector<32x32xbf16>
    %72 = arith.truncf %69 : vector<8x32xf32> to vector<8x32xbf16>
    %cst_43 = arith.constant dense<0.000000e+00> : vector<8x32xf32>
    %73 = tpu.matmul %72, %71, %cst_43 {dimension_numbers = #tpu.dot_dimension_numbers<[1], [0], [0], [1], [0, 0, 1, 1], [], []>} : vector<8x32xbf16>, vector<32x32xbf16>, vector<8x32xf32> -> vector<8x32xf32>
    %74 = arith.addf %66, %73 : vector<8x32xf32>
    %cst_44 = arith.constant 0.000000e+00 : f32
    %75 = vector.broadcast %cst_44 : f32 to vector<4x32xf32>
    %76 = vector.extract_strided_slice %16 {offsets = [4, 0], sizes = [4, 32], strides = [1, 1]} : vector<8x32xf32> to vector<4x32xf32>
    %77 = tpu.concatenate %76, %75 in 0 : vector<4x32xf32>, vector<4x32xf32> -> vector<8x32xf32>
    %c7 = arith.constant 7 : index
    %c0_45 = arith.constant 0 : index
    %c0_46 = arith.constant 0 : index
    %78 = vector.load %arg8[%c7, %c0_45, %c0_46] : memref<9x32x32xbf16, #tpu.memory_space<vmem>>, vector<1x32x32xbf16>
    %79 = vector.shape_cast %78 : vector<1x32x32xbf16> to vector<32x32xbf16>
    %80 = arith.truncf %77 : vector<8x32xf32> to vector<8x32xbf16>
    %cst_47 = arith.constant dense<0.000000e+00> : vector<8x32xf32>
    %81 = tpu.matmul %80, %79, %cst_47 {dimension_numbers = #tpu.dot_dimension_numbers<[1], [0], [0], [1], [0, 0, 1, 1], [], []>} : vector<8x32xbf16>, vector<32x32xbf16>, vector<8x32xf32> -> vector<8x32xf32>
    %82 = arith.addf %74, %81 : vector<8x32xf32>
    %c0_48 = arith.constant 0 : index
    %c0_49 = arith.constant 0 : index
    %83 = vector.load %arg10[%c0_48, %c0_49] : memref<1x32xf32, #tpu.memory_space<vmem>>, vector<1x32xf32>
    %c0_50 = arith.constant 0 : index
    %c0_51 = arith.constant 0 : index
    %84 = vector.load %arg11[%c0_50, %c0_51] : memref<1x32xf32, #tpu.memory_space<vmem>>, vector<1x32xf32>
    %cst_52 = arith.constant dense<0.000000e+00> : vector<8xf32>
    %85 = vector.multi_reduction <add>, %82, %cst_52 [1] : vector<8x32xf32> to vector<8xf32>
    %86 = vector.shape_cast %85 : vector<8xf32> to vector<8x1xf32>
    %cst_53 = arith.constant 3.200000e+01 : f32
    %87 = vector.broadcast %cst_53 : f32 to vector<8x1xf32>
    %88 = arith.divf %86, %87 : vector<8x1xf32>
    %89 = vector.broadcast %88 : vector<8x1xf32> to vector<8x32xf32>
    %90 = arith.subf %82, %89 : vector<8x32xf32>
    %91 = arith.mulf %90, %90 : vector<8x32xf32>
    %cst_54 = arith.constant dense<0.000000e+00> : vector<8xf32>
    %92 = vector.multi_reduction <add>, %91, %cst_54 [1] : vector<8x32xf32> to vector<8xf32>
    %93 = vector.shape_cast %92 : vector<8xf32> to vector<8x1xf32>
    %cst_55 = arith.constant 3.200000e+01 : f32
    %94 = vector.broadcast %cst_55 : f32 to vector<8x1xf32>
    %95 = arith.divf %93, %94 : vector<8x1xf32>
    %96 = vector.broadcast %88 : vector<8x1xf32> to vector<8x32xf32>
    %97 = arith.subf %82, %96 : vector<8x32xf32>
    %cst_56 = arith.constant 9.99999974E-6 : f32
    %98 = vector.broadcast %cst_56 : f32 to vector<8x1xf32>
    %99 = arith.addf %95, %98 : vector<8x1xf32>
    %100 = math.rsqrt %99 : vector<8x1xf32>
    %101 = vector.broadcast %100 : vector<8x1xf32> to vector<8x32xf32>
    %102 = arith.mulf %97, %101 : vector<8x32xf32>
    %103 = vector.broadcast %83 : vector<1x32xf32> to vector<8x32xf32>
    %104 = arith.mulf %102, %103 : vector<8x32xf32>
    %105 = vector.broadcast %84 : vector<1x32xf32> to vector<8x32xf32>
    %106 = arith.addf %104, %105 : vector<8x32xf32>
    %c0_57 = arith.constant 0 : index
    %c0_58 = arith.constant 0 : index
    %107 = vector.load %arg12[%c0_57, %c0_58] : memref<32x64xbf16, #tpu.memory_space<vmem>>, vector<32x64xbf16>
    %108 = arith.truncf %26 : vector<8x32xf32> to vector<8x32xbf16>
    %cst_59 = arith.constant dense<0.000000e+00> : vector<8x64xf32>
    %109 = tpu.matmul %108, %107, %cst_59 {dimension_numbers = #tpu.dot_dimension_numbers<[1], [0], [0], [1], [0, 0, 1, 1], [], []>} : vector<8x32xbf16>, vector<32x64xbf16>, vector<8x64xf32> -> vector<8x64xf32>
    %c0_60 = arith.constant 0 : index
    %c0_61 = arith.constant 0 : index
    %110 = vector.load %arg13[%c0_60, %c0_61] : memref<32x64xbf16, #tpu.memory_space<vmem>>, vector<32x64xbf16>
    %111 = arith.truncf %106 : vector<8x32xf32> to vector<8x32xbf16>
    %cst_62 = arith.constant dense<0.000000e+00> : vector<8x64xf32>
    %112 = tpu.matmul %111, %110, %cst_62 {dimension_numbers = #tpu.dot_dimension_numbers<[1], [0], [0], [1], [0, 0, 1, 1], [], []>} : vector<8x32xbf16>, vector<32x64xbf16>, vector<8x64xf32> -> vector<8x64xf32>
    %113 = arith.addf %109, %112 : vector<8x64xf32>
    %c0_63 = arith.constant 0 : index
    %c0_64 = arith.constant 0 : index
    %114 = vector.load %arg14[%c0_63, %c0_64] : memref<1x64xf32, #tpu.memory_space<vmem>>, vector<1x64xf32>
    %115 = vector.broadcast %114 : vector<1x64xf32> to vector<8x64xf32>
    %116 = arith.addf %113, %115 : vector<8x64xf32>
    %cst_65 = arith.constant 0.000000e+00 : f32
    %117 = vector.broadcast %cst_65 : f32 to vector<8x64xf32>
    %118 = arith.subf %117, %116 : vector<8x64xf32>
    %119 = math.exp %118 : vector<8x64xf32>
    %cst_66 = arith.constant 1.000000e+00 : f32
    %120 = vector.broadcast %cst_66 : f32 to vector<8x64xf32>
    %121 = arith.addf %120, %119 : vector<8x64xf32>
    %cst_67 = arith.constant 1.000000e+00 : f32
    %122 = vector.broadcast %cst_67 : f32 to vector<8x64xf32>
    %123 = arith.divf %122, %121 : vector<8x64xf32>
    %124 = arith.mulf %116, %123 : vector<8x64xf32>
    %c0_68 = arith.constant 0 : index
    %c0_69 = arith.constant 0 : index
    %125 = vector.load %arg15[%c0_68, %c0_69] : memref<64x32xbf16, #tpu.memory_space<vmem>>, vector<64x32xbf16>
    %126 = arith.truncf %124 : vector<8x64xf32> to vector<8x64xbf16>
    %cst_70 = arith.constant dense<0.000000e+00> : vector<8x32xf32>
    %127 = tpu.matmul %126, %125, %cst_70 {dimension_numbers = #tpu.dot_dimension_numbers<[1], [0], [0], [1], [0, 0, 1, 1], [], []>} : vector<8x64xbf16>, vector<64x32xbf16>, vector<8x32xf32> -> vector<8x32xf32>
    %c0_71 = arith.constant 0 : index
    %c0_72 = arith.constant 0 : index
    %128 = vector.load %arg16[%c0_71, %c0_72] : memref<1x32xf32, #tpu.memory_space<vmem>>, vector<1x32xf32>
    %129 = vector.broadcast %128 : vector<1x32xf32> to vector<8x32xf32>
    %130 = arith.addf %127, %129 : vector<8x32xf32>
    %c0_73 = arith.constant 0 : index
    %c0_74 = arith.constant 0 : index
    %131 = vector.load %arg17[%c0_73, %c0_74] : memref<16x32xbf16, #tpu.memory_space<vmem>>, vector<16x32xbf16>
    %c0_75 = arith.constant 0 : index
    %c0_76 = arith.constant 0 : index
    %132 = vector.load %arg18[%c0_75, %c0_76] : memref<1x32xf32, #tpu.memory_space<vmem>>, vector<1x32xf32>
    %c0_77 = arith.constant 0 : index
    %c0_78 = arith.constant 0 : index
    %133 = vector.load %arg19[%c0_77, %c0_78] : memref<16x32xbf16, #tpu.memory_space<vmem>>, vector<16x32xbf16>
    %c0_79 = arith.constant 0 : index
    %c0_80 = arith.constant 0 : index
    %134 = vector.load %arg20[%c0_79, %c0_80] : memref<1x32xf32, #tpu.memory_space<vmem>>, vector<1x32xf32>
    %135 = arith.truncf %2 : vector<1x16xf32> to vector<1x16xbf16>
    %cst_81 = arith.constant dense<0.000000e+00> : vector<1x32xf32>
    %136 = tpu.matmul %135, %131, %cst_81 {dimension_numbers = #tpu.dot_dimension_numbers<[1], [0], [0], [1], [0, 0, 1, 1], [], []>} : vector<1x16xbf16>, vector<16x32xbf16>, vector<1x32xf32> -> vector<1x32xf32>
    %137 = arith.addf %136, %132 : vector<1x32xf32>
    %138 = arith.truncf %2 : vector<1x16xf32> to vector<1x16xbf16>
    %cst_82 = arith.constant dense<0.000000e+00> : vector<1x32xf32>
    %139 = tpu.matmul %138, %133, %cst_82 {dimension_numbers = #tpu.dot_dimension_numbers<[1], [0], [0], [1], [0, 0, 1, 1], [], []>} : vector<1x16xbf16>, vector<16x32xbf16>, vector<1x32xf32> -> vector<1x32xf32>
    %140 = arith.addf %139, %134 : vector<1x32xf32>
    %141 = vector.broadcast %137 : vector<1x32xf32> to vector<8x32xf32>
    %142 = arith.mulf %141, %130 : vector<8x32xf32>
    %143 = vector.broadcast %140 : vector<1x32xf32> to vector<8x32xf32>
    %144 = arith.addf %142, %143 : vector<8x32xf32>
    %c0_83 = arith.constant 0 : index
    %c0_84 = arith.constant 0 : index
    %145 = vector.load %arg21[%c0_83, %c0_84] : memref<32x16xbf16, #tpu.memory_space<vmem>>, vector<32x16xbf16>
    %146 = arith.truncf %144 : vector<8x32xf32> to vector<8x32xbf16>
    %cst_85 = arith.constant dense<0.000000e+00> : vector<8x16xf32>
    %147 = tpu.matmul %146, %145, %cst_85 {dimension_numbers = #tpu.dot_dimension_numbers<[1], [0], [0], [1], [0, 0, 1, 1], [], []>} : vector<8x32xbf16>, vector<32x16xbf16>, vector<8x16xf32> -> vector<8x16xf32>
    %c0_86 = arith.constant 0 : index
    %c0_87 = arith.constant 0 : index
    %148 = vector.load %arg22[%c0_86, %c0_87] : memref<1x16xf32, #tpu.memory_space<vmem>>, vector<1x16xf32>
    %149 = vector.broadcast %148 : vector<1x16xf32> to vector<8x16xf32>
    %150 = arith.addf %147, %149 : vector<8x16xf32>
    %cst_88 = arith.constant 0.000000e+00 : f32
    %151 = vector.broadcast %cst_88 : f32 to vector<8x16xf32>
    %152 = arith.subf %151, %150 : vector<8x16xf32>
    %153 = math.exp %152 : vector<8x16xf32>
    %cst_89 = arith.constant 1.000000e+00 : f32
    %154 = vector.broadcast %cst_89 : f32 to vector<8x16xf32>
    %155 = arith.addf %154, %153 : vector<8x16xf32>
    %cst_90 = arith.constant 1.000000e+00 : f32
    %156 = vector.broadcast %cst_90 : f32 to vector<8x16xf32>
    %157 = arith.divf %156, %155 : vector<8x16xf32>
    %158 = arith.mulf %150, %157 : vector<8x16xf32>
    %c0_91 = arith.constant 0 : index
    %c0_92 = arith.constant 0 : index
    %159 = vector.load %arg23[%c0_91, %c0_92] : memref<16x128xbf16, #tpu.memory_space<vmem>>, vector<16x128xbf16>
    %160 = arith.truncf %158 : vector<8x16xf32> to vector<8x16xbf16>
    %cst_93 = arith.constant dense<0.000000e+00> : vector<8x128xf32>
    %161 = tpu.matmul %160, %159, %cst_93 {dimension_numbers = #tpu.dot_dimension_numbers<[1], [0], [0], [1], [0, 0, 1, 1], [], []>} : vector<8x16xbf16>, vector<16x128xbf16>, vector<8x128xf32> -> vector<8x128xf32>
    %c0_94 = arith.constant 0 : index
    %c0_95 = arith.constant 0 : index
    %162 = vector.load %arg24[%c0_94, %c0_95] : memref<32x128xbf16, #tpu.memory_space<vmem>>, vector<32x128xbf16>
    %163 = arith.truncf %130 : vector<8x32xf32> to vector<8x32xbf16>
    %cst_96 = arith.constant dense<0.000000e+00> : vector<8x128xf32>
    %164 = tpu.matmul %163, %162, %cst_96 {dimension_numbers = #tpu.dot_dimension_numbers<[1], [0], [0], [1], [0, 0, 1, 1], [], []>} : vector<8x32xbf16>, vector<32x128xbf16>, vector<8x128xf32> -> vector<8x128xf32>
    %165 = arith.addf %161, %164 : vector<8x128xf32>
    %c0_97 = arith.constant 0 : index
    %c0_98 = arith.constant 0 : index
    %166 = vector.load %arg25[%c0_97, %c0_98] : memref<1x128xf32, #tpu.memory_space<vmem>>, vector<1x128xf32>
    %167 = vector.broadcast %166 : vector<1x128xf32> to vector<8x128xf32>
    %168 = arith.addf %165, %167 : vector<8x128xf32>
    %c0_99 = arith.constant 0 : index
    %c0_100 = arith.constant 0 : index
    %169 = vector.load %arg27[%c0_99, %c0_100] : memref<8x128xf32, #tpu.memory_space<vmem>>, vector<8x128xf32>
    tpu.vector_store %arg27[%c0_99, %c0_100], %168 {strides = array<i32>} : memref<8x128xf32, #tpu.memory_space<vmem>>, vector<8x128xf32>,
    %c0_101 = arith.constant 0 : index
    %c0_102 = arith.constant 0 : index
    %170 = vector.load %arg26[%c0_101, %c0_102] : memref<128x32xbf16, #tpu.memory_space<vmem>>, vector<128x32xbf16>
    %171 = arith.truncf %168 : vector<8x128xf32> to vector<8x128xbf16>
    %cst_103 = arith.constant dense<0.000000e+00> : vector<8x32xf32>
    %172 = tpu.matmul %171, %170, %cst_103 {dimension_numbers = #tpu.dot_dimension_numbers<[1], [0], [0], [1], [0, 0, 1, 1], [], []>} : vector<8x128xbf16>, vector<128x32xbf16>, vector<8x32xf32> -> vector<8x32xf32>
    %173 = arith.addf %130, %172 : vector<8x32xf32>
    %cst_104 = arith.constant dense<0.000000e+00> : vector<32xf32>
    %174 = vector.multi_reduction <add>, %173, %cst_104 [0] : vector<8x32xf32> to vector<32xf32>
    %175 = vector.shape_cast %174 : vector<32xf32> to vector<1x32xf32>
    %cst_105 = arith.constant 8.000000e+00 : f32
    %176 = vector.broadcast %cst_105 : f32 to vector<1x32xf32>
    %177 = arith.divf %175, %176 : vector<1x32xf32>
    %c0_106 = arith.constant 0 : index
    %c0_107 = arith.constant 0 : index
    %c0_108 = arith.constant 0 : index
    %178 = vector.load %arg28[%c0_106, %c0_107, %c0_108] : memref<1x1x32xf32, #tpu.memory_space<vmem>>, vector<1x1x32xf32>
    %179 = vector.shape_cast %178 : vector<1x1x32xf32> to vector<1x32xf32>
    %180 = vector.shape_cast %177 : vector<1x32xf32> to vector<1x1x32xf32>
    tpu.vector_store %arg28[%c0_106, %c0_107, %c0_108], %180 {strides = array<i32>} : memref<1x1x32xf32, #tpu.memory_space<vmem>>, vector<1x1x32xf32>,
    return
  }
  func.func @transform_0(%arg0: i32) -> (i32, i32) {
    %c0_i32 = arith.constant 0 : i32
    %c0_i32_0 = arith.constant 0 : i32
    return %arg0, %c0_i32 : i32, i32
  }
  func.func @transform_1(%arg0: i32) -> (i32, i32, i32) {
    %c0_i32 = arith.constant 0 : i32
    %c0_i32_0 = arith.constant 0 : i32
    %c0_i32_1 = arith.constant 0 : i32
    return %arg0, %c0_i32, %c0_i32_0 : i32, i32, i32
  }
  func.func @transform_2(%arg0: i32) -> (i32, i32) {
    %c0_i32 = arith.constant 0 : i32
    %c0_i32_0 = arith.constant 0 : i32
    %c0_i32_1 = arith.constant 0 : i32
    return %c0_i32, %c0_i32_0 : i32, i32
  }
  func.func @transform_3(%arg0: i32) -> (i32, i32) {
    %c0_i32 = arith.constant 0 : i32
    %c0_i32_0 = arith.constant 0 : i32
    %c0_i32_1 = arith.constant 0 : i32
    return %c0_i32, %c0_i32_0 : i32, i32
  }
  func.func @transform_4(%arg0: i32) -> (i32, i32) {
    %c0_i32 = arith.constant 0 : i32
    %c0_i32_0 = arith.constant 0 : i32
    %c0_i32_1 = arith.constant 0 : i32
    return %c0_i32, %c0_i32_0 : i32, i32
  }
  func.func @transform_5(%arg0: i32) -> (i32, i32) {
    %c0_i32 = arith.constant 0 : i32
    %c0_i32_0 = arith.constant 0 : i32
    %c0_i32_1 = arith.constant 0 : i32
    return %c0_i32, %c0_i32_0 : i32, i32
  }
  func.func @transform_6(%arg0: i32) -> (i32, i32) {
    %c0_i32 = arith.constant 0 : i32
    %c0_i32_0 = arith.constant 0 : i32
    %c0_i32_1 = arith.constant 0 : i32
    return %c0_i32, %c0_i32_0 : i32, i32
  }
  func.func @transform_7(%arg0: i32) -> (i32, i32, i32) {
    %c0_i32 = arith.constant 0 : i32
    %c0_i32_0 = arith.constant 0 : i32
    %c0_i32_1 = arith.constant 0 : i32
    %c0_i32_2 = arith.constant 0 : i32
    return %c0_i32, %c0_i32_0, %c0_i32_1 : i32, i32, i32
  }
  func.func @transform_8(%arg0: i32) -> (i32, i32) {
    %c0_i32 = arith.constant 0 : i32
    %c0_i32_0 = arith.constant 0 : i32
    %c0_i32_1 = arith.constant 0 : i32
    return %c0_i32, %c0_i32_0 : i32, i32
  }
  func.func @transform_9(%arg0: i32) -> (i32, i32) {
    %c0_i32 = arith.constant 0 : i32
    %c0_i32_0 = arith.constant 0 : i32
    %c0_i32_1 = arith.constant 0 : i32
    return %c0_i32, %c0_i32_0 : i32, i32
  }
  func.func @transform_10(%arg0: i32) -> (i32, i32) {
    %c0_i32 = arith.constant 0 : i32
    %c0_i32_0 = arith.constant 0 : i32
    %c0_i32_1 = arith.constant 0 : i32
    return %c0_i32, %c0_i32_0 : i32, i32
  }
  func.func @transform_11(%arg0: i32) -> (i32, i32) {
    %c0_i32 = arith.constant 0 : i32
    %c0_i32_0 = arith.constant 0 : i32
    %c0_i32_1 = arith.constant 0 : i32
    return %c0_i32, %c0_i32_0 : i32, i32
  }
  func.func @transform_12(%arg0: i32) -> (i32, i32) {
    %c0_i32 = arith.constant 0 : i32
    %c0_i32_0 = arith.constant 0 : i32
    %c0_i32_1 = arith.constant 0 : i32
    return %c0_i32, %c0_i32_0 : i32, i32
  }
  func.func @transform_13(%arg0: i32) -> (i32, i32) {
    %c0_i32 = arith.constant 0 : i32
    %c0_i32_0 = arith.constant 0 : i32
    %c0_i32_1 = arith.constant 0 : i32
    return %c0_i32, %c0_i32_0 : i32, i32
  }
  func.func @transform_14(%arg0: i32) -> (i32, i32) {
    %c0_i32 = arith.constant 0 : i32
    %c0_i32_0 = arith.constant 0 : i32
    %c0_i32_1 = arith.constant 0 : i32
    return %c0_i32, %c0_i32_0 : i32, i32
  }
  func.func @transform_15(%arg0: i32) -> (i32, i32) {
    %c0_i32 = arith.constant 0 : i32
    %c0_i32_0 = arith.constant 0 : i32
    %c0_i32_1 = arith.constant 0 : i32
    return %c0_i32, %c0_i32_0 : i32, i32
  }
  func.func @transform_16(%arg0: i32) -> (i32, i32) {
    %c0_i32 = arith.constant 0 : i32
    %c0_i32_0 = arith.constant 0 : i32
    %c0_i32_1 = arith.constant 0 : i32
    return %c0_i32, %c0_i32_0 : i32, i32
  }
  func.func @transform_17(%arg0: i32) -> (i32, i32) {
    %c0_i32 = arith.constant 0 : i32
    %c0_i32_0 = arith.constant 0 : i32
    %c0_i32_1 = arith.constant 0 : i32
    return %c0_i32, %c0_i32_0 : i32, i32
  }
  func.func @transform_18(%arg0: i32) -> (i32, i32) {
    %c0_i32 = arith.constant 0 : i32
    %c0_i32_0 = arith.constant 0 : i32
    %c0_i32_1 = arith.constant 0 : i32
    return %c0_i32, %c0_i32_0 : i32, i32
  }
  func.func @transform_19(%arg0: i32) -> (i32, i32) {
    %c0_i32 = arith.constant 0 : i32
    %c0_i32_0 = arith.constant 0 : i32
    %c0_i32_1 = arith.constant 0 : i32
    return %c0_i32, %c0_i32_0 : i32, i32
  }
  func.func @transform_20(%arg0: i32) -> (i32, i32) {
    %c0_i32 = arith.constant 0 : i32
    %c0_i32_0 = arith.constant 0 : i32
    %c0_i32_1 = arith.constant 0 : i32
    return %c0_i32, %c0_i32_0 : i32, i32
  }
  func.func @transform_21(%arg0: i32) -> (i32, i32) {
    %c0_i32 = arith.constant 0 : i32
    %c0_i32_0 = arith.constant 0 : i32
    %c0_i32_1 = arith.constant 0 : i32
    return %c0_i32, %c0_i32_0 : i32, i32
  }
  func.func @transform_22(%arg0: i32) -> (i32, i32) {
    %c0_i32 = arith.constant 0 : i32
    %c0_i32_0 = arith.constant 0 : i32
    %c0_i32_1 = arith.constant 0 : i32
    return %c0_i32, %c0_i32_0 : i32, i32
  }
  func.func @transform_23(%arg0: i32) -> (i32, i32) {
    %c0_i32 = arith.constant 0 : i32
    %c0_i32_0 = arith.constant 0 : i32
    %c0_i32_1 = arith.constant 0 : i32
    return %c0_i32, %c0_i32_0 : i32, i32
  }
  func.func @transform_24(%arg0: i32) -> (i32, i32) {
    %c0_i32 = arith.constant 0 : i32
    %c0_i32_0 = arith.constant 0 : i32
    %c0_i32_1 = arith.constant 0 : i32
    return %c0_i32, %c0_i32_0 : i32, i32
  }
  func.func @transform_25(%arg0: i32) -> (i32, i32) {
    %c0_i32 = arith.constant 0 : i32
    %c0_i32_0 = arith.constant 0 : i32
    %c0_i32_1 = arith.constant 0 : i32
    return %c0_i32, %c0_i32_0 : i32, i32
  }
  func.func @transform_26(%arg0: i32) -> (i32, i32) {
    %c0_i32 = arith.constant 0 : i32
    %c0_i32_0 = arith.constant 0 : i32
    return %arg0, %c0_i32 : i32, i32
  }
  func.func @transform_27(%arg0: i32) -> (i32, i32, i32) {
    %c0_i32 = arith.constant 0 : i32
    %c0_i32_0 = arith.constant 0 : i32
    %c0_i32_1 = arith.constant 0 : i32
    return %arg0, %c0_i32, %c0_i32_0 : i32, i32, i32
  }
}

</mosaic_0001>

<bundles_post_ra>
// kernel: squeeze.28
= control target key start
LH: loop header
LB: loop body
LE: loop exit
PB: predicated region body
PF: predicated region fallthrough
CT: control target
= control target key end

     0   :  { %s85_s0 = inlined_call_operand.vmem [shape: f32[16], index: 0, kind: input, shape index: {}]   ;;  %s86_s1 = inlined_call_operand.hbm [shape: f32[2,8], index: 1, kind: output, shape index: {}]  }
   0x1   :  { %v5_v0 = vld [vmem:[%s85_s0] sm:$0x1] }
   0x2   :  { %2 = vsyncpa [#allocation1], 0  ;;  %6 = vst [vmem:[#allocation3] sm:$0x1] %v5_v0  ;;  %vm8_vm0 = vcmask 64512   ;;  %s58_s0 = smov 120  }
   0x3   :  { %s59_s8 = smov [#allocation0]  }
   0x4   :  { %s26_s9 = sshll.u32 %s59_s8, 4  ;;  %s27_s9 = int_to_ptr.vmem [resolvable:$true] %s26_s9 }
   0x5   :  { %s34_s10 = scalar_lea.vmem %s27_s9, 32  ;;  %p39_p1 = scmp.lt.s32.totalorder %s27_s9, %s27_s9 }
   0x6   :  { %p35_p0 = scmp.ne.s32.totalorder %s27_s9, %s34_s10  ;;  %p40_p2 = scmp.lt.s32.totalorder %s34_s10, %s34_s10 }
   0x8   :  { %p41_p3 = por %p40_p2, %p39_p1 }
   0x9   :  { %v10_v1 = vld [vmem:[#allocation3] sm:$0x1]  }
   0xa   :  { %v7_v2 = vld [vmem:[#allocation3] sm:$0x1]   ;;  %11 = vrot.lane.b32.xlu0 %v10_v1, %s58_s0  ;;  %p42_p4 = pnand %p41_p3, %p35_p0 }
   0xb   :  { %9 = vst.msk [vmem:[#allocation2] sm:$0x1] %vm8_vm0, %v7_v2  }
  0x7c   :  { %v12_v3 = vpop.permute.xlu0 %11  }
  0x7d   :  { %15 = vst.msk [vmem:[#allocation2 + $0x1] sm:$0x1] %vm8_vm0, %v12_v3  }
  0x84   :  { %v19_v4 = vld [vmem:[#allocation2] sm:$0x3] }
  0x85   :  { %21 = vst [vmem:[#allocation0] sm:$0x3] %v19_v4 }
  0x86   :  { %45 = shalt.err (!%p42_p4)
}
  0x87   :  { %s46_s13 = scalar_lea.hbm %s86_s1, 32 }
  0x88   :  { %p47_p5 = scmp.ne.s32.totalorder %s86_s1, %s46_s13  ;;  %p50_p6 = scmp.lt.u32.totalorder %s46_s13, %s86_s1 }
  0x8a   :  { %p52_p7 = pnand %p50_p6, %p47_p5 }
  0x8c   :  { %55 = shalt.err (!%p52_p7)
}
  0x8d   :  { %29 = dma.vmem_to_hbm [thread:$0]  %s27_s9, 32, %s86_s1, [#allocation1]  }
  0x8e   :  { %56 = dma.done.wait [#allocation1], 32  }
  0x8f   :  { %57 = vsyncadd [#allocation1], 4294967264 }
  0x90   :  { %31 = vsyncpa [#allocation1], 1 }

// kernel: squeeze.32
= control target key start
LH: loop header
LB: loop body
LE: loop exit
PB: predicated region body
PF: predicated region fallthrough
CT: control target
= control target key end

     0   :  { %s85_s0 = inlined_call_operand.vmem [shape: f32[32], index: 0, kind: input, shape index: {}]   ;;  %s86_s1 = inlined_call_operand.hbm [shape: f32[2,16], index: 1, kind: output, shape index: {}]  }
   0x1   :  { %v5_v0 = vld [vmem:[%s85_s0] sm:$0x1] }
   0x2   :  { %2 = vsyncpa [#allocation1], 0  ;;  %6 = vst [vmem:[#allocation3] sm:$0x1] %v5_v0  ;;  %vm8_vm0 = vcmask 130048   ;;  %s58_s0 = smov 112  }
   0x3   :  { %s59_s8 = smov [#allocation0]  }
   0x4   :  { %s26_s9 = sshll.u32 %s59_s8, 4  ;;  %s27_s9 = int_to_ptr.vmem [resolvable:$true] %s26_s9 }
   0x5   :  { %s34_s10 = scalar_lea.vmem %s27_s9, 32  ;;  %p39_p1 = scmp.lt.s32.totalorder %s27_s9, %s27_s9 }
   0x6   :  { %p35_p0 = scmp.ne.s32.totalorder %s27_s9, %s34_s10  ;;  %p40_p2 = scmp.lt.s32.totalorder %s34_s10, %s34_s10 }
   0x8   :  { %p41_p3 = por %p40_p2, %p39_p1 }
   0x9   :  { %v10_v1 = vld [vmem:[#allocation3] sm:$0x1]  }
   0xa   :  { %v7_v2 = vld [vmem:[#allocation3] sm:$0x1]   ;;  %11 = vrot.lane.b32.xlu0 %v10_v1, %s58_s0  ;;  %p42_p4 = pnand %p41_p3, %p35_p0 }
   0xb   :  { %9 = vst.msk [vmem:[#allocation2] sm:$0x1] %vm8_vm0, %v7_v2  }
  0x7c   :  { %v12_v3 = vpop.permute.xlu0 %11  }
  0x7d   :  { %15 = vst.msk [vmem:[#allocation2 + $0x1] sm:$0x1] %vm8_vm0, %v12_v3  }
  0x84   :  { %v19_v4 = vld [vmem:[#allocation2] sm:$0x3] }
  0x85   :  { %21 = vst [vmem:[#allocation0] sm:$0x3] %v19_v4 }
  0x86   :  { %45 = shalt.err (!%p42_p4)
}
  0x87   :  { %s46_s13 = scalar_lea.hbm %s86_s1, 32 }
  0x88   :  { %p47_p5 = scmp.ne.s32.totalorder %s86_s1, %s46_s13  ;;  %p50_p6 = scmp.lt.u32.totalorder %s46_s13, %s86_s1 }
  0x8a   :  { %p52_p7 = pnand %p50_p6, %p47_p5 }
  0x8c   :  { %55 = shalt.err (!%p52_p7)
}
  0x8d   :  { %29 = dma.vmem_to_hbm [thread:$0]  %s27_s9, 32, %s86_s1, [#allocation1]  }
  0x8e   :  { %56 = dma.done.wait [#allocation1], 32  }
  0x8f   :  { %57 = vsyncadd [#allocation1], 4294967264 }
  0x90   :  { %31 = vsyncpa [#allocation1], 1 }

// kernel: _lambda_.2
= control target key start
LH: loop header
LB: loop body
LE: loop exit
PB: predicated region body
PF: predicated region fallthrough
CT: control target
= control target key end

     0   :  { %s3086_s0 = inlined_call_operand.vmem [shape: f32[16,32], index: 0, kind: input, shape index: {}]   ;;  %s3087_s1 = inlined_call_operand.vmem [shape: f32[2,1,16], index: 1, kind: input, shape index: {}]   ;;  %s3088_s2 = inlined_call_operand.vmem [shape: bf16[16,32], index: 2, kind: input, shape index: {}]   ;;  %s3089_s3 = inlined_call_operand.vmem [shape: f32[1,32], index: 3, kind: input, shape index: {}, may-alias: {3,9,17}]   ;;  %s3090_s4 = inlined_call_operand.vmem [shape: bf16[16,32], index: 4, kind: input, shape index: {}]   ;;  %s3091_s5 = inlined_call_operand.vmem [shape: f32[1,32], index: 5, kind: input, shape index: {}, may-alias: {5,10,19}]   ;;  %s3092_s6 = inlined_call_operand.vmem [shape: bf16[8,8], index: 6, kind: input, shape index: {}]   ;;  %s3093_s7 = inlined_call_operand.vmem [shape: bf16[9,32,32], index: 7, kind: input, shape index: {}]   ;;  %s3094_s8 = inlined_call_operand.vmem [shape: f32[1,32], index: 8, kind: input, shape index: {}]   ;;  %s3095_s9 = inlined_call_operand.vmem [shape: f32[1,32], index: 9, kind: input, shape index: {}, may-alias: {3,9,17}]   ;;  %s3096_s10 = inlined_call_operand.vmem [shape: f32[1,32], index: 10, kind: input, shape index: {}, may-alias: {5,10,19}]   ;;  %s3097_s11 = inlined_call_operand.vmem [shape: bf16[32,64], index: 11, kind: input, shape index: {}]   ;;  %s3098_s12 = inlined_call_operand.vmem [shape: bf16[32,64], index: 12, kind: input, shape index: {}]   ;;  %s3099_s13 = inlined_call_operand.vmem [shape: f32[1,64], index: 13, kind: input, shape index: {}]   ;;  %s3100_s14 = inlined_call_operand.vmem [shape: bf16[64,32], index: 14, kind: input, shape index: {}]   ;;  %s3101_s15 = inlined_call_operand.vmem [shape: f32[1,32], index: 15, kind: input, shape index: {}]   ;;  %s3102_s16 = inlined_call_operand.vmem [shape: bf16[16,32], index: 16, kind: input, shape index: {}]   ;;  %s3103_s17 = inlined_call_operand.vmem [shape: f32[1,32], index: 17, kind: input, shape index: {}, may-alias: {3,9,17}]   ;;  %s3104_s18 = inlined_call_operand.vmem [shape: bf16[16,32], index: 18, kind: input, shape index: {}]   ;;  %s3105_s19 = inlined_call_operand.vmem [shape: f32[1,32], index: 19, kind: input, shape index: {}, may-alias: {5,10,19}]   ;;  %s3106_s20 = inlined_call_operand.vmem [shape: bf16[32,16], index: 20, kind: input, shape index: {}]   ;;  %s3107_s21 = inlined_call_operand.vmem [shape: f32[1,16], index: 21, kind: input, shape index: {}]   ;;  %s3108_s22 = inlined_call_operand.vmem [shape: bf16[16,128], index: 22, kind: input, shape index: {}]   ;;  %s3109_s23 = inlined_call_operand.vmem [shape: bf16[32,128], index: 23, kind: input, shape index: {}]   ;;  %s3110_s24 = inlined_call_operand.vmem [shape: f32[1,128], index: 24, kind: input, shape index: {}]   ;;  %s3111_s25 = inlined_call_operand.vmem [shape: bf16[128,32], index: 25, kind: input, shape index: {}]   ;;  %s3112_s26 = inlined_call_operand.vmem [shape: f32[16,128], index: 26, kind: output, shape index: {0}]   ;;  %s3113_s27 = inlined_call_operand.vmem [shape: f32[2,1,32], index: 27, kind: output, shape index: {1}]  }
   0x1   :  { %3116 = sst [smem:[#allocation2_spill]] %s3086_s0 }
   0x2   :  { %3117 = sst [smem:[#allocation3_spill]] %s3087_s1 }
   0x3   :  { %3118 = sst [smem:[#allocation4_spill]] %s3088_s2 }
   0x4   :  { %3119 = sst [smem:[#allocation5_spill]] %s3089_s3 }
   0x5   :  { %3120 = sst [smem:[#allocation6_spill]] %s3090_s4 }
   0x6   :  { %3121 = sst [smem:[#allocation7_spill]] %s3091_s5 }
   0x7   :  { %3122 = sst [smem:[#allocation8_spill]] %s3092_s6 }
   0x8   :  { %3123 = sst [smem:[#allocation9_spill]] %s3093_s7  ;;  %s2770_s7 = smov 0  }
   0x9   :  { %3124 = sst [smem:[#allocation10_spill]] %s3094_s8 }
   0xa   :  { %3125 = sst [smem:[#allocation11_spill]] %s3095_s9 }
   0xb   :  { %3126 = sst [smem:[#allocation12_spill]] %s3096_s10 }
   0xc   :  { %3127 = sst [smem:[#allocation13_spill]] %s3097_s11 }
   0xd LB: > { %s2227_s4 = sadd.s32 4294967295, %s2626_s7   ;;  %p2231_p0 = scmp.ge.s32.totalorder %s2626_s7, 1  ;;  %s2626_s7 = sphi %s2770_s7, %s38_s7  }
   0xe   : > { %p747_p1 = scmp.lt.s32.totalorder %s2626_s7, 3 }
  0x10   : > { %p748_p2 = pnand %p2231_p0, %p747_p1 }
  0x11   : > { %s3128_s9 = sld [smem:[#allocation4_spill]] (!%p748_p2)  ;;  %v2628_v1 = vmov (!%p748_p2), 0.0   ;;  %s3129_s0 = sld [smem:[#allocation6_spill]] (!%p748_p2)  ;;  %vm2629_vm0 = vmmov (!%p748_p2), 0   ;;  %vm853_vm1 = vcmask (!%p748_p2), 130048   ;;  %v943_v7 = vlaneseq (!%p748_p2) }
  0x12   : > { %751 = sbr.rel (%p748_p2) target bundleno = 2126 (0x84e), region = 124  ;;  %2383 = vmatprep.subr.bf16.mxu0 (!%p748_p2), %v2628_v1  ;;  %2389 = vmatprep.subr.bf16.mxu1 (!%p748_p2), %v2628_v1  ;;  %p823_p3 = scmp.lt.s32.totalorder (!%p748_p2), %s2227_s4, 1  ;;  %vm954_vm2 = vcmask (!%p748_p2), 261120   ;;  %vm1086_vm3 = vcmask (!%p748_p2), 1041408   ;;  %vm965_vm4 = vcmask (!%p748_p2), 1043456   ;;  %vm1279_vm5 = vcmask (!%p748_p2), 1046528  }
  0x13   : > { %2385 = vmatprep.mubr.msk.bf16.mxu0 (!%p748_p2), %vm2629_vm0, %v2628_v1  ;;  %2391 = vmatprep.mubr.msk.bf16.mxu1 (!%p748_p2), %vm2629_vm0, %v2628_v1  ;;  %s3130_s1 = sld [smem:[#allocation3_spill]] (!%p748_p2)  ;;  %s3131_s3 = sld [smem:[#allocation9_spill]] (!%p748_p2)  ;;  %v944_v8 = vshrl.u32 (!%p748_p2), %v943_v7, 7  ;;  %vm1345_vm6 = vcmask (!%p748_p2), 1045504   ;;  %vm961_vm7 = vcmask (!%p748_p2), 64512   ;;  %vm1021_vm8 = vcmask (!%p748_p2), 1040384  }
  0x14   : > { %s3134_s2 = sld [smem:[#allocation2_spill]] (!%p748_p2)  ;;  %s3135_s30 = sld [smem:[#allocation8_spill]] (!%p748_p2)  ;;  %vm1676_vm9 = vcmask (!%p748_p2), 523264   ;;  %vm2138_vm10 = vcmask (!%p748_p2), 253952  }
  0x15   : > { %v2828_v11 = vsub.s32 (!%p748_p2), 0, %v944_v8 }
  0x17   : > { %v2571_v0 = vld [vmem:[%s3128_s9] sm:$0xff] (!%p748_p2)  }
  0x18   : > { %v2572_v2 = vld [vmem:[%s3129_s0] sm:$0xff] (!%p748_p2)   ;;  %2384 = vmatpush3.bf16.msra.mxu0 (!%p748_p2), %v2571_v0  ;;  %s3132_s0 = sld [smem:[#allocation5_spill]] (!%p748_p2) }
  0x19   : > { %2390 = vmatpush3.bf16.msra.mxu1 %v2572_v2  ;;  %s3141_s4 = smov (!%p823_p3, %s2227_s4), 1  ;;  %2395 = vmatprep.subr.bf16.mxu0 %v2628_v1  ;;  %v2573_v5 = vld [vmem:[%s3131_s3 + $0x10] sm:$0xff]   ;;  %v2574_v6 = vld [vmem:[%s3131_s3 + $0x18] sm:$0xff]   ;;  %v2575_v30 = vld [vmem:[%s3131_s3 + $0x20] sm:$0xff]  }
  0x1a   : > { %2409 = vmatprep.subr.bf16.mxu1 %v2628_v1  ;;  %s829_s6 = scalar_lea.vmem %s3130_s1, %s3141_s4  ;;  %s2232_s9 = sshll.u32 %s3141_s4, 3  ;;  %v2576_v32 = vld [vmem:[%s3131_s3 + $0x28] sm:$0xff]   ;;  %v2577_v35 = vld [vmem:[%s3131_s3 + $0x40] sm:$0xff]   ;;  %v2579_v38 = vld [vmem:[%s3131_s3 + $0x50] sm:$0xff]  }
  0x1b   : > { %v839_v3 = vld [vmem:[%s829_s6] sm:$0x1]  ;;  %s3133_s1 = sld [smem:[#allocation7_spill]]  ;;  %s826_s8 = scalar_lea.vmem %s3134_s2, %s2232_s9  ;;  %v2578_v37 = vld [vmem:[%s3131_s3 + $0x48] sm:$0xff]   ;;  %v2580_v40 = vld [vmem:[%s3131_s3 + $0x58] sm:$0xff]  }
  0x1c   : > { %v2798_v4 = vpack.c.bf16 %v839_v3, %v839_v3  ;;  %v838_v18 = vld [vmem:[%s826_s8] sm:$0xff]  ;;  %v2582_v45 = vld [vmem:[%s3131_s3 + $0x68] sm:$0xff]   ;;  %v2583_v48 = vld [vmem:[%s3131_s3 + $0x70] sm:$0xff]   ;;  %s3136_s6 = sld [smem:[#allocation10_spill]]  ;;  %s3139_s2 = sld [smem:[#allocation13_spill]] }
  0x1d   : > { %v2581_v43 = vld [vmem:[%s3131_s3 + $0x60] sm:$0xff]   ;;  %v2584_v50 = vld [vmem:[%s3131_s3 + $0x78] sm:$0xff]   ;;  %v2586_v60 = vld [vmem:[%s3131_s3 + $0x8] sm:$0xff]   ;;  %s836_s29 = scalar_lea.vmem %s3113_s27, %s3141_s4 }
  0x1e   : > { %2386 = vmatmul.mubr.msk.bf16.vlgmr.msra.gmra.mrb[0].mxu0 %vm853_vm1, %v2798_v4  ;;  %2392 = vmatmul.mubr.msk.bf16.vlgmr.msra.gmra.mrb[0].mxu1 %vm853_vm1, %v2798_v4  ;;  %v842_v9 = vld [vmem:[%s3132_s0] sm:$0x1]  ;;  %s3137_s0 = sld [smem:[#allocation11_spill]] }
  0x1f   : > { %2413 = vmatprep.mubr.msk.bf16.mxu1 %vm2629_vm0, %v2628_v1  ;;  %2397 = vmatprep.mubr.msk.bf16.mxu0 %vm2629_vm0, %v2628_v1  ;;  %v953_v57 = vld [vmem:[%s3135_s30] sm:$0xf] }
  0x20   : > { %2410 = vmatpush3.bf16.msra.mxu1 %v2573_v5  ;;  %v2585_v58 = vld [vmem:[%s3131_s3] sm:$0xff]  }
  0x21   : > { %2411 = vmatprep.subr.bf16.mxu1 %v2628_v1  ;;  %v845_v10 = vld [vmem:[%s3133_s1] sm:$0x1]  ;;  %s3138_s1 = sld [smem:[#allocation12_spill]] }
  0x24   : > { %2412 = vmatpush3.bf16.msra.mxu1 %v2574_v6 }
  0x25   : > { %2417 = vmatprep.subr.bf16.mxu1 %v2628_v1 }
  0xf1   : > { %v891_v12 = vpop.f32.mrb[0].mxu0  ;;  %v937_v13 = vpop.f32.mrb[0].mxu1 }
  0xf2   : > { %v892_v14 = vadd.f32 %v891_v12, %v842_v9  ;;  %v938_v15 = vadd.f32 %v937_v13, %v845_v10  ;;  %v2387_v16 = vpop.f32.mrb[1].mxu0  ;;  %v2393_v17 = vpop.f32.mrb[1].mxu1  ;;  %v2239_v9 = vld [vmem:[%s3136_s6] ss:$0 sm:$0xff] }
  0xf3   : > { %v894_v19 = vpop.f32.mrb[2].mxu0  ;;  %v940_v20 = vpop.f32.mrb[2].mxu1 }
  0xf4   : > { %v946_v21 = vrot.slane %v892_v14, %v2828_v11  ;;  %v951_v22 = vrot.slane %v938_v15, %v2828_v11  ;;  %v2388_v23 = vpop.f32.mrb[3].mxu0  ;;  %v2394_v24 = vpop.f32.mrb[3].mxu1 }
  0xf5   : > { %v2587_v24 = vld [vmem:[%s3098_s12] sm:$0xff]  }
  0xf6   : > { %v947_v25 = vmul.f32 %v946_v21, %v838_v18 }
  0xf8   : > { %v2832_v26 = vadd.f32 %v951_v22, %v947_v25  ;;  %v2588_v25 = vld [vmem:[%s3098_s12 + $0x8] sm:$0xff]  }
  0xfa   : > { %v955_v27 = vsel %vm954_vm2, %v2832_v26, 0.0  ;;  %v1084_v28 = vrot.slane %v2832_v26, 6  ;;  %v1150_v33 = vrot.slane %v2832_v26, 4  ;;  %v1220_v39 = vpack.c.bf16 %v2832_v26, %v2832_v26 }
  0xfb   : > { %956 = vadd.xlane.f32.xlu0 %v955_v27  ;;  %v1277_v41 = vrot.slane %v2832_v26, 1  ;;  %v1343_v46 = vrot.slane %v2832_v26, 2  ;;  %v1019_v59 = vrot.slane %v2832_v26, 7  ;;  %v1017_v10 = vadd.f32 %v2239_v9, %v2832_v26 }
  0xfc   : > { %v1087_v29 = vsel %vm1086_vm3, 0.0, %v1084_v28  ;;  %v1152_v34 = vsel %vm965_vm4, 0.0, %v1150_v33  ;;  %v1409_v51 = vsel %vm965_vm4, %v1150_v33, 0.0  ;;  %v2286_v33 = vld [vmem:[%s3138_s1] ss:$0 sm:$0xff] }
  0xfd   : > { %v1093_v31 = vpack.c.bf16 %v1087_v29, %v1087_v29  ;;  %v1158_v36 = vpack.c.bf16 %v1152_v34, %v1152_v34  ;;  %v1280_v42 = vsel %vm1279_vm5, %v1277_v41, 0.0  ;;  %v1346_v47 = vsel %vm1345_vm6, %v1343_v46, 0.0  ;;  %v2591_v41 = vld [vmem:[%s3100_s14] sm:$0xff]  }
  0xfe   : > { %v1286_v44 = vpack.c.bf16 %v1280_v42, %v1280_v42  ;;  %v1352_v49 = vpack.c.bf16 %v1346_v47, %v1346_v47  ;;  %v1415_v52 = vpack.c.bf16 %v1409_v51, %v1409_v51  ;;  %v1022_v61 = vsel %vm1021_vm8, 0.0, %v1019_v59  ;;  %v2593_v42 = vld [vmem:[%s3100_s14 + $0x10] sm:$0xff]  }
  0xff   : > { %2414 = vmatmul.mubr.msk.bf16.vlgmr.msra.gmra.mrb[4].mxu1 %vm954_vm2, %v1093_v31  ;;  %v1027_v62 = vpack.c.bf16 %v1022_v61, %v1022_v61  ;;  %v2285_v31 = vld [vmem:[%s3137_s0] ss:$0 sm:$0xff]  ;;  %s833_s0 = scalar_lea.vmem %s3112_s26, %s2232_s9 }
 0x100   : > { %2418 = vmatpush3.bf16.msra.mxu1 %v2575_v30  ;;  %2421 = vmatprep.mubr.msk.bf16.mxu1 %vm2629_vm0, %v2628_v1 }
 0x101   : > { %2419 = vmatprep.subr.bf16.mxu1 %v2628_v1 }
 0x104   : > { %2420 = vmatpush3.bf16.msra.mxu1 %v2576_v32 }
 0x105   : > { %2425 = vmatprep.subr.bf16.mxu1 %v2628_v1 }
 0x10b   : > { %2422 = vmatmul.mubr.msk.bf16.vlgmr.msra.gmra.mrb[4].mxu1 %vm954_vm2, %v1158_v36  ;;  %v2589_v36 = vld [vmem:[%s3139_s2] sm:$0xff]  }
 0x10c   : > { %2426 = vmatpush3.bf16.msra.mxu1 %v2577_v35  ;;  %2429 = vmatprep.mubr.msk.bf16.mxu1 %vm2629_vm0, %v2628_v1 }
 0x10d   : > { %2427 = vmatprep.subr.bf16.mxu1 %v2628_v1 }
 0x110   : > { %2428 = vmatpush3.bf16.msra.mxu1 %v2578_v37 }
 0x111   : > { %2433 = vmatprep.subr.bf16.mxu1 %v2628_v1 }
 0x117   : > { %2430 = vmatmul.mubr.msk.bf16.vlgmr.msra.gmra.mrb[4].mxu1 %vm954_vm2, %v1220_v39 }
 0x118   : > { %2434 = vmatpush3.bf16.msra.mxu1 %v2579_v38  ;;  %2437 = vmatprep.mubr.msk.bf16.mxu1 %vm2629_vm0, %v2628_v1  ;;  %v2590_v38 = vld [vmem:[%s3139_s2 + $0x8] sm:$0xff]  }
 0x119   : > { %2435 = vmatprep.subr.bf16.mxu1 %v2628_v1 }
 0x11c   : > { %2436 = vmatpush3.bf16.msra.mxu1 %v2580_v40 }
 0x11d   : > { %2441 = vmatprep.subr.bf16.mxu1 %v2628_v1 }
 0x123   : > { %2438 = vmatmul.mubr.msk.bf16.vlgmr.msra.gmra.mrb[4].mxu1 %vm954_vm2, %v1286_v44  ;;  %v2597_v44 = vld [vmem:[%s3109_s23] sm:$0xff]  }
 0x124   : > { %2442 = vmatpush3.bf16.msra.mxu1 %v2581_v43  ;;  %2445 = vmatprep.mubr.msk.bf16.mxu1 %vm2629_vm0, %v2628_v1  ;;  %v2594_v43 = vld [vmem:[%s3100_s14 + $0x18] sm:$0xff]  }
 0x125   : > { %2443 = vmatprep.subr.bf16.mxu1 %v2628_v1 }
 0x128   : > { %2444 = vmatpush3.bf16.msra.mxu1 %v2582_v45 }
 0x129   : > { %2449 = vmatprep.subr.bf16.mxu1 %v2628_v1 }
 0x12f   : > { %2446 = vmatmul.mubr.msk.bf16.vlgmr.msra.gmra.mrb[4].mxu1 %vm954_vm2, %v1352_v49 }
 0x130   : > { %2450 = vmatpush3.bf16.msra.mxu1 %v2583_v48  ;;  %2453 = vmatprep.mubr.msk.bf16.mxu1 %vm2629_vm0, %v2628_v1 }
 0x131   : > { %2451 = vmatprep.subr.bf16.mxu1 %v2628_v1 }
 0x134   : > { %2452 = vmatpush3.bf16.msra.mxu1 %v2584_v50  ;;  %v2293_v50 = vld [vmem:[%s3099_s13] ss:$0 sm:$0xff] }
 0x135   : > { %2505 = vmatprep.subr.bf16.mxu1 %v2628_v1 }
 0x13b   : > { %2454 = vmatmul.mubr.msk.bf16.vlgmr.msra.gmra.mrb[4].mxu1 %vm954_vm2, %v1415_v52 }
 0x13c   : > { %2509 = vmatprep.mubr.msk.bf16.mxu1 %vm2629_vm0, %v2628_v1  ;;  %2506 = vmatpush3.bf16.msra.mxu1 %v2597_v44 }
 0x13d   : > { %2507 = vmatprep.subr.bf16.mxu1 %v2628_v1 }
 0x188   : > { %v957_v53 = vpop.xlane.xlu0 %956 }
 0x189   : > { %v959_v54 = vmul.f32 0.03125, %v957_v53 }
 0x18b   : > { %v960_v55 = vpack.c.bf16 %v959_v54, %v959_v54 }
 0x18d   : > { %v967_v56 = vsel %vm965_vm4, %v960_v55, 0 }
 0x18e   : > { %2396 = vmatpush3.bf16.msra.mxu0 %v967_v56 }
 0x18f   : > { %2401 = vmatprep.subr.bf16.mxu0 %v2628_v1 }
 0x191   : > { %2398 = vmatmul.mubr.msk.bf16.vlgmr.msra.gmra.mrb[4].mxu0 %vm961_vm7, %v953_v57 }
 0x192   : > { %2402 = vmatpush3.bf16.msra.mxu0 %v2585_v58  ;;  %2405 = vmatprep.mubr.msk.bf16.mxu0 %vm2629_vm0, %v2628_v1 }
 0x193   : > { %2403 = vmatprep.subr.bf16.mxu0 %v2628_v1 }
 0x196   : > { %2404 = vmatpush3.bf16.msra.mxu0 %v2586_v60 }
 0x197   : > { %2457 = vmatprep.subr.bf16.mxu0 %v2628_v1 }
 0x199   : > { %2406 = vmatmul.mubr.msk.bf16.vlgmr.msra.gmra.mrb[8].mxu0 %vm954_vm2, %v1027_v62  ;;  %v2595_v62 = vld [vmem:[%s3102_s16] sm:$0xff]  }
 0x19a   : > { %2461 = vmatprep.mubr.msk.bf16.mxu0 %vm2629_vm0, %v2628_v1  ;;  %2458 = vmatpush3.bf16.msra.mxu0 %v2587_v24 }
 0x19b   : > { %2459 = vmatprep.subr.bf16.mxu0 %v2628_v1 }
 0x19e   : > { %2460 = vmatpush3.bf16.msra.mxu0 %v2588_v25 }
 0x19f   : > { %2465 = vmatprep.subr.bf16.mxu0 %v2628_v1 }
 0x20e   : > { %v1465_v63 = vpop.f32.mrb[4].mxu1 }
 0x20f   : > { %v2455_v0 = vpop.f32.mrb[5].mxu1 }
 0x210   : > { %v1468_v2 = vpop.f32.mrb[6].mxu1  ;;  %v2596_v0 = vld [vmem:[%s3104_s18] sm:$0xff]  }
 0x211   : > { %v2456_v3 = vpop.f32.mrb[7].mxu1  ;;  %v2598_v2 = vld [vmem:[%s3109_s23 + $0x8] sm:$0xff]  }
 0x212   : > { %2508 = vmatpush3.bf16.msra.mxu1 %v2598_v2  ;;  %v2599_v3 = vld [vmem:[%s3106_s20] sm:$0xff]  }
 0x213   : > { %2519 = vmatprep.subr.bf16.mxu1 %v2628_v1 }
 0x264   : > { %v1003_v5 = vpop.f32.mrb[4].mxu0 }
 0x265   : > { %v2399_v6 = vpop.f32.mrb[5].mxu0  ;;  %v1009_v39 = vadd.f32 %v1003_v5, %v2832_v26  ;;  %v2592_v26 = vld [vmem:[%s3100_s14 + $0x8] sm:$0xff]   ;;  %v2294_v5 = vld [vmem:[%s3101_s15] ss:$0 sm:$0xff] }
 0x266   : > { %v1006_v7 = vpop.f32.mrb[6].mxu0 }
 0x267   : > { %v2400_v8 = vpop.f32.mrb[7].mxu0  ;;  %v1505_v40 = vpack.c.bf16 %v1009_v39, %v1009_v39 }
 0x26c   : > { %v1077_v12 = vpop.f32.mrb[8].mxu0 }
 0x26d   : > { %v1083_v13 = vadd.f32 %v1077_v12, %v1017_v10  ;;  %v2407_v14 = vpop.f32.mrb[9].mxu0 }
 0x26e   : > { %v1080_v15 = vpop.f32.mrb[10].mxu0 }
 0x26f   : > { %v2408_v16 = vpop.f32.mrb[11].mxu0  ;;  %v2540_v17 = vadd.f32 %v1465_v63, %v1083_v13  ;;  %v1722_v13 = vld [vmem:[%s3103_s17] sm:$0x1] }
 0x271   : > { %v1474_v18 = vsel %vm954_vm2, %v2540_v17, 0.0 }
 0x272   : > { %1475 = vadd.xlane.f32.xlu0 %v1474_v18 }
 0x2ff   : > { %v1476_v19 = vpop.xlane.xlu0 %1475 }
 0x300   : > { %v1477_v20 = vmul.f32 0.03125, %v1476_v19  ;;  %v1725_v19 = vld [vmem:[%s3105_s19] sm:$0x1] }
 0x302   : > { %v1478_v21 = vsub.f32 %v2540_v17, %v1477_v20 }
 0x304   : > { %v1479_v22 = vmul.f32 %v1478_v21, %v1478_v21 }
 0x306   : > { %v1480_v23 = vsel %vm954_vm2, %v1479_v22, 0.0 }
 0x307   : > { %1481 = vadd.xlane.f32.xlu1 %v1480_v23 }
 0x394   : > { %v1482_v27 = vpop.xlane.xlu1 %1481 }
 0x395   : > { %v1483_v28 = vmul.f32 0.03125, %v1482_v27 }
 0x397   : > { %v1484_v29 = vadd.f32 1e-05, %v1483_v28 }
 0x399   : > { %2610 = vrsqrt.f32 %v1484_v29 }
 0x3a3   : > { %v2611_v30 = vpop.eup %2610 }
 0x3a4   : > { %v1486_v32 = vmul.f32 %v2611_v30, %v1478_v21 }
 0x3a6   : > { %v1493_v34 = vmul.f32 %v2285_v31, %v1486_v32  ;;  %v2601_v31 = vld [vmem:[%s3108_s22] sm:$0xff]  }
 0x3a7   : > { %v2602_v32 = vld [vmem:[%s3111_s25] sm:$0xff]  }
 0x3a8   : > { %v1500_v35 = vadd.f32 %v2286_v33, %v1493_v34  ;;  %v2604_v33 = vld [vmem:[%s3111_s25 + $0x10] sm:$0xff]   ;;  %v2605_v34 = vld [vmem:[%s3111_s25 + $0x18] sm:$0xff]  }
 0x3aa   : > { %v1510_v37 = vpack.c.bf16 %v1500_v35, %v1500_v35  ;;  %v2606_v35 = vld [vmem:[%s3111_s25 + $0x20] sm:$0xff]  }
 0x3ac   : > { %2462 = vmatmul.mubr.msk.bf16.vlgmr.msra.gmra.mrb[12].mxu0 %vm954_vm2, %v1510_v37 }
 0x3ad   : > { %2466 = vmatpush3.bf16.msra.mxu0 %v2589_v36  ;;  %2469 = vmatprep.mubr.msk.bf16.mxu0 %vm2629_vm0, %v2628_v1  ;;  %v2607_v36 = vld [vmem:[%s3111_s25 + $0x28] sm:$0xff]  }
 0x3ae   : > { %2467 = vmatprep.subr.bf16.mxu0 %v2628_v1 }
 0x3b1   : > { %2468 = vmatpush3.bf16.msra.mxu0 %v2590_v38 }
 0x3b2   : > { %2473 = vmatprep.subr.bf16.mxu0 %v2628_v1 }
 0x3b4   : > { %2470 = vmatmul.mubr.msk.bf16.vlgmr.msra.gmra.mrb[16].mxu0 %vm954_vm2, %v1505_v40 }
 0x3b5   : > { %2481 = vmatprep.mubr.msk.bf16.mxu0 %vm2629_vm0, %v2628_v1  ;;  %2474 = vmatpush3.bf16.msra.mxu0 %v2591_v41  ;;  %v2304_v41 = vld [vmem:[%s3107_s21] ss:$0 sm:$0xff] }
 0x3b6   : > { %2475 = vmatprep.subr.bf16.mxu0 %v2628_v1 }
 0x3b9   : > { %2476 = vmatpush3.bf16.msra.mxu0 %v2592_v26 }
 0x3ba   : > { %2477 = vmatprep.subr.bf16.mxu0 %v2628_v1 }
 0x3bd   : > { %2478 = vmatpush3.bf16.msra.mxu0 %v2593_v42 }
 0x3be   : > { %2479 = vmatprep.subr.bf16.mxu0 %v2628_v1 }
 0x3c1   : > { %2480 = vmatpush3.bf16.msra.mxu0 %v2594_v43 }
 0x3c2   : > { %2485 = vmatprep.subr.bf16.mxu0 %v2628_v1 }
 0x47f   : > { %v1560_v45 = vpop.f32.mrb[12].mxu0 }
 0x480   : > { %v2463_v46 = vpop.f32.mrb[13].mxu0 }
 0x481   : > { %v1563_v47 = vpop.f32.mrb[14].mxu0 }
 0x482   : > { %v2464_v48 = vpop.f32.mrb[15].mxu0 }
 0x487   : > { %v1615_v49 = vpop.f32.mrb[16].mxu0 }
 0x488   : > { %v1616_v51 = vadd.f32 %v1615_v49, %v1560_v45  ;;  %v2471_v52 = vpop.f32.mrb[17].mxu0 }
 0x489   : > { %v1618_v53 = vpop.f32.mrb[18].mxu0 }
 0x48a   : > { %v1628_v54 = vadd.f32 %v2293_v50, %v1616_v51  ;;  %v2472_v55 = vpop.f32.mrb[19].mxu0  ;;  %v2608_v53 = vld [vmem:[%s3111_s25 + $0x30] sm:$0xff]  }
 0x48c   : > { %v1629_v56 = vsub.f32 0.0, %v1628_v54 }
 0x48e   : > { %v1630_v57 = vmul.f32 1.442695, %v1629_v56  ;;  %v2313_v56 = vld [vmem:[%s3110_s24] ss:$0 sm:$0xff] }
 0x490   : > { %2612 = vpow2.f32 %v1630_v57 }
 0x49a   : > { %v2613_v58 = vpop.eup %2612 }
 0x49b   : > { %v1632_v59 = vadd.f32 1.0, %v2613_v58 }
 0x49d   : > { %2614 = vrcp.f32 %v1632_v59 }
 0x4a7   : > { %v2615_v60 = vpop.eup %2614 }
 0x4a8   : > { %v1635_v61 = vmul.f32 %v2615_v60, %v1628_v54  ;;  %v2609_v54 = vld [vmem:[%s3111_s25 + $0x38] sm:$0xff]  }
 0x4aa   : > { %v1644_v63 = vpack.c.bf16 %v1635_v61, %v1635_v61 }
 0x4ac   : > { %2482 = vmatmul.mubr.msk.bf16.vlgmr.msra.gmra.mrb[20].mxu0 %vm1676_vm9, %v1644_v63 }
 0x4ad   : > { %2486 = vmatpush3.bf16.msra.mxu0 %v2595_v62  ;;  %2487 = vmatprep.mubr.msk.bf16.mxu0 %vm2629_vm0, %v2628_v1 }
 0x4ae   : > { %2491 = vmatprep.subr.bf16.mxu0 %v2628_v1 }
 0x4b4   : > { %2488 = vmatmul.mubr.msk.bf16.vlgmr.msra.gmra.mrb[24].mxu0 %vm853_vm1, %v2798_v4 }
 0x4b5   : > { %2492 = vmatpush3.bf16.msra.mxu0 %v2596_v0  ;;  %2493 = vmatprep.mubr.msk.bf16.mxu0 %vm2629_vm0, %v2628_v1 }
 0x4b6   : > { %2497 = vmatprep.subr.bf16.mxu0 %v2628_v1 }
 0x4bc   : > { %2494 = vmatmul.mubr.msk.bf16.vlgmr.msra.gmra.mrb[28].mxu0 %vm853_vm1, %v2798_v4  ;;  %v2600_v4 = vld [vmem:[%s3106_s20 + $0x8] sm:$0xff]  }
 0x4bd   : > { %2501 = vmatprep.mubr.msk.bf16.mxu0 %vm2629_vm0, %v2628_v1  ;;  %2498 = vmatpush3.bf16.msra.mxu0 %v2599_v3 }
 0x4be   : > { %2499 = vmatprep.subr.bf16.mxu0 %v2628_v1 }
 0x4c1   : > { %2500 = vmatpush3.bf16.msra.mxu0 %v2600_v4 }
 0x4c2   : > { %2513 = vmatprep.subr.bf16.mxu0 %v2628_v1 }
 0x57f   : > { %v1714_v6 = vpop.f32.mrb[20].mxu0 }
 0x580   : > { %v3012_v7 = vadd.f32 %v2294_v5, %v1714_v6  ;;  %v2483_v8 = vpop.f32.mrb[21].mxu0 }
 0x581   : > { %v1717_v9 = vpop.f32.mrb[22].mxu0 }
 0x582   : > { %v1909_v10 = vpack.c.bf16 %v3012_v7, %v3012_v7  ;;  %v2484_v12 = vpop.f32.mrb[23].mxu0 }
 0x584   : > { %2510 = vmatmul.mubr.msk.bf16.vlgmr.msra.gmra.mrb[8].mxu1 %vm954_vm2, %v1909_v10 }
 0x585   : > { %2535 = vmatprep.mubr.msk.bf16.mxu1 %vm2629_vm0, %v2628_v1  ;;  %2520 = vmatpush3.bf16.msra.mxu1 %v2602_v32 }
 0x586   : > { %2521 = vmatprep.subr.bf16.mxu1 %v2628_v1 }
 0x587   : > { %v1766_v14 = vpop.f32.mrb[24].mxu0 }
 0x588   : > { %v2489_v15 = vpop.f32.mrb[25].mxu0  ;;  %v1767_v17 = vadd.f32 %v1766_v14, %v1722_v13 }
 0x589   : > { %v1769_v16 = vpop.f32.mrb[26].mxu0 }
 0x58a   : > { %v2490_v18 = vpop.f32.mrb[27].mxu0  ;;  %v1821_v20 = vrot.slane %v1767_v17, %v2828_v11 }
 0x58c   : > { %v1822_v25 = vmul.f32 %v1821_v20, %v3012_v7 }
 0x58f   : > { %v1812_v21 = vpop.f32.mrb[28].mxu0 }
 0x590   : > { %v1813_v22 = vadd.f32 %v1812_v21, %v1725_v19  ;;  %v2495_v23 = vpop.f32.mrb[29].mxu0 }
 0x591   : > { %v1815_v24 = vpop.f32.mrb[30].mxu0 }
 0x592   : > { %v1826_v27 = vrot.slane %v1813_v22, %v2828_v11  ;;  %v2496_v28 = vpop.f32.mrb[31].mxu0  ;;  %v2603_v11 = vld [vmem:[%s3111_s25 + $0x8] sm:$0xff]  }
 0x593   : > { %2522 = vmatpush3.bf16.msra.mxu1 %v2603_v11 }
 0x594   : > { %v1827_v29 = vadd.f32 %v1826_v27, %v1822_v25  ;;  %2523 = vmatprep.subr.bf16.mxu1 %v2628_v1 }
 0x596   : > { %v1832_v30 = vpack.c.bf16 %v1827_v29, %v1827_v29 }
 0x597   : > { %2524 = vmatpush3.bf16.msra.mxu1 %v2604_v33 }
 0x598   : > { %2502 = vmatmul.mubr.msk.bf16.vlgmr.msra.gmra.mrb[32].mxu0 %vm954_vm2, %v1832_v30  ;;  %2525 = vmatprep.subr.bf16.mxu1 %v2628_v1 }
 0x599   : > { %2515 = vmatprep.mubr.msk.bf16.mxu0 %vm2629_vm0, %v2628_v1  ;;  %2514 = vmatpush3.bf16.msra.mxu0 %v2601_v31 }
 0x59b   : > { %2526 = vmatpush3.bf16.msra.mxu1 %v2605_v34 }
 0x59c   : > { %2527 = vmatprep.subr.bf16.mxu1 %v2628_v1 }
 0x59f   : > { %2528 = vmatpush3.bf16.msra.mxu1 %v2606_v35 }
 0x5a0   : > { %2529 = vmatprep.subr.bf16.mxu1 %v2628_v1 }
 0x5a3   : > { %2530 = vmatpush3.bf16.msra.mxu1 %v2607_v36 }
 0x5a4   : > { %2531 = vmatprep.subr.bf16.mxu1 %v2628_v1 }
 0x5a7   : > { %2532 = vmatpush3.bf16.msra.mxu1 %v2608_v53 }
 0x5a8   : > { %2533 = vmatprep.subr.bf16.mxu1 %v2628_v1 }
 0x5ab   : > { %2534 = vmatpush3.bf16.msra.mxu1 %v2609_v54 }
 0x657   : > { %v1959_v37 = vpop.f32.mrb[8].mxu1 }
 0x658   : > { %v2511_v38 = vpop.f32.mrb[9].mxu1 }
 0x659   : > { %v1962_v39 = vpop.f32.mrb[10].mxu1 }
 0x65a   : > { %v2512_v40 = vpop.f32.mrb[11].mxu1 }
 0x66b   : > { %v1889_v26 = vpop.f32.mrb[32].mxu0 }
 0x66c   : > { %v1890_v42 = vadd.f32 %v2304_v41, %v1889_v26  ;;  %v2503_v43 = vpop.f32.mrb[33].mxu0 }
 0x66d   : > { %v1892_v44 = vpop.f32.mrb[34].mxu0 }
 0x66e   : > { %v1895_v45 = vsub.f32 0.0, %v1890_v42  ;;  %v2504_v46 = vpop.f32.mrb[35].mxu0 }
 0x670   : > { %v1896_v47 = vmul.f32 1.442695, %v1895_v45 }
 0x672   : > { %2616 = vpow2.f32 %v1896_v47 }
 0x67c   : > { %v2617_v48 = vpop.eup %2616 }
 0x67d   : > { %v1898_v49 = vadd.f32 1.0, %v2617_v48 }
 0x67f   : > { %2618 = vrcp.f32 %v1898_v49 }
 0x689   : > { %v2619_v50 = vpop.eup %2618 }
 0x68a   : > { %v1901_v51 = vmul.f32 %v2619_v50, %v1890_v42 }
 0x68c   : > { %v1904_v52 = vpack.c.bf16 %v1901_v51, %v1901_v51 }
 0x68e   : > { %2516 = vmatmul.mubr.msk.bf16.vlgmr.msra.gmra.mrb[36].mxu0 %vm853_vm1, %v1904_v52 }
 0x761   : > { %v2008_v55 = vpop.f32.mrb[36].mxu0 }
 0x762   : > { %v2009_v57 = vadd.f32 %v2008_v55, %v1959_v37  ;;  %v2517_v58 = vpop.f32.mrb[37].mxu0 }
 0x763   : > { %v2011_v59 = vpop.f32.mrb[38].mxu0 }
 0x764   : > { %v2021_v60 = vadd.f32 %v2313_v56, %v2009_v57  ;;  %v2518_v1 = vpop.f32.mrb[39].mxu0 }
 0x766   : > { %2022 = vst [vmem:[%s833_s0] sm:$0xff] %v2021_v60  ;;  %v2039_v61 = vpack.c.bf16 %v2021_v60, %v2021_v60 }
 0x768   : > { %2536 = vmatmul.mubr.bf16.vlgmr.msra.gmra.mrb[12].mxu1 %v2039_v61 }
 0x83b   : > { %v2122_v62 = vpop.f32.mrb[12].mxu1 }
 0x83c   : > { %v2128_v63 = vadd.f32 %v2122_v62, %v3012_v7  ;;  %v2537_v0 = vpop.f32.mrb[13].mxu1 }
 0x83d   : > { %v2125_v2 = vpop.f32.mrb[14].mxu1 }
 0x83e   : > { %v2129_v3 = vsel %vm954_vm2, %v2128_v63, 0.0  ;;  %v2538_v4 = vpop.f32.mrb[15].mxu1 }
 0x83f   : > { %v2130_v5 = vrot.slane %v2129_v3, 4 }
 0x841   : > { %v2131_v6 = vadd.f32 %v2130_v5, %v2129_v3 }
 0x843   : > { %v2132_v8 = vrot.slane %v2131_v6, 2 }
 0x845   : > { %v2133_v9 = vadd.f32 %v2132_v8, %v2131_v6 }
 0x847   : > { %v2134_v10 = vrot.slane %v2133_v9, 1 }
 0x849   : > { %v2135_v12 = vadd.f32 %v2134_v10, %v2133_v9 }
 0x84b   : > { %v2137_v13 = vmul.f32 0.125, %v2135_v12 }
 0x84d   : > { %2139 = vst.msk [vmem:[%s836_s29] sm:$0x1] %vm2138_vm10, %v2137_v13 }
 0x84e PF: > { %s38_s7 = sadd.s32 1, %s2626_s7  }
 0x84f   : > { %p35_p4 = scmp.ge.s32.totalorder %s38_s7, 4  }
 0x851   :  { %37 = sbr.rel (!%p35_p4) target bundleno = 13 (0xd), region = 175 }

// kernel: _lambda_.3
= control target key start
LH: loop header
LB: loop body
LE: loop exit
PB: predicated region body
PF: predicated region fallthrough
CT: control target
= control target key end

     0   :  { %s4026_s6 = smov 1   ;;  %s4027_s10 = smov 2   ;;  %s4658_s0 = inlined_call_operand.smem [shape: u32[35], index: -1, kind: input, shape index: {}] }
   0x1   :  { %s4073_s5 = sld [smem:[%s4658_s0]]   ;;  %s4028_s14 = smov 3  }
   0x2   :  { %s4078_s9 = sld [smem:[%s4658_s0 + %s4026_s6]]   ;;  %s4029_s18 = smov 4  }
   0x3   :  { %s4083_s13 = sld [smem:[%s4658_s0 + %s4027_s10]]   ;;  %s4030_s22 = smov 5  }
   0x4   :  { %s4088_s17 = sld [smem:[%s4658_s0 + %s4028_s14]]   ;;  %s4031_s26 = smov 6  }
   0x5   :  { %s4093_s21 = sld [smem:[%s4658_s0 + %s4029_s18]]   ;;  %s4032_s30 = smov 7  }
   0x6   :  { %s4098_s25 = sld [smem:[%s4658_s0 + %s4030_s22]]   ;;  %s4033_s4 = smov 8  }
   0x7   :  { %4682 = sst [smem:[#allocation5_spill]] %s4073_s5  ;;  %s4034_s10 = smov 9  }
   0x8   :  { %4683 = sst [smem:[#allocation6_spill]] %s4078_s9  ;;  %s4035_s15 = smov 10  }
   0x9   :  { %4684 = sst [smem:[#allocation7_spill]] %s4083_s13  ;;  %s4036_s20 = smov 11  }
   0xa   :  { %4685 = sst [smem:[#allocation8_spill]] %s4088_s17  ;;  %s4038_s1 = smov 13  }
   0xb   :  { %s4103_s29 = sld [smem:[%s4658_s0 + %s4031_s26]]   ;;  %s4037_s26 = smov 12  }
   0xc   :  { %s4108_s3 = sld [smem:[%s4658_s0 + %s4032_s30]]   ;;  %s4039_s7 = smov 14  }
   0xd   :  { %s4113_s8 = sld [smem:[%s4658_s0 + %s4033_s4]]   ;;  %s4041_s22 = smov 16  }
   0xe   :  { %s4118_s14 = sld [smem:[%s4658_s0 + %s4034_s10]]   ;;  %s4042_s28 = smov 17  }
   0xf   :  { %s4123_s19 = sld [smem:[%s4658_s0 + %s4035_s15]]   ;;  %s4040_s15 = smov 15  }
  0x10   :  { %s4128_s24 = sld [smem:[%s4658_s0 + %s4036_s20]]  }
  0x11   :  { %s4133_s30 = sld [smem:[%s4658_s0 + %s4037_s26]]  }
  0x12   :  { %4686 = sst [smem:[#allocation9_spill]] %s4108_s3 }
  0x13   :  { %4687 = sst [smem:[#allocation10_spill]] %s4113_s8 }
  0x14   :  { %4688 = sst [smem:[#allocation11_spill]] %s4118_s14 }
  0x15   :  { %s4138_s6 = sld [smem:[%s4658_s0 + %s4038_s1]]  }
  0x16   :  { %s4143_s12 = sld [smem:[%s4658_s0 + %s4039_s7]]   ;;  %s4043_s7 = smov 18  }
  0x17   :  { %s4148_s20 = sld [smem:[%s4658_s0 + %s4040_s15]]   ;;  %s4044_s15 = smov 19  }
  0x18   :  { %s4153_s27 = sld [smem:[%s4658_s0 + %s4041_s22]]   ;;  %s4045_s22 = smov 20  }
  0x19   :  { %s4158_s4 = sld [smem:[%s4658_s0 + %s4042_s28]]   ;;  %s4046_s28 = smov 21  }
  0x1b   :  { %4689 = sst [smem:[#allocation12_spill]] %s4138_s6 }
  0x1c   :  { %4690 = sst [smem:[#allocation13_spill]] %s4143_s12 }
  0x1d   :  { %s4163_s12 = sld [smem:[%s4658_s0 + %s4043_s7]]   ;;  %s4047_s7 = smov 22  }
  0x1e   :  { %4691 = sst [smem:[#allocation14_spill]] %s4153_s27 }
  0x1f   :  { %4692 = sst [smem:[#allocation15_spill]] %s4158_s4 }
  0x20   :  { %s4168_s6 = sld [smem:[%s4658_s0 + %s4044_s15]]   ;;  %s4048_s15 = smov 23  }
  0x21   :  { %s4173_s27 = sld [smem:[%s4658_s0 + %s4045_s22]]   ;;  %s4049_s22 = smov 24  }
  0x22   :  { %s4178_s4 = sld [smem:[%s4658_s0 + %s4046_s28]]   ;;  %s4050_s28 = smov 25  }
  0x23   :  { %4693 = sst [smem:[#allocation16_spill]] %s4163_s12 }
  0x24   :  { %s4183_s12 = sld [smem:[%s4658_s0 + %s4047_s7]]   ;;  %s4051_s7 = smov 26  }
  0x26   :  { %4694 = sst [smem:[#allocation17_spill]] %s4168_s6 }
  0x27   :  { %4695 = sst [smem:[#allocation18_spill]] %s4173_s27 }
  0x28   :  { %4696 = sst [smem:[#allocation19_spill]] %s4178_s4 }
  0x29   :  { %s4188_s6 = sld [smem:[%s4658_s0 + %s4048_s15]]   ;;  %s4052_s15 = smov 27  }
  0x2a   :  { %4697 = sst [smem:[#allocation20_spill]] %s4183_s12 }
  0x2b   :  { %s4193_s27 = sld [smem:[%s4658_s0 + %s4049_s22]]   ;;  %s4053_s22 = smov 28  }
  0x2c   :  { %s4198_s4 = sld [smem:[%s4658_s0 + %s4050_s28]]   ;;  %s4054_s28 = smov 29  }
  0x2d   :  { %s4203_s12 = sld [smem:[%s4658_s0 + %s4051_s7]]   ;;  %s4055_s7 = smov 30  }
  0x2f   :  { %4698 = sst [smem:[#allocation21_spill]] %s4188_s6 }
  0x30   :  { %s4208_s6 = sld [smem:[%s4658_s0 + %s4052_s15]]   ;;  %s4056_s15 = smov 31  }
  0x31   :  { %4699 = sst [smem:[#allocation22_spill]] %s4193_s27 }
  0x32   :  { %4700 = sst [smem:[#allocation23_spill]] %s4198_s4 }
  0x33   :  { %4701 = sst [smem:[#allocation24_spill]] %s4203_s12 }
  0x34   :  { %s4213_s27 = sld [smem:[%s4658_s0 + %s4053_s22]]   ;;  %s4057_s22 = smov 32  }
  0x35   :  { %s4218_s4 = sld [smem:[%s4658_s0 + %s4054_s28]]   ;;  %s4058_s28 = smov 33  }
  0x36   :  { %4702 = sst [smem:[#allocation25_spill]] %s4208_s6 }
  0x37   :  { %s4223_s12 = sld [smem:[%s4658_s0 + %s4055_s7]]   ;;  %s4059_s7 = smov 34  }
  0x38   :  { %s4228_s6 = sld [smem:[%s4658_s0 + %s4056_s15]]  }
  0x3a   :  { %4703 = sst [smem:[#allocation26_spill]] %s4213_s27 }
  0x3b   :  { %4704 = sst [smem:[#allocation27_spill]] %s4218_s4 }
  0x3c   :  { %s4233_s27 = sld [smem:[%s4658_s0 + %s4057_s22]]  }
  0x3d   :  { %4705 = sst [smem:[#allocation28_spill]] %s4223_s12 }
  0x3e   :  { %s4238_s4 = sld [smem:[%s4658_s0 + %s4058_s28]]  }
  0x3f   :  { %s4243_s12 = sld [smem:[%s4658_s0 + %s4059_s7]]  }
  0x44   :  { %4706 = sst [smem:[#allocation29_spill]] %s4238_s4 }
  0x45   :  { %75 = vsyncpa [#allocation3], 0 }
  0x46   :  { %77 = vsyncpa [#allocation3 + $0x1], 0  ;;  %s4245_s15 = smov 0   ;;  %s4247_s16 = smov 0  }
  0x47   :  { %s4249_s18 = smov 0   ;;  %s4251_s22 = smov 0  }
  0x48 LB: > { %s4707_s3 = sld [smem:[#allocation9_spill]]  ;;  %s4266_s0 = sadd.s32 4294967295, %s4024_s22   ;;  %s4012_s15 = sphi %s4245_s15, %s4736_s15   ;;  %s4024_s22 = sphi %s4251_s22, %s4739_s22   ;;  %s4020_s18 = sphi %s4249_s18, %s4738_s18   ;;  %s4016_s16 = sphi %s4247_s16, %s4737_s16  }
  0x49   : > { %s3200_s23 = sadd.s32 4294967294, %s4024_s22   ;;  %s4270_s26 = sadd.s32 1, %s4024_s22  }
  0x4a   : > { %s777_s28 = sadd.s32 1, %s4020_s18  ;;  %s774_s1 = ssub.s32 %s4024_s22, %s4270_s26 }
  0x4b   : > { %p787_p0 = scmp.ne.s32.totalorder %s4020_s18, %s4016_s16  ;;  %p775_p1 = scmp.eq.s32.totalorder %s774_s1, 0 }
  0x4c   : > { %p788_p2 = scmp.eq.s32.totalorder %s4266_s0, 1  ;;  %p793_p3 = scmp.ne.s32.totalorder %s4016_s16, %s4012_s15 }
  0x4d   : > { %p794_p4 = scmp.eq.s32.totalorder %s3200_s23, 1  ;;  %p3203_p7 = scmp.ge.s32.totalorder %s4024_s22, 1 }
  0x4e   : > { %s4281_s2 = scalar_select %p775_p1, %s4020_s18, %s777_s28  }
  0x4f   : > { %p4283_p5 = por %p788_p2, %p787_p0  ;;  %p4287_p6 = por %p794_p4, %p793_p3 }
  0x50   : > { %p972_p8 = scmp.lt.s32.totalorder %s4024_s22, 3 }
  0x52   : > { %p973_p9 = pnand %p3203_p7, %p972_p8 }
  0x53   : > { %s4710_s17 = sld [smem:[#allocation8_spill]] (!%p973_p9)  ;;  %v3835_v0 = vld [vmem:[%s4707_s3] sm:$0xff] (!%p973_p9)   ;;  %v4060_v1 = vmov (!%p973_p9), 0.0   ;;  %s4711_s13 = sld [smem:[#allocation7_spill]] (!%p973_p9)  ;;  %v3837_v3 = vld [vmem:[%s4707_s3 + $0x8] sm:$0xff] (!%p973_p9)   ;;  %vm4061_vm0 = vmmov (!%p973_p9), 0   ;;  %v1160_v13 = vlaneseq (!%p973_p9) }
  0x54   : > { %976 = sbr.rel (%p973_p9) target bundleno = 2460 (0x99c), region = 148  ;;  %3490 = vmatprep.subr.bf16.mxu0 (!%p973_p9), %v4060_v1  ;;  %3498 = vmatprep.subr.bf16.mxu1 (!%p973_p9), %v4060_v1  ;;  %s4712_s9 = sld [smem:[#allocation6_spill]] (!%p973_p9)  ;;  %vm1179_vm1 = vcmask (!%p973_p9), 130048   ;;  %v3838_v4 = vld [vmem:[%s4098_s25] sm:$0xff] (!%p973_p9)   ;;  %vm1116_vm2 = vcmask (!%p973_p9), 261120   ;;  %v3840_v10 = vld [vmem:[%s4123_s19 + $0x8] sm:$0xff] (!%p973_p9)  }
  0x55   : > { %3491 = vmatpush3.bf16.msra.mxu0 (!%p973_p9), %v3835_v0  ;;  %3500 = vmatprep.mubr.msk.bf16.mxu1 (!%p973_p9), %vm4061_vm0, %v4060_v1  ;;  %p1078_p10 = scmp.lt.s32.totalorder (!%p973_p9), %s4266_s0, 1  ;;  %v3839_v9 = vld [vmem:[%s4123_s19] sm:$0xff] (!%p973_p9)   ;;  %s4713_s8 = sld [smem:[#allocation10_spill]] (!%p973_p9)  ;;  %v3841_v11 = vld [vmem:[%s4123_s19 + $0x10] sm:$0xff] (!%p973_p9)   ;;  %v3842_v12 = vld [vmem:[%s4123_s19 + $0x18] sm:$0xff] (!%p973_p9)   ;;  %v1161_v14 = vshrl.u32 (!%p973_p9), %v1160_v13, 7 }
  0x56   : > { %3492 = vmatprep.subr.bf16.mxu0 (!%p973_p9), %v4060_v1  ;;  %3494 = vmatprep.mubr.msk.bf16.mxu0 (!%p973_p9), %vm4061_vm0, %v4060_v1  ;;  %s4714_s5 = sld [smem:[#allocation5_spill]] (!%p973_p9)  ;;  %s3205_s1 = sshll.u32 (!%p973_p9), %s4266_s0, 1  ;;  %v1168_v15 = vld [vmem:[%s4093_s21] sm:$0x1] (!%p973_p9)  ;;  %vm1283_vm3 = vcmask (!%p973_p9), 523264   ;;  %vm1356_vm4 = vcmask (!%p973_p9), 1040384  }
  0x57   : > { %p1073_p11 = scmp.lt.s32.totalorder (!%p973_p9), %s3205_s1, 3  ;;  %v1162_v17 = vsub.s32 (!%p973_p9), 0, %v1161_v14  ;;  %v1171_v34 = vld [vmem:[%s4103_s29] sm:$0x1] (!%p973_p9)  ;;  %v3844_v53 = vld [vmem:[%s4123_s19 + $0x28] sm:$0xff] (!%p973_p9)   ;;  %v3845_v54 = vld [vmem:[%s4123_s19 + $0x30] sm:$0xff] (!%p973_p9)  }
  0x58   : > { %v3843_v50 = vld [vmem:[%s4123_s19 + $0x20] sm:$0xff] (!%p973_p9)   ;;  %vm1442_vm5 = vcmask (!%p973_p9), 1042432   ;;  %v3846_v57 = vld [vmem:[%s4123_s19 + $0x38] sm:$0xff] (!%p973_p9)   ;;  %v3848_v62 = vld [vmem:[%s4123_s19 + $0x48] sm:$0xff] (!%p973_p9)   ;;  %vm1689_vm6 = vcmask (!%p973_p9), 1046528   ;;  %vm1776_vm7 = vcmask (!%p973_p9), 1044480  }
  0x59   : > { %v3836_v2 = vld [vmem:[%s4710_s17] sm:$0xff] (!%p973_p9)   ;;  %3493 = vmatpush3.bf16.msra.mxu0 (!%p973_p9), %v3837_v3  ;;  %v3849_v63 = vld [vmem:[%s4123_s19 + $0x50] sm:$0xff] (!%p973_p9)   ;;  %v3850_v0 = vld [vmem:[%s4123_s19 + $0x58] sm:$0xff] (!%p973_p9)   ;;  %s4715_s14 = sld [smem:[#allocation11_spill]] (!%p973_p9)  ;;  %s4718_s3 = sld [smem:[#allocation15_spill]] (!%p973_p9) }
  0x5a   : > { %3499 = vmatpush3.bf16.msra.mxu1 (!%p973_p9), %v3836_v2  ;;  %3510 = vmatprep.subr.bf16.mxu0 (!%p973_p9), %v4060_v1  ;;  %v3847_v60 = vld [vmem:[%s4123_s19 + $0x40] sm:$0xff] (!%p973_p9)   ;;  %v3858_v14 = vld [vmem:[%s4123_s19 + $0xb8] sm:$0xff] (!%p973_p9)   ;;  %s4733_s4 = sld [smem:[#allocation29_spill]] (!%p973_p9) }
  0x5b   : > { %3504 = vmatprep.subr.bf16.mxu1 %v4060_v1  ;;  %s4304_s11 = scalar_select %p1078_p10, %s4266_s0, 1  ;;  %v1103_v16 = vld [vmem:[%s4713_s8] sm:$0x1] }
  0x5c   : > { %s4741_s1 = smov (!%p1073_p11, %s3205_s1), 3  ;;  %v3851_v2 = vld [vmem:[%s4123_s19 + $0x80] sm:$0xff]   ;;  %s4723_s8 = sld [smem:[#allocation25_spill]] }
  0x5d   : > { %s1083_s23 = scalar_lea.vmem %s4711_s13, %s4304_s11  ;;  %s1080_s28 = scalar_lea.vmem %s4712_s9, %s4304_s11 }
  0x5e   : > { %v1097_v5 = vld [vmem:[%s1083_s23] sm:$0x1]  ;;  %s4670_s23 = sshll.u32 %s4741_s1, 3  ;;  %s4725_s9 = sld [smem:[#allocation18_spill]] }
  0x5f   : > { %v1172_v6 = vpack.c.bf16 %v1097_v5, %v1097_v5  ;;  %v1096_v7 = vld [vmem:[%s1080_s28] sm:$0x1]  ;;  %s1076_s28 = scalar_lea.vmem %s4714_s5, %s4670_s23  ;;  %v3853_v5 = vld [vmem:[%s4123_s19 + $0x90] sm:$0xff]   ;;  %s4717_s23 = sld [smem:[#allocation13_spill]] }
  0x60   : > { %v4314_v8 = vpack.c.bf16 %v1096_v7, %v1096_v7  ;;  %v1094_v25 = vld [vmem:[%s1076_s28] sm:$0xff]  ;;  %v1095_v26 = vld [vmem:[%s1076_s28 + $0x8] sm:$0xff]  ;;  %s4716_s28 = sld [smem:[#allocation12_spill]]  ;;  %s4720_s5 = sld [smem:[#allocation14_spill]] }
  0x61   : > { %3501 = vmatmul.mubr.msk.bf16.vlgmr.msra.gmra.mrb[0].mxu1 %vm1179_vm1, %v1172_v6  ;;  %v3855_v7 = vld [vmem:[%s4123_s19 + $0xa0] sm:$0xff]   ;;  %s4726_s13 = sld [smem:[#allocation22_spill]] }
  0x62   : > { %3505 = vmatpush3.bf16.msra.mxu1 %v3838_v4  ;;  %3495 = vmatmul.mubr.msk.bf16.vlgmr.msra.gmra.mrb[0].mxu0 %vm1116_vm2, %v4314_v8  ;;  %v3852_v4 = vld [vmem:[%s4123_s19 + $0x88] sm:$0xff]  }
  0x63   : > { %3506 = vmatprep.mubr.msk.bf16.mxu1 %vm4061_vm0, %v4060_v1  ;;  %3516 = vmatprep.subr.bf16.mxu1 %v4060_v1 }
  0x64   : > { %3512 = vmatprep.mubr.msk.bf16.mxu0 %vm4061_vm0, %v4060_v1 }
  0x69   : > { %3507 = vmatmul.mubr.msk.bf16.vlgmr.msra.gmra.mrb[4].mxu1 %vm1179_vm1, %v1172_v6  ;;  %v3854_v6 = vld [vmem:[%s4123_s19 + $0x98] sm:$0xff]  }
  0x6a   : > { %3524 = vmatprep.mubr.msk.bf16.mxu1 %vm4061_vm0, %v4060_v1  ;;  %3517 = vmatpush3.bf16.msra.mxu1 %v3839_v9 }
  0x6b   : > { %3518 = vmatprep.subr.bf16.mxu1 %v4060_v1 }
  0x6e   : > { %3519 = vmatpush3.bf16.msra.mxu1 %v3840_v10  ;;  %v3856_v10 = vld [vmem:[%s4123_s19 + $0xa8] sm:$0xff]  }
  0x6f   : > { %3520 = vmatprep.subr.bf16.mxu1 %v4060_v1 }
  0x72   : > { %3521 = vmatpush3.bf16.msra.mxu1 %v3841_v11  ;;  %v3857_v11 = vld [vmem:[%s4123_s19 + $0xb0] sm:$0xff]  }
  0x73   : > { %3522 = vmatprep.subr.bf16.mxu1 %v4060_v1 }
  0x76   : > { %3523 = vmatpush3.bf16.msra.mxu1 %v3842_v12 }
  0x77   : > { %3528 = vmatprep.subr.bf16.mxu1 %v4060_v1 }
 0x134   : > { %v1217_v18 = vpop.f32.mrb[0].mxu1 }
 0x135   : > { %v3502_v19 = vpop.f32.mrb[1].mxu1  ;;  %v1154_v20 = vpop.f32.mrb[0].mxu0  ;;  %v1218_v21 = vadd.f32 %v1217_v18, %v1168_v15 }
 0x136   : > { %v1155_v22 = vadd.f32 %v1154_v20, %v1103_v16  ;;  %v1220_v23 = vpop.f32.mrb[2].mxu1  ;;  %v3496_v24 = vpop.f32.mrb[1].mxu0  ;;  %v3860_v19 = vld [vmem:[%s4123_s19 + $0xc8] sm:$0xff]   ;;  %v3861_v20 = vld [vmem:[%s4123_s19 + $0xd0] sm:$0xff]  }
 0x137   : > { %v3503_v27 = vpop.f32.mrb[3].mxu1  ;;  %v1157_v28 = vpop.f32.mrb[2].mxu0  ;;  %v1272_v31 = vrot.slane %v1218_v21, %v1162_v17  ;;  %v3862_v23 = vld [vmem:[%s4123_s19 + $0xd8] sm:$0xff]  }
 0x138   : > { %v1163_v29 = vrot.slane %v1155_v22, %v1162_v17  ;;  %v3497_v30 = vpop.f32.mrb[3].mxu0  ;;  %v3864_v28 = vld [vmem:[%s4123_s19 + $0xe8] sm:$0xff]  }
 0x139   : > { %v3866_v30 = vld [vmem:[%s4123_s19 + $0xf8] sm:$0xff]  }
 0x13a   : > { %v1164_v32 = vadd.f32 %v1163_v29, %v1094_v25  ;;  %v1165_v33 = vadd.f32 %v1163_v29, %v1095_v26  ;;  %v3863_v26 = vld [vmem:[%s4123_s19 + $0xe0] sm:$0xff]   ;;  %v3865_v29 = vld [vmem:[%s4123_s19 + $0xf0] sm:$0xff]  }
 0x13c   : > { %v1263_v35 = vpop.f32.mrb[4].mxu1  ;;  %v1273_v36 = vmul.f32 %v1272_v31, %v1164_v32  ;;  %v1274_v37 = vmul.f32 %v1272_v31, %v1165_v33 }
 0x13d   : > { %v1264_v38 = vadd.f32 %v1263_v35, %v1171_v34  ;;  %v3508_v39 = vpop.f32.mrb[5].mxu1 }
 0x13e   : > { %v1266_v40 = vpop.f32.mrb[6].mxu1 }
 0x13f   : > { %v1278_v41 = vrot.slane %v1264_v38, %v1162_v17  ;;  %v3509_v42 = vpop.f32.mrb[7].mxu1  ;;  %v3859_v17 = vld [vmem:[%s4123_s19 + $0xc0] sm:$0xff]  }
 0x140   : > { %v3218_v38 = vld [vmem:[%s4128_s24] ss:$0 sm:$0xff] }
 0x141   : > { %v4345_v43 = vadd.f32 %v1278_v41, %v1273_v36  ;;  %v4347_v44 = vadd.f32 %v1278_v41, %v1274_v37  ;;  %v3867_v37 = vld [vmem:[%s4715_s14] sm:$0xff]  }
 0x143   : > { %v1284_v45 = vsel %vm1283_vm3, %v4345_v43, 0.0  ;;  %v1357_v46 = vrot.slane %v4345_v43, 7  ;;  %v1358_v47 = vrot.slane %v4347_v44, 7  ;;  %v1287_v52 = vsel %vm1283_vm3, %v4347_v44, 0.0 }
 0x144   : > { %1285 = vadd.xlane.f32.xlu0 %v1284_v45  ;;  %v1443_v55 = vrot.slane %v4345_v43, 5  ;;  %v1444_v56 = vrot.slane %v4347_v44, 5  ;;  %v1618_v9 = vpack.c.bf16 %v4347_v44, %v4345_v43  ;;  %v1690_v12 = vrot.slane %v4345_v43, 1 }
 0x145   : > { %v1359_v48 = vsel %vm1356_vm4, %v1357_v46, %v1358_v47  ;;  %v1362_v49 = vsel %vm1356_vm4, 0.0, %v1357_v46  ;;  %v1691_v13 = vrot.slane %v4347_v44, 1  ;;  %v1777_v21 = vrot.slane %v4345_v43, 3 }
 0x146   : > { %v1371_v51 = vpack.c.bf16 %v1359_v48, %v1362_v49  ;;  %v1445_v58 = vsel %vm1442_vm5, %v1443_v55, %v1444_v56  ;;  %v1448_v59 = vsel %vm1442_vm5, 0.0, %v1443_v55  ;;  %v1538_v3 = vpack.c.bf16 %v1362_v49, %v4060_v1 }
 0x147   : > { %v1458_v61 = vpack.c.bf16 %v1445_v58, %v1448_v59  ;;  %v1692_v15 = vsel %vm1689_vm6, %v1690_v12, %v1691_v13  ;;  %v1695_v16 = vsel %vm1689_vm6, %v1691_v13, 0.0  ;;  %v1778_v22 = vrot.slane %v4347_v44, 3 }
 0x148   : > { %3525 = vmatmul.mubr.msk.bf16.vlgmr.msra.gmra.mrb[8].mxu1 %vm1283_vm3, %v1371_v51  ;;  %1288 = vadd.xlane.f32.xlu0 %v1287_v52  ;;  %v1705_v18 = vpack.c.bf16 %v1695_v16, %v1692_v15  ;;  %v1872_v31 = vpack.c.bf16 %v4060_v1, %v1695_v16  ;;  %v1352_v39 = vadd.f32 %v3218_v38, %v4345_v43  ;;  %v3302_v16 = vld [vmem:[%s4133_s30] ss:$0 sm:$0xff] }
 0x149   : > { %3529 = vmatpush3.bf16.msra.mxu1 %v3843_v50  ;;  %3536 = vmatprep.mubr.msk.bf16.mxu1 %vm4061_vm0, %v4060_v1  ;;  %v1779_v24 = vsel %vm1776_vm7, %v1777_v21, %v1778_v22  ;;  %v1782_v25 = vsel %vm1776_vm7, %v1778_v22, 0.0  ;;  %v1353_v45 = vadd.f32 %v3218_v38, %v4347_v44 }
 0x14a   : > { %3530 = vmatprep.subr.bf16.mxu1 %v4060_v1  ;;  %v1792_v27 = vpack.c.bf16 %v1782_v25, %v1779_v24  ;;  %v3872_v24 = vld [vmem:[%s4717_s23] sm:$0xff]  }
 0x14d   : > { %3531 = vmatpush3.bf16.msra.mxu1 %v3844_v53 }
 0x14e   : > { %3532 = vmatprep.subr.bf16.mxu1 %v4060_v1 }
 0x151   : > { %3533 = vmatpush3.bf16.msra.mxu1 %v3845_v54 }
 0x152   : > { %3534 = vmatprep.subr.bf16.mxu1 %v4060_v1 }
 0x155   : > { %3535 = vmatpush3.bf16.msra.mxu1 %v3846_v57 }
 0x156   : > { %3540 = vmatprep.subr.bf16.mxu1 %v4060_v1 }
 0x158   : > { %3537 = vmatmul.mubr.msk.bf16.vlgmr.msra.gmra.mrb[8].mxu1 %vm1283_vm3, %v1458_v61 }
 0x159   : > { %3541 = vmatpush3.bf16.msra.mxu1 %v3847_v60  ;;  %3548 = vmatprep.mubr.msk.bf16.mxu1 %vm4061_vm0, %v4060_v1 }
 0x15a   : > { %3542 = vmatprep.subr.bf16.mxu1 %v4060_v1 }
 0x15d   : > { %3543 = vmatpush3.bf16.msra.mxu1 %v3848_v62 }
 0x15e   : > { %3544 = vmatprep.subr.bf16.mxu1 %v4060_v1 }
 0x161   : > { %3545 = vmatpush3.bf16.msra.mxu1 %v3849_v63 }
 0x162   : > { %3546 = vmatprep.subr.bf16.mxu1 %v4060_v1 }
 0x165   : > { %3547 = vmatpush3.bf16.msra.mxu1 %v3850_v0 }
 0x166   : > { %3552 = vmatprep.subr.bf16.mxu1 %v4060_v1 }
 0x168   : > { %3549 = vmatmul.mubr.msk.bf16.vlgmr.msra.gmra.mrb[8].mxu1 %vm1283_vm3, %v1538_v3 }
 0x169   : > { %3553 = vmatpush3.bf16.msra.mxu1 %v3851_v2  ;;  %3560 = vmatprep.mubr.msk.bf16.mxu1 %vm4061_vm0, %v4060_v1 }
 0x16a   : > { %3554 = vmatprep.subr.bf16.mxu1 %v4060_v1 }
 0x16d   : > { %3555 = vmatpush3.bf16.msra.mxu1 %v3852_v4  ;;  %v3869_v4 = vld [vmem:[%s4148_s20 + $0x8] sm:$0xff]  }
 0x16e   : > { %3556 = vmatprep.subr.bf16.mxu1 %v4060_v1 }
 0x171   : > { %3557 = vmatpush3.bf16.msra.mxu1 %v3853_v5  ;;  %v3870_v5 = vld [vmem:[%s4148_s20 + $0x10] sm:$0xff]  }
 0x172   : > { %3558 = vmatprep.subr.bf16.mxu1 %v4060_v1 }
 0x175   : > { %3559 = vmatpush3.bf16.msra.mxu1 %v3854_v6  ;;  %v3871_v6 = vld [vmem:[%s4148_s20 + $0x18] sm:$0xff]  }
 0x176   : > { %3564 = vmatprep.subr.bf16.mxu1 %v4060_v1 }
 0x178   : > { %3561 = vmatmul.mubr.msk.bf16.vlgmr.msra.gmra.mrb[8].mxu1 %vm1283_vm3, %v1618_v9 }
 0x179   : > { %3565 = vmatpush3.bf16.msra.mxu1 %v3855_v7  ;;  %3572 = vmatprep.mubr.msk.bf16.mxu1 %vm4061_vm0, %v4060_v1 }
 0x17a   : > { %3566 = vmatprep.subr.bf16.mxu1 %v4060_v1 }
 0x17d   : > { %3567 = vmatpush3.bf16.msra.mxu1 %v3856_v10 }
 0x17e   : > { %3568 = vmatprep.subr.bf16.mxu1 %v4060_v1 }
 0x181   : > { %3569 = vmatpush3.bf16.msra.mxu1 %v3857_v11 }
 0x182   : > { %3570 = vmatprep.subr.bf16.mxu1 %v4060_v1 }
 0x185   : > { %3571 = vmatpush3.bf16.msra.mxu1 %v3858_v14 }
 0x186   : > { %3576 = vmatprep.subr.bf16.mxu1 %v4060_v1 }
 0x188   : > { %3573 = vmatmul.mubr.msk.bf16.vlgmr.msra.gmra.mrb[8].mxu1 %vm1283_vm3, %v1705_v18 }
 0x189   : > { %3577 = vmatpush3.bf16.msra.mxu1 %v3859_v17  ;;  %3584 = vmatprep.mubr.msk.bf16.mxu1 %vm4061_vm0, %v4060_v1 }
 0x18a   : > { %3578 = vmatprep.subr.bf16.mxu1 %v4060_v1 }
 0x18d   : > { %3579 = vmatpush3.bf16.msra.mxu1 %v3860_v19 }
 0x18e   : > { %3580 = vmatprep.subr.bf16.mxu1 %v4060_v1 }
 0x191   : > { %3581 = vmatpush3.bf16.msra.mxu1 %v3861_v20  ;;  %v3303_v20 = vld [vmem:[%s4716_s28] ss:$0 sm:$0xff]  ;;  %s4719_s28 = sld [smem:[#allocation21_spill]] }
 0x192   : > { %3582 = vmatprep.subr.bf16.mxu1 %v4060_v1 }
 0x195   : > { %3583 = vmatpush3.bf16.msra.mxu1 %v3862_v23 }
 0x196   : > { %3588 = vmatprep.subr.bf16.mxu1 %v4060_v1 }
 0x198   : > { %3585 = vmatmul.mubr.msk.bf16.vlgmr.msra.gmra.mrb[8].mxu1 %vm1283_vm3, %v1792_v27  ;;  %v3874_v27 = vld [vmem:[%s4717_s23 + $0x10] sm:$0xff]  }
 0x199   : > { %3589 = vmatpush3.bf16.msra.mxu1 %v3863_v26  ;;  %3596 = vmatprep.mubr.msk.bf16.mxu1 %vm4061_vm0, %v4060_v1  ;;  %v3873_v26 = vld [vmem:[%s4717_s23 + $0x8] sm:$0xff]  }
 0x19a   : > { %3590 = vmatprep.subr.bf16.mxu1 %v4060_v1 }
 0x19d   : > { %3591 = vmatpush3.bf16.msra.mxu1 %v3864_v28  ;;  %v3875_v28 = vld [vmem:[%s4717_s23 + $0x18] sm:$0xff]  }
 0x19e   : > { %3592 = vmatprep.subr.bf16.mxu1 %v4060_v1 }
 0x1a1   : > { %3593 = vmatpush3.bf16.msra.mxu1 %v3865_v29  ;;  %v3876_v29 = vld [vmem:[%s4718_s3] sm:$0xff]  }
 0x1a2   : > { %3594 = vmatprep.subr.bf16.mxu1 %v4060_v1 }
 0x1a5   : > { %3595 = vmatpush3.bf16.msra.mxu1 %v3866_v30  ;;  %v3877_v30 = vld [vmem:[%s4718_s3 + $0x8] sm:$0xff]  }
 0x1a6   : > { %3684 = vmatprep.subr.bf16.mxu1 %v4060_v1 }
 0x1a8   : > { %3597 = vmatmul.mubr.msk.bf16.vlgmr.msra.gmra.mrb[8].mxu1 %vm1283_vm3, %v1872_v31  ;;  %v3878_v31 = vld [vmem:[%s4718_s3 + $0x10] sm:$0xff]  }
 0x1a9   : > { %3692 = vmatprep.mubr.msk.bf16.mxu1 %vm4061_vm0, %v4060_v1 }
 0x1d1   : > { %v1286_v32 = vpop.xlane.xlu0 %1285 }
 0x1d2   : > { %v1291_v34 = vmul.f32 0.015625, %v1286_v32  ;;  %v3879_v32 = vld [vmem:[%s4718_s3 + $0x18] sm:$0xff]   ;;  %s4721_s3 = sld [smem:[#allocation17_spill]] }
 0x1d5   : > { %v1289_v33 = vpop.xlane.xlu0 %1288 }
 0x1d6   : > { %v1292_v35 = vmul.f32 0.015625, %v1289_v33  ;;  %v3881_v33 = vld [vmem:[%s4719_s28] sm:$0xff]  }
 0x1d7   : > { %3685 = vmatpush3.bf16.msra.mxu1 %v3881_v33  ;;  %v3365_v33 = vld [vmem:[%s4726_s13] ss:$0 sm:$0xff]  ;;  %s4727_s13 = sld [smem:[#allocation20_spill]] }
 0x1d8   : > { %v1293_v36 = vpack.c.bf16 %v1292_v35, %v1291_v34  ;;  %3686 = vmatprep.subr.bf16.mxu1 %v4060_v1  ;;  %v3883_v34 = vld [vmem:[%s4719_s28 + $0x8] sm:$0xff]  }
 0x1da   : > { %3511 = vmatpush3.bf16.msra.mxu0 %v1293_v36 }
 0x1db   : > { %3600 = vmatprep.subr.bf16.mxu0 %v4060_v1  ;;  %3687 = vmatpush3.bf16.msra.mxu1 %v3883_v34 }
 0x1dc   : > { %3688 = vmatprep.subr.bf16.mxu1 %v4060_v1 }
 0x1dd   : > { %3513 = vmatmul.mubr.msk.bf16.vlgmr.msra.gmra.mrb[4].mxu0 %vm1179_vm1, %v3867_v37 }
 0x1de   : > { %3608 = vmatprep.mubr.msk.bf16.mxu0 %vm4061_vm0, %v4060_v1 }
 0x27b   : > { %v1934_v40 = vpop.f32.mrb[8].mxu1 }
 0x27c   : > { %v3732_v41 = vadd.f32 %v1934_v40, %v1352_v39  ;;  %v3598_v42 = vpop.f32.mrb[9].mxu1  ;;  %v3314_v40 = vld [vmem:[%s4720_s5] ss:$0 sm:$0xff]  ;;  %s4722_s5 = sld [smem:[#allocation16_spill]] }
 0x27d   : > { %v1937_v46 = vpop.f32.mrb[10].mxu1 }
 0x27e   : > { %v3733_v47 = vadd.f32 %v1937_v46, %v1353_v45  ;;  %v3599_v48 = vpop.f32.mrb[11].mxu1  ;;  %v1945_v49 = vsel %vm1283_vm3, %v3732_v41, 0.0 }
 0x27f   : > { %1946 = vadd.xlane.f32.xlu1 %v1945_v49 }
 0x280   : > { %v1948_v50 = vsel %vm1283_vm3, %v3733_v47, 0.0 }
 0x283   : > { %1949 = vadd.xlane.f32.xlu1 %v1948_v50 }
 0x2b0   : > { %v1336_v51 = vpop.f32.mrb[4].mxu0 }
 0x2b1   : > { %v3514_v52 = vpop.f32.mrb[5].mxu0  ;;  %v1343_v54 = vadd.f32 %v1336_v51, %v4345_v43 }
 0x2b2   : > { %v1339_v53 = vpop.f32.mrb[6].mxu0 }
 0x2b3   : > { %v1344_v55 = vadd.f32 %v1339_v53, %v4347_v44  ;;  %v3515_v56 = vpop.f32.mrb[7].mxu0  ;;  %v3868_v44 = vld [vmem:[%s4148_s20] sm:$0xff]  }
 0x2b4   : > { %3601 = vmatpush3.bf16.msra.mxu0 %v3868_v44  ;;  %v3887_v44 = vld [vmem:[%s4719_s28 + $0x18] sm:$0xff]  }
 0x2b5   : > { %v1995_v57 = vpack.c.bf16 %v1344_v55, %v1343_v54  ;;  %3602 = vmatprep.subr.bf16.mxu0 %v4060_v1 }
 0x2b8   : > { %3603 = vmatpush3.bf16.msra.mxu0 %v3869_v4  ;;  %v3315_v4 = vld [vmem:[%s4722_s5] ss:$0 sm:$0xff]  ;;  %s4724_s5 = sld [smem:[#allocation19_spill]] }
 0x2b9   : > { %3604 = vmatprep.subr.bf16.mxu0 %v4060_v1 }
 0x2bc   : > { %3605 = vmatpush3.bf16.msra.mxu0 %v3870_v5 }
 0x2bd   : > { %3606 = vmatprep.subr.bf16.mxu0 %v4060_v1 }
 0x2c0   : > { %3607 = vmatpush3.bf16.msra.mxu0 %v3871_v6 }
 0x2c1   : > { %3612 = vmatprep.subr.bf16.mxu0 %v4060_v1 }
 0x30c   : > { %v1947_v58 = vpop.xlane.xlu1 %1946 }
 0x30d   : > { %v1951_v59 = vmul.f32 0.015625, %v1947_v58 }
 0x30f   : > { %v1953_v60 = vsub.f32 %v3732_v41, %v1951_v59 }
 0x310   : > { %v1950_v61 = vpop.xlane.xlu1 %1949 }
 0x311   : > { %v1952_v62 = vmul.f32 0.015625, %v1950_v61  ;;  %v1955_v63 = vmul.f32 %v1953_v60, %v1953_v60 }
 0x313   : > { %v1954_v0 = vsub.f32 %v3733_v47, %v1952_v62  ;;  %v1957_v2 = vsel %vm1283_vm3, %v1955_v63, 0.0  ;;  %v3880_v62 = vld [vmem:[%s4721_s3] sm:$0xff]  }
 0x314   : > { %1958 = vadd.xlane.f32.xlu0 %v1957_v2  ;;  %v3884_v2 = vld [vmem:[%s4721_s3 + $0x10] sm:$0xff]  }
 0x315   : > { %v1956_v3 = vmul.f32 %v1954_v0, %v1954_v0 }
 0x317   : > { %v1960_v43 = vsel %vm1283_vm3, %v1956_v3, 0.0  ;;  %v3885_v3 = vld [vmem:[%s4719_s28 + $0x10] sm:$0xff]  }
 0x318   : > { %1961 = vadd.xlane.f32.xlu1 %v1960_v43  ;;  %3689 = vmatpush3.bf16.msra.mxu1 %v3885_v3  ;;  %v3886_v43 = vld [vmem:[%s4721_s3 + $0x18] sm:$0xff]  }
 0x319   : > { %3690 = vmatprep.subr.bf16.mxu1 %v4060_v1 }
 0x31c   : > { %3691 = vmatpush3.bf16.msra.mxu1 %v3887_v44 }
 0x31d   : > { %3712 = vmatprep.subr.bf16.mxu1 %v4060_v1 }
 0x3a1   : > { %v1959_v7 = vpop.xlane.xlu0 %1958 }
 0x3a2   : > { %v1963_v9 = vmul.f32 0.015625, %v1959_v7 }
 0x3a4   : > { %v1965_v10 = vadd.f32 1e-05, %v1963_v9 }
 0x3a5   : > { %v1962_v11 = vpop.xlane.xlu1 %1961 }
 0x3a6   : > { %3910 = vrsqrt.f32 %v1965_v10  ;;  %v1964_v12 = vmul.f32 0.015625, %v1962_v11 }
 0x3a8   : > { %v1966_v13 = vadd.f32 1e-05, %v1964_v12  ;;  %v3888_v12 = vld [vmem:[%s4723_s8] sm:$0xff]  }
 0x3aa   : > { %3912 = vrsqrt.f32 %v1966_v13 }
 0x3b0   : > { %v3911_v14 = vpop.eup %3910 }
 0x3b1   : > { %v1969_v15 = vmul.f32 %v3911_v14, %v1953_v60 }
 0x3b3   : > { %v1977_v18 = vmul.f32 %v3302_v16, %v1969_v15 }
 0x3b4   : > { %v3913_v17 = vpop.eup %3912 }
 0x3b5   : > { %v1970_v19 = vmul.f32 %v3913_v17, %v1954_v0  ;;  %v1985_v22 = vadd.f32 %v3303_v20, %v1977_v18  ;;  %v3882_v0 = vld [vmem:[%s4721_s3 + $0x8] sm:$0xff]  }
 0x3b6   : > { %v3889_v18 = vld [vmem:[%s4723_s8 + $0x8] sm:$0xff]  }
 0x3b7   : > { %v1978_v21 = vmul.f32 %v3302_v16, %v1970_v19 }
 0x3b9   : > { %v1986_v23 = vadd.f32 %v3303_v20, %v1978_v21  ;;  %v3890_v21 = vld [vmem:[%s4723_s8 + $0x10] sm:$0xff]  }
 0x3bb   : > { %v2004_v25 = vpack.c.bf16 %v1986_v23, %v1985_v22 }
 0x3bd   : > { %3609 = vmatmul.mubr.msk.bf16.vlgmr.msra.gmra.mrb[8].mxu0 %vm1283_vm3, %v2004_v25 }
 0x3be   : > { %3613 = vmatpush3.bf16.msra.mxu0 %v3872_v24  ;;  %3620 = vmatprep.mubr.msk.bf16.mxu0 %vm4061_vm0, %v4060_v1  ;;  %v3891_v24 = vld [vmem:[%s4723_s8 + $0x18] sm:$0xff]  }
 0x3bf   : > { %3614 = vmatprep.subr.bf16.mxu0 %v4060_v1 }
 0x3c2   : > { %3615 = vmatpush3.bf16.msra.mxu0 %v3873_v26 }
 0x3c3   : > { %3616 = vmatprep.subr.bf16.mxu0 %v4060_v1 }
 0x3c6   : > { %3617 = vmatpush3.bf16.msra.mxu0 %v3874_v27 }
 0x3c7   : > { %3618 = vmatprep.subr.bf16.mxu0 %v4060_v1 }
 0x3ca   : > { %3619 = vmatpush3.bf16.msra.mxu0 %v3875_v28  ;;  %v3892_v28 = vld [vmem:[%s4724_s5] sm:$0xff]  }
 0x3cb   : > { %3624 = vmatprep.subr.bf16.mxu0 %v4060_v1 }
 0x3cd   : > { %3621 = vmatmul.mubr.msk.bf16.vlgmr.msra.gmra.mrb[12].mxu0 %vm1283_vm3, %v1995_v57 }
 0x3ce   : > { %3632 = vmatprep.mubr.msk.bf16.mxu0 %vm4061_vm0, %v4060_v1  ;;  %3625 = vmatpush3.bf16.msra.mxu0 %v3876_v29  ;;  %v3893_v29 = vld [vmem:[%s4724_s5 + $0x8] sm:$0xff]  }
 0x3cf   : > { %3626 = vmatprep.subr.bf16.mxu0 %v4060_v1 }
 0x3d2   : > { %3627 = vmatpush3.bf16.msra.mxu0 %v3877_v30  ;;  %v3894_v30 = vld [vmem:[%s4724_s5 + $0x10] sm:$0xff]  }
 0x3d3   : > { %3628 = vmatprep.subr.bf16.mxu0 %v4060_v1 }
 0x3d6   : > { %3629 = vmatpush3.bf16.msra.mxu0 %v3878_v31  ;;  %v3895_v31 = vld [vmem:[%s4724_s5 + $0x18] sm:$0xff]  }
 0x3d7   : > { %3630 = vmatprep.subr.bf16.mxu0 %v4060_v1 }
 0x3da   : > { %3631 = vmatpush3.bf16.msra.mxu0 %v3879_v32  ;;  %v3321_v32 = vld [vmem:[%s4725_s9] ss:$0 sm:$0xff] }
 0x3db   : > { %3636 = vmatprep.subr.bf16.mxu0 %v4060_v1 }
 0x490   : > { %v2066_v35 = vpop.f32.mrb[8].mxu0 }
 0x491   : > { %v3610_v36 = vpop.f32.mrb[9].mxu0 }
 0x492   : > { %v2069_v37 = vpop.f32.mrb[10].mxu0 }
 0x493   : > { %v3611_v38 = vpop.f32.mrb[11].mxu0 }
 0x4a0   : > { %v2134_v39 = vpop.f32.mrb[12].mxu0 }
 0x4a1   : > { %v2135_v41 = vadd.f32 %v2134_v39, %v2066_v35  ;;  %v3622_v42 = vpop.f32.mrb[13].mxu0 }
 0x4a2   : > { %v2137_v45 = vpop.f32.mrb[14].mxu0 }
 0x4a3   : > { %v2148_v46 = vadd.f32 %v3314_v40, %v2135_v41  ;;  %v2138_v47 = vadd.f32 %v2137_v45, %v2069_v37  ;;  %v3623_v48 = vpop.f32.mrb[15].mxu0 }
 0x4a5   : > { %v2150_v49 = vsub.f32 0.0, %v2148_v46  ;;  %v2149_v50 = vadd.f32 %v3314_v40, %v2138_v47 }
 0x4a7   : > { %v2152_v51 = vmul.f32 1.442695, %v2150_v49  ;;  %v2151_v52 = vsub.f32 0.0, %v2149_v50 }
 0x4a9   : > { %3914 = vpow2.f32 %v2152_v51  ;;  %v2154_v53 = vmul.f32 1.442695, %v2151_v52 }
 0x4ab   : > { %3916 = vpow2.f32 %v2154_v53 }
 0x4b3   : > { %v3915_v54 = vpop.eup %3914 }
 0x4b4   : > { %v2156_v55 = vadd.f32 1.0, %v3915_v54 }
 0x4b5   : > { %v3917_v56 = vpop.eup %3916 }
 0x4b6   : > { %3918 = vrcp.f32 %v2156_v55  ;;  %v2157_v57 = vadd.f32 1.0, %v3917_v56 }
 0x4b8   : > { %3920 = vrcp.f32 %v2157_v57 }
 0x4c0   : > { %v3919_v58 = vpop.eup %3918 }
 0x4c1   : > { %v2162_v60 = vmul.f32 %v3919_v58, %v2148_v46 }
 0x4c2   : > { %v3921_v59 = vpop.eup %3920 }
 0x4c3   : > { %v2163_v61 = vmul.f32 %v3921_v59, %v2149_v50 }
 0x4c5   : > { %v2172_v63 = vpack.c.bf16 %v2163_v61, %v2162_v60 }
 0x4c7   : > { %3633 = vmatmul.mubr.msk.bf16.vlgmr.msra.gmra.mrb[16].mxu0 %vm1283_vm3, %v2172_v63 }
 0x4c8   : > { %3637 = vmatpush3.bf16.msra.mxu0 %v3880_v62  ;;  %3644 = vmatprep.mubr.msk.bf16.mxu0 %vm4061_vm0, %v4060_v1 }
 0x4c9   : > { %3638 = vmatprep.subr.bf16.mxu0 %v4060_v1 }
 0x4cc   : > { %3639 = vmatpush3.bf16.msra.mxu0 %v3882_v0 }
 0x4cd   : > { %3640 = vmatprep.subr.bf16.mxu0 %v4060_v1 }
 0x4d0   : > { %3641 = vmatpush3.bf16.msra.mxu0 %v3884_v2 }
 0x4d1   : > { %3642 = vmatprep.subr.bf16.mxu0 %v4060_v1 }
 0x4d4   : > { %3643 = vmatpush3.bf16.msra.mxu0 %v3886_v43 }
 0x4d5   : > { %3648 = vmatprep.subr.bf16.mxu0 %v4060_v1 }
 0x59a   : > { %v2241_v5 = vpop.f32.mrb[16].mxu0 }
 0x59b   : > { %v2242_v6 = vadd.f32 %v3315_v4, %v2241_v5  ;;  %v3634_v7 = vpop.f32.mrb[17].mxu0 }
 0x59c   : > { %v2244_v9 = vpop.f32.mrb[18].mxu0 }
 0x59d   : > { %v2245_v10 = vadd.f32 %v3315_v4, %v2244_v9  ;;  %v3635_v11 = vpop.f32.mrb[19].mxu0  ;;  %v2793_v13 = vsel %vm1283_vm3, %v2242_v6, 0.0 }
 0x59f   : > { %v4503_v14 = vpack.c.bf16 %v2245_v10, %v2242_v6  ;;  %v2794_v15 = vsel %vm1283_vm3, %v2245_v10, 0.0 }
 0x5a0   : > { %v2795_v16 = vadd.f32 %v2794_v15, %v2793_v13 }
 0x5a1   : > { %3645 = vmatmul.mubr.msk.bf16.vlgmr.msra.gmra.mrb[20].mxu0 %vm1283_vm3, %v4503_v14  ;;  %3693 = vmatmul.mubr.msk.bf16.vlgmr.msra.gmra.mrb[12].mxu1 %vm1283_vm3, %v4503_v14 }
 0x5a2   : > { %v2796_v17 = vrot.slane %v2795_v16, 4  ;;  %3713 = vmatpush3.bf16.msra.mxu1 %v3888_v12  ;;  %3720 = vmatprep.mubr.msk.bf16.mxu1 %vm4061_vm0, %v4060_v1  ;;  %v3896_v12 = vld [vmem:[%s4721_s3 + $0x20] sm:$0xff]  }
 0x5a3   : > { %3714 = vmatprep.subr.bf16.mxu1 %v4060_v1  ;;  %3656 = vmatprep.mubr.msk.bf16.mxu0 %vm4061_vm0, %v4060_v1 }
 0x5a4   : > { %v2797_v19 = vadd.f32 %v2796_v17, %v2795_v16  ;;  %3649 = vmatpush3.bf16.msra.mxu0 %v3892_v28  ;;  %v3897_v16 = vld [vmem:[%s4721_s3 + $0x28] sm:$0xff]   ;;  %v3898_v17 = vld [vmem:[%s4721_s3 + $0x30] sm:$0xff]  }
 0x5a5   : > { %3650 = vmatprep.subr.bf16.mxu0 %v4060_v1 }
 0x5a6   : > { %v2798_v20 = vrot.slane %v2797_v19, 2  ;;  %3715 = vmatpush3.bf16.msra.mxu1 %v3889_v18  ;;  %v3899_v18 = vld [vmem:[%s4721_s3 + $0x38] sm:$0xff]   ;;  %s4675_s3 = sand.u32 1, %s4016_s16  }
 0x5a7   : > { %3716 = vmatprep.subr.bf16.mxu1 %v4060_v1  ;;  %s3204_s8 = sshll.u32 %s4675_s3, 5  ;;  %s4728_s3 = sld [smem:[#allocation23_spill]] }
 0x5a8   : > { %v2799_v22 = vadd.f32 %v2798_v20, %v2797_v19  ;;  %3651 = vmatpush3.bf16.msra.mxu0 %v3893_v29  ;;  %v3900_v19 = vld [vmem:[%s4724_s5 + $0x20] sm:$0xff]   ;;  %v3901_v20 = vld [vmem:[%s4724_s5 + $0x28] sm:$0xff]   ;;  %s4566_s14 = scalar_lea.vmem [#allocation2], %s3204_s8  ;;  %s4729_s8 = sld [smem:[#allocation26_spill]] }
 0x5a9   : > { %3652 = vmatprep.subr.bf16.mxu0 %v4060_v1  ;;  %v3342_v29 = vld [vmem:[%s4725_s9 + $0x1] ss:$0 sm:$0xff] }
 0x5aa   : > { %v2800_v23 = vrot.slane %v2799_v22, 1  ;;  %3717 = vmatpush3.bf16.msra.mxu1 %v3890_v21  ;;  %v3902_v21 = vld [vmem:[%s4724_s5 + $0x30] sm:$0xff]  }
 0x5ab   : > { %3718 = vmatprep.subr.bf16.mxu1 %v4060_v1 }
 0x5ac   : > { %v2801_v25 = vadd.f32 %v2800_v23, %v2799_v22  ;;  %3653 = vmatpush3.bf16.msra.mxu0 %v3894_v30  ;;  %v3903_v22 = vld [vmem:[%s4724_s5 + $0x38] sm:$0xff]   ;;  %s4730_s5 = sld [smem:[#allocation28_spill]] }
 0x5ad   : > { %3654 = vmatprep.subr.bf16.mxu0 %v4060_v1 }
 0x5ae   : > { %v2803_v26 = vmul.f32 0.0625, %v2801_v25  ;;  %3719 = vmatpush3.bf16.msra.mxu1 %v3891_v24 }
 0x5b0   : > { %v2812_v27 = vpack.c.bf16 %v2803_v26, %v2803_v26  ;;  %3655 = vmatpush3.bf16.msra.mxu0 %v3895_v31 }
 0x5b1   : > { %3660 = vmatprep.subr.bf16.mxu0 %v4060_v1 }
 0x5b2   : > { %3721 = vmatmul.mubr.msk.bf16.vlgmr.msra.gmra.mrb[16].mxu1 %vm1283_vm3, %v2812_v27 }
 0x674   : > { %v2325_v34 = vpop.f32.mrb[20].mxu0  ;;  %v2690_v35 = vpop.f32.mrb[12].mxu1 }
 0x675   : > { %v2326_v36 = vadd.f32 %v3321_v32, %v2325_v34  ;;  %v2691_v37 = vadd.f32 %v3365_v33, %v2690_v35  ;;  %v3646_v38 = vpop.f32.mrb[21].mxu0  ;;  %v3694_v39 = vpop.f32.mrb[13].mxu1 }
 0x676   : > { %v2328_v40 = vpop.f32.mrb[22].mxu0  ;;  %v2693_v41 = vpop.f32.mrb[14].mxu1 }
 0x677   : > { %v2332_v42 = vsub.f32 0.0, %v2326_v36  ;;  %v2697_v45 = vsub.f32 0.0, %v2691_v37  ;;  %v2329_v46 = vadd.f32 %v3321_v32, %v2328_v40  ;;  %v2694_v47 = vadd.f32 %v3365_v33, %v2693_v41  ;;  %v3647_v48 = vpop.f32.mrb[23].mxu0  ;;  %v3695_v49 = vpop.f32.mrb[15].mxu1 }
 0x679   : > { %v2334_v50 = vmul.f32 1.442695, %v2332_v42  ;;  %v2699_v51 = vmul.f32 1.442695, %v2697_v45  ;;  %v2333_v52 = vsub.f32 0.0, %v2329_v46  ;;  %v2698_v53 = vsub.f32 0.0, %v2694_v47 }
 0x67b   : > { %3922 = vpow2.f32 %v2334_v50  ;;  %v2336_v54 = vmul.f32 1.442695, %v2333_v52  ;;  %v2701_v55 = vmul.f32 1.442695, %v2698_v53  ;;  %v3904_v50 = vld [vmem:[%s4728_s3] sm:$0xff]   ;;  %v3905_v52 = vld [vmem:[%s4728_s3 + $0x8] sm:$0xff]  }
 0x67c   : > { %3924 = vpow2.f32 %v2699_v51  ;;  %v3906_v53 = vld [vmem:[%s4729_s8] sm:$0xff]   ;;  %s4731_s3 = sld [smem:[#allocation24_spill]] }
 0x67d   : > { %3926 = vpow2.f32 %v2336_v54  ;;  %v3907_v54 = vld [vmem:[%s4729_s8 + $0x8] sm:$0xff]   ;;  %s4732_s8 = sld [smem:[#allocation27_spill]] }
 0x67e   : > { %3928 = vpow2.f32 %v2701_v55  ;;  %v3908_v55 = vld [vmem:[%s4730_s5] sm:$0xff]  }
 0x685   : > { %v3923_v56 = vpop.eup %3922  ;;  %v4531_v57 = vpop.f32.mrb[16].mxu1 }
 0x686   : > { %v3925_v58 = vpop.eup %3924  ;;  %v2338_v59 = vadd.f32 1.0, %v3923_v56  ;;  %v3722_v60 = vpop.f32.mrb[17].mxu1  ;;  %v3909_v56 = vld [vmem:[%s4730_s5 + $0x8] sm:$0xff]   ;;  %s3035_s5 = sshll.u32 %s4566_s14, 4  ;;  %s4610_s5 = int_to_ptr.vmem [resolvable:$true] %s3035_s5 }
 0x687   : > { %v3927_v61 = vpop.eup %3926  ;;  %v2703_v62 = vadd.f32 1.0, %v3925_v58  ;;  %v2933_v63 = vpop.f32.mrb[18].mxu1  ;;  %v3357_v58 = vld [vmem:[%s4727_s13 + $0x1] ss:$0 sm:$0xff] }
 0x688   : > { %v3929_v0 = vpop.eup %3928  ;;  %3930 = vrcp.f32 %v2338_v59  ;;  %v2339_v2 = vadd.f32 1.0, %v3927_v61  ;;  %v3723_v3 = vpop.f32.mrb[19].mxu1 }
 0x689   : > { %3932 = vrcp.f32 %v2703_v62  ;;  %v2704_v43 = vadd.f32 1.0, %v3929_v0  ;;  %v3371_v0 = vld [vmem:[%s4731_s3] ss:$0 sm:$0xff]  ;;  %s4734_s3 = sshll.u32 %s4741_s1, 3  ;;  %s3391_s1 = sshll.u32 %s4266_s0, 9 }
 0x68a   : > { %3934 = vrcp.f32 %v2339_v2 }
 0x68b   : > { %3936 = vrcp.f32 %v2704_v43 }
 0x692   : > { %v3931_v44 = vpop.eup %3930 }
 0x693   : > { %v3933_v4 = vpop.eup %3932  ;;  %v2344_v7 = vmul.f32 %v3931_v44, %v2326_v36 }
 0x694   : > { %v3935_v5 = vpop.eup %3934  ;;  %v4533_v10 = vmul.f32 %v3933_v4, %v2691_v37 }
 0x695   : > { %v3937_v6 = vpop.eup %3936  ;;  %v2345_v9 = vmul.f32 %v3935_v5, %v2329_v46 }
 0x696   : > { %v4535_v11 = vmul.f32 %v3937_v6, %v2694_v47 }
 0x697   : > { %v2354_v13 = vpack.c.bf16 %v2345_v9, %v2344_v7 }
 0x698   : > { %v2715_v15 = vpack.c.bf16 %v4535_v11, %v4533_v10  ;;  %v2936_v11 = vld [vmem:[%s4732_s8] sm:$0x1]  ;;  %s1088_s8 = scalar_lea.vmem %s4733_s4, %s4734_s3  ;;  %s4614_s3 = scalar_lea.hbm %s4233_s27, %s3391_s1 }
 0x699   : > { %3657 = vmatmul.mubr.msk.bf16.vlgmr.msra.gmra.mrb[24].mxu0 %vm1283_vm3, %v2354_v13  ;;  %s4735_s4 = sand.u32 1, %s4016_s16  }
 0x69a   : > { %3661 = vmatpush3.bf16.msra.mxu0 %v3896_v12  ;;  %3668 = vmatprep.mubr.msk.bf16.mxu0 %vm4061_vm0, %v4060_v1  ;;  %s4618_s9 = scalar_lea.sflag [#allocation3], %s4735_s4 }
 0x69b   : > { %3662 = vmatprep.subr.bf16.mxu0 %v4060_v1 }
 0x69e   : > { %3663 = vmatpush3.bf16.msra.mxu0 %v3897_v16 }
 0x69f   : > { %3664 = vmatprep.subr.bf16.mxu0 %v4060_v1 }
 0x6a2   : > { %3665 = vmatpush3.bf16.msra.mxu0 %v3898_v17 }
 0x6a3   : > { %3666 = vmatprep.subr.bf16.mxu0 %v4060_v1 }
 0x6a6   : > { %3667 = vmatpush3.bf16.msra.mxu0 %v3899_v18 }
 0x6a7   : > { %3672 = vmatprep.subr.bf16.mxu0 %v4060_v1 }
 0x6a9   : > { %3669 = vmatmul.mubr.msk.bf16.vlgmr.msra.gmra.mrb[28].mxu0 %vm1283_vm3, %v4503_v14  ;;  %v3327_v14 = vld [vmem:[%s4727_s13] ss:$0 sm:$0xff]  ;;  %s3962_s13 = scalar_lea.vmem %s4610_s5, 512 }
 0x6aa   : > { %3680 = vmatprep.mubr.msk.bf16.mxu0 %vm4061_vm0, %v4060_v1  ;;  %3673 = vmatpush3.bf16.msra.mxu0 %v3900_v19  ;;  %p3963_p12 = scmp.ne.s32.totalorder %s4610_s5, %s3962_s13 }
 0x6ab   : > { %3674 = vmatprep.subr.bf16.mxu0 %v4060_v1 }
 0x6ac   : > { %p3964_p13 = pnand %p3963_p12, %p4283_p5 }
 0x6ae   : > { %3675 = vmatpush3.bf16.msra.mxu0 %v3901_v20  ;;  %p3965_p0 = pneg %p3964_p13 }
 0x6af   : > { %3676 = vmatprep.subr.bf16.mxu0 %v4060_v1 }
 0x6b2   : > { %3677 = vmatpush3.bf16.msra.mxu0 %v3902_v21 }
 0x6b3   : > { %3678 = vmatprep.subr.bf16.mxu0 %v4060_v1 }
 0x6b6   : > { %3679 = vmatpush3.bf16.msra.mxu0 %v3903_v22 }
 0x6b7   : > { %3696 = vmatprep.subr.bf16.mxu0 %v4060_v1 }
 0x76c   : > { %v2423_v23 = vpop.f32.mrb[24].mxu0 }
 0x76d   : > { %v2424_v24 = vadd.f32 %v3327_v14, %v2423_v23  ;;  %v3658_v25 = vpop.f32.mrb[25].mxu0 }
 0x76e   : > { %v2426_v26 = vpop.f32.mrb[26].mxu0 }
 0x76f   : > { %2430 = vst.msk [vmem:[%s4566_s14] sm:$0xff] %vm1283_vm3, %v2424_v24  ;;  %v2427_v27 = vadd.f32 %v3327_v14, %v2426_v26  ;;  %v3659_v28 = vpop.f32.mrb[27].mxu0 }
 0x771   : > { %2431 = vst.msk [vmem:[%s4566_s14 + $0x8] sm:$0xff] %vm1283_vm3, %v2427_v27 }
 0x77c   : > { %v2507_v30 = vpop.f32.mrb[28].mxu0 }
 0x77d   : > { %v2508_v31 = vadd.f32 %v3342_v29, %v2507_v30  ;;  %v3670_v32 = vpop.f32.mrb[29].mxu0 }
 0x77e   : > { %v2510_v33 = vpop.f32.mrb[30].mxu0 }
 0x77f   : > { %v2514_v34 = vsub.f32 0.0, %v2508_v31  ;;  %v2511_v35 = vadd.f32 %v3342_v29, %v2510_v33  ;;  %v3671_v36 = vpop.f32.mrb[31].mxu0 }
 0x781   : > { %v2516_v37 = vmul.f32 1.442695, %v2514_v34  ;;  %v2515_v38 = vsub.f32 0.0, %v2511_v35 }
 0x783   : > { %3938 = vpow2.f32 %v2516_v37  ;;  %v2518_v39 = vmul.f32 1.442695, %v2515_v38 }
 0x785   : > { %3940 = vpow2.f32 %v2518_v39 }
 0x78d   : > { %v3939_v40 = vpop.eup %3938 }
 0x78e   : > { %v2520_v41 = vadd.f32 1.0, %v3939_v40 }
 0x78f   : > { %v3941_v42 = vpop.eup %3940 }
 0x790   : > { %3942 = vrcp.f32 %v2520_v41  ;;  %v2521_v45 = vadd.f32 1.0, %v3941_v42 }
 0x792   : > { %3944 = vrcp.f32 %v2521_v45 }
 0x79a   : > { %v3943_v46 = vpop.eup %3942 }
 0x79b   : > { %v2526_v48 = vmul.f32 %v3943_v46, %v2508_v31 }
 0x79c   : > { %v3945_v47 = vpop.eup %3944 }
 0x79d   : > { %v2527_v49 = vmul.f32 %v3945_v47, %v2511_v35 }
 0x79f   : > { %v2537_v51 = vpack.c.bf16 %v2527_v49, %v2526_v48 }
 0x7a1   : > { %3681 = vmatmul.mubr.msk.bf16.vlgmr.msra.gmra.mrb[32].mxu0 %vm1283_vm3, %v2537_v51 }
 0x7a2   : > { %3697 = vmatpush3.bf16.msra.mxu0 %v3904_v50  ;;  %3700 = vmatprep.mubr.msk.bf16.mxu0 %vm4061_vm0, %v4060_v1 }
 0x7a3   : > { %3698 = vmatprep.subr.bf16.mxu0 %v4060_v1 }
 0x7a6   : > { %3699 = vmatpush3.bf16.msra.mxu0 %v3905_v52 }
 0x7a7   : > { %3704 = vmatprep.subr.bf16.mxu0 %v4060_v1 }
 0x7a9   : > { %3701 = vmatmul.mubr.msk.bf16.vlgmr.msra.gmra.mrb[36].mxu0 %vm1116_vm2, %v2715_v15 }
 0x7aa   : > { %3705 = vmatpush3.bf16.msra.mxu0 %v3906_v53  ;;  %3708 = vmatprep.mubr.msk.bf16.mxu0 %vm4061_vm0, %v4060_v1 }
 0x7ab   : > { %3706 = vmatprep.subr.bf16.mxu0 %v4060_v1 }
 0x7ae   : > { %3707 = vmatpush3.bf16.msra.mxu0 %v3907_v54 }
 0x7af   : > { %3724 = vmatprep.subr.bf16.mxu0 %v4060_v1 }
 0x7b1   : > { %3709 = vmatmul.mubr.msk.bf16.vlgmr.msra.gmra.mrb[40].mxu0 %vm1116_vm2, %v4314_v8 }
 0x7b2   : > { %3728 = vmatprep.mubr.msk.bf16.mxu0 %vm4061_vm0, %v4060_v1  ;;  %3725 = vmatpush3.bf16.msra.mxu0 %v3908_v55 }
 0x7b3   : > { %3726 = vmatprep.subr.bf16.mxu0 %v4060_v1 }
 0x7b6   : > { %3727 = vmatpush3.bf16.msra.mxu0 %v3909_v56 }
 0x874   : > { %v2607_v59 = vpop.f32.mrb[32].mxu0 }
 0x875   : > { %v2608_v60 = vadd.f32 %v3357_v58, %v2607_v59  ;;  %v3682_v61 = vpop.f32.mrb[33].mxu0 }
 0x876   : > { %v2610_v62 = vpop.f32.mrb[34].mxu0 }
 0x877   : > { %3363 = vst.msk [vmem:[%s4566_s14 + $0x10] sm:$0xff] %vm1283_vm3, %v2608_v60  ;;  %v2611_v63 = vadd.f32 %v3357_v58, %v2610_v62  ;;  %v3683_v8 = vpop.f32.mrb[35].mxu0 }
 0x879   : > { %3364 = vst.msk [vmem:[%s4566_s14 + $0x18] sm:$0xff] %vm1283_vm3, %v2611_v63 }
 0x87c   : > { %v2772_v2 = vpop.f32.mrb[36].mxu0 }
 0x87d   : > { %v2773_v3 = vadd.f32 %v3371_v0, %v2772_v2  ;;  %v3702_v43 = vpop.f32.mrb[37].mxu0 }
 0x87e   : > { %v2775_v44 = vpop.f32.mrb[38].mxu0 }
 0x87f   : > { %v2779_v1 = vsub.f32 0.0, %v2773_v3  ;;  %v2776_v4 = vadd.f32 %v3371_v0, %v2775_v44  ;;  %v3703_v5 = vpop.f32.mrb[39].mxu0 }
 0x881   : > { %v2781_v6 = vmul.f32 1.442695, %v2779_v1  ;;  %v2780_v7 = vsub.f32 0.0, %v2776_v4 }
 0x883   : > { %3946 = vpow2.f32 %v2781_v6  ;;  %v2783_v9 = vmul.f32 1.442695, %v2780_v7 }
 0x884   : > { %v2863_v10 = vpop.f32.mrb[40].mxu0 }
 0x885   : > { %3948 = vpow2.f32 %v2783_v9  ;;  %v2931_v12 = vadd.f32 %v4531_v57, %v2863_v10  ;;  %v3710_v13 = vpop.f32.mrb[41].mxu0 }
 0x886   : > { %v2866_v15 = vpop.f32.mrb[42].mxu0 }
 0x887   : > { %v2937_v16 = vadd.f32 %v2936_v11, %v2931_v12  ;;  %v3711_v17 = vpop.f32.mrb[43].mxu0 }
 0x889   : > { %v2938_v18 = vsub.f32 0.0, %v2937_v16 }
 0x88b   : > { %v2939_v19 = vmul.f32 1.442695, %v2938_v18 }
 0x88d   : > { %v3947_v20 = vpop.eup %3946  ;;  %3950 = vpow2.f32 %v2939_v19 }
 0x88e   : > { %v2785_v21 = vadd.f32 1.0, %v3947_v20 }
 0x88f   : > { %v3949_v22 = vpop.eup %3948 }
 0x890   : > { %3952 = vrcp.f32 %v2785_v21  ;;  %v2786_v14 = vadd.f32 1.0, %v3949_v22 }
 0x892   : > { %3954 = vrcp.f32 %v2786_v14 }
 0x897   : > { %v3951_v23 = vpop.eup %3950 }
 0x898   : > { %v2941_v57 = vadd.f32 1.0, %v3951_v23 }
 0x89a   : > { %v3953_v24 = vpop.eup %3952  ;;  %3956 = vrcp.f32 %v2941_v57 }
 0x89b   : > { %2791 = vst [vmem:[%s1088_s8] sm:$0xff] %v3953_v24 }
 0x89c   : > { %v3955_v25 = vpop.eup %3954 }
 0x89d   : > { %2792 = vst [vmem:[%s1088_s8 + $0x8] sm:$0xff] %v3955_v25  ;;  %s4062_s8 = smov [#allocation2]  }
 0x89e   : > { %s3966_s17 = sshll.u32 %s4062_s8, 4  ;;  %s3967_s17 = int_to_ptr.vmem [resolvable:$false] %s3966_s17 }
 0x89f   : > { %s3968_s14 = scalar_lea.vmem %s3967_s17, 1024  ;;  %p3969_p1 = scmp.lt.s32.totalorder %s4610_s5, %s3967_s17 }
 0x8a0   : > { %p3970_p2 = scmp.lt.s32.totalorder %s3968_s14, %s3962_s13 }
 0x8a2   : > { %p3971_p3 = por %p3970_p2, %p3969_p1 }
 0x8a4   : > { %v3957_v26 = vpop.eup %3956  ;;  %p3972_p4 = pnand %p3971_p3, %p3965_p0 }
 0x8a5   : > { %v2944_v27 = vmul.f32 %v3957_v26, %v2937_v16 }
 0x8a7   : > { %v2949_v28 = vpack.c.bf16 %v2944_v27, %v2944_v27 }
 0x8a9   : > { %3729 = vmatmul.mubr.msk.bf16.vlgmr.msra.gmra.mrb[44].mxu0 %vm1116_vm2, %v2949_v28 }
 0x8aa   : > { %3975 = shalt.err (!%p3972_p4)
}
 0x8ab   : > { %s3976_s4 = scalar_lea.hbm %s4614_s3, 512  ;;  %s3980_s0 = scalar_lea.hbm %s4233_s27, 1024 }
 0x8ac   : > { %p3977_p7 = scmp.ne.s32.totalorder %s4614_s3, %s3976_s4  ;;  %p3981_p10 = scmp.lt.u32.totalorder %s4614_s3, %s4233_s27 }
 0x8ad   : > { %p3982_p11 = scmp.lt.u32.totalorder %s3980_s0, %s3976_s4  ;;  %p3984_p13 = scmp.lt.u32.totalorder %s3976_s4, %s4614_s3 }
 0x8ae   : > { %p3978_p8 = pnand %p3977_p7, %p4283_p5 }
 0x8af   : > { %p3983_p12 = por %p3982_p11, %p3981_p10 }
 0x8b0   : > { %p3979_p9 = pneg %p3978_p8 }
 0x8b1   : > { %p3985_p1 = por %p3984_p13, %p3983_p12 }
 0x8b3   : > { %p3986_p0 = pnand %p3985_p1, %p3979_p9 }
 0x8b5   : > { %3989 = shalt.err (!%p3986_p0)
}
 0x8b6   : > { %s4063_s17 = smov 128   ;;  %s4064_s13 = smov 8   ;;  %v2950_v29 = vld [vmem:[%s4228_s6] sm:$0x1] }
 0x8b7   : > { %3758 = dma.vmem_to_hbm [thread:$0]  (%p4283_p5), %s4610_s5, 512, %s4614_s3, %s4618_s9, %s4063_s17, %s4063_s17, %s4064_s13  }
 0x8b8   : > { %s1092_s1 = scalar_lea.vmem %s4243_s12, %s4304_s11 }
 0x97c   : > { %v3000_v30 = vpop.f32.mrb[44].mxu0 }
 0x97d   : > { %v3001_v31 = vadd.f32 %v3000_v30, %v2950_v29  ;;  %v3730_v32 = vpop.f32.mrb[45].mxu0 }
 0x97e   : > { %v3003_v33 = vpop.f32.mrb[46].mxu0 }
 0x97f   : > { %v3006_v34 = vsub.f32 0.0, %v3001_v31  ;;  %v3731_v35 = vpop.f32.mrb[47].mxu0 }
 0x981   : > { %v3007_v36 = vmul.f32 1.442695, %v3006_v34 }
 0x983   : > { %3958 = vpow2.f32 %v3007_v36 }
 0x98d   : > { %v3959_v37 = vpop.eup %3958 }
 0x98e   : > { %v3009_v38 = vadd.f32 1.0, %v3959_v37 }
 0x990   : > { %3960 = vrcp.f32 %v3009_v38 }
 0x99a   : > { %v3961_v39 = vpop.eup %3960 }
 0x99b   : > { %3012 = vst [vmem:[%s1092_s1] sm:$0x1] %v3961_v39 }
 0x99c PF: > { %p3764_p5 = scmp.ge.s32.totalorder %s4024_s22, 2  ;;  %s3057_s9 = sand.u32 1, %s4012_s15  }
 0x99d   : > { %s3058_s7 = scalar_lea.sflag [#allocation3], %s3057_s9 }
 0x99e   : > { %p3761_p2 = pnand %p3764_p5, %p4287_p6 }
 0x9a0   : > { %4007 = dma.done.wait (!%p3761_p2), %s3058_s7, 512  }
 0x9a1   : > { %4009 = vsyncadd (!%p3761_p2), %s3058_s7, 4294966784  ;;  %p80_p3 = scmp.ge.s32.totalorder %s4270_s26, 4   ;;  %s4736_s15 = smov %s4016_s16 }
 0x9a2   : > { %s4737_s16 = smov %s4020_s18  ;;  %s4738_s18 = smov %s4281_s2 }
 0x9a3   : > { %s4739_s22 = smov %s4270_s26  ;;  %82 = sbr.rel (!%p80_p3) target bundleno = 72 (0x48), region = 258 }
 0x9aa   :  { %3077 = vsyncpa [#allocation3], 1 }
 0x9ab   :  { %3079 = vsyncpa [#allocation3 + $0x1], 1 }

</bundles_post_ra>
